<compile_context>
chip_gen: v7x
topology: tpu7x:2x2x1
jax: 0.10.0
libtpu: 0.0.40
codegen_flags: <defaults>
</compile_context>

<pallas_src>
import math

import jax
import jax.numpy as jnp
from jax.experimental import pallas as pl
from jax.experimental.pallas import tpu as pltpu


# --------------------------------------------------------------------------
# Host-side parameter packing: 27 conv params + fc -> 3 dense arrays.
# --------------------------------------------------------------------------
def _pack_params(conv_flat, w_fc_t, b_fc):
    n_conv = len(conv_flat) // 3                       # 9 convs
    weights = [conv_flat[3 * i] for i in range(n_conv)]
    scales = [conv_flat[3 * i + 1] for i in range(n_conv)]
    shifts = [conv_flat[3 * i + 2] for i in range(n_conv)]

    K = int(weights[0].shape[0])
    layer_dims = tuple((int(w.shape[1]), int(w.shape[2])) for w in weights)
    cmax = max(max(ci, co) for ci, co in layer_dims)
    w_rows = K * cmax

    # (n_conv, K*cmax, cmax): each weight flattened to (K*Cin, Cout) and zero-padded.
    w_pack = jnp.stack([
        jnp.pad(w.reshape(K * w.shape[1], w.shape[2]),
                ((0, w_rows - K * w.shape[1]), (0, cmax - w.shape[2])))
        for w in weights])
    # (2*n_conv, cmax): row 2i = scale_i, row 2i+1 = shift_i (zero-padded).
    ss_rows = []
    for s, t in zip(scales, shifts):
        ss_rows.append(jnp.pad(jnp.ravel(s), (0, cmax - s.size)))
        ss_rows.append(jnp.pad(jnp.ravel(t), (0, cmax - t.size)))
    ss_pack = jnp.stack(ss_rows)
    # (C_last + 1, NC): FC weight rows, last row = bias.
    fc_pack = jnp.concatenate([w_fc_t, b_fc.reshape(1, -1)], axis=0)
    return w_pack, ss_pack, fc_pack, layer_dims, K


# --------------------------------------------------------------------------
# Wrapper: one pallas_call for the whole network.
# --------------------------------------------------------------------------
def cnn_forward(x_ncl, conv_flat, w_fc_t, b_fc, *, batch_tile=None):
    """x_ncl: (B, Cin, L) exactly as PyTorch.  Returns (B, num_classes) softmax.

    batch_tile: batch elements per grid step.  Default = whole batch (grid=(1,),
    optimal for single-TC v5e/v6e).  Use batch_tile=B//2 on v7x (2 TCs).
    """
    B, CIN, L0 = x_ncl.shape
    NC = w_fc_t.shape[1]
    TB = B if batch_tile is None else int(batch_tile)
    assert B % TB == 0, "batch must divide evenly into batch_tile"
    assert L0 % 8 == 0, "sequence length must be divisible by 8 (3x MaxPool1d(2))"
    G = B // TB

    w_pack, ss_pack, fc_pack, layer_dims, K = _pack_params(conv_flat, w_fc_t, b_fc)
    assert K % 2 == 1, "even kernel sizes don't match PyTorch 'same' padding here"
    pad = (K - 1) // 2
    n_blocks = len(layer_dims) // 3
    C_LAST = layer_dims[-1][1]

    # ---------------- the fused kernel (closure over static dims) ----------------
    def kernel(x_ref, w_ref, ss_ref, fc_ref, o_ref):
        L = L0

        # NCL -> flattened channels-last (TB*L, CIN).  Transpose each element on
        # the MXU via an identity matmul (exact; avoids a wrapper-side XLA op).
        ri = jax.lax.broadcasted_iota(jnp.int32, (L, L), 0)
        ci = jax.lax.broadcasted_iota(jnp.int32, (L, L), 1)
        eye = (ri == ci).astype(jnp.float32)
        parts = [
            jax.lax.dot_general(
                eye, x_ref[b].astype(jnp.float32),
                dimension_numbers=(((1,), (1,)), ((), ())),     # eye @ x_b^T
                preferred_element_type=jnp.float32)
            for b in range(TB)
        ]
        x = parts[0] if TB == 1 else jnp.concatenate(parts, axis=0)   # (TB*L, CIN)

        def conv_bn_relu(xin, idx, pos, L_cur, skip=None):
            # One im2col matmul per conv: taps concatenated along lanes.
            cin, cout = layer_dims[idx]
            rows = xin.shape[0]
            zpad = jnp.zeros((pad, cin), jnp.float32)
            xp = jnp.concatenate([zpad, xin, zpad], axis=0)           # (rows+2p, cin)
            taps = []
            for k in range(K):
                s = k - pad
                tap = xp[k:k + rows, :]
                if s != 0:
                    # zero contributions that would cross a batch-element boundary
                    valid = jnp.logical_and(pos + s >= 0, pos + s < L_cur)
                    tap = jnp.where(valid, tap, 0.0)
                taps.append(tap)
            xcat = taps[0] if K == 1 else jnp.concatenate(taps, axis=1)  # (rows, K*cin)
            w = w_ref[idx, :K * cin, :cout]                            # (K*cin, cout)
            y = jnp.dot(xcat, w, preferred_element_type=jnp.float32)
            if skip is not None:                                       # pre-norm skip add
                y = y + skip
            sc = ss_ref[2 * idx:2 * idx + 1, :cout]                    # BN(eval) scale
            sh = ss_ref[2 * idx + 1:2 * idx + 2, :cout]                # BN(eval)+bias shift
            return y, jnp.maximum(y * sc + sh, 0.0)

        conv_idx = 0
        for _blk in range(n_blocks):
            R = TB * L
            # position of each flattened row within its batch element (no div/rem)
            pos = jax.lax.broadcasted_iota(jnp.int32, (TB, L, 1), 1).reshape(R, 1)

            c1, a1 = conv_bn_relu(x, conv_idx, pos, L)
            _, a2 = conv_bn_relu(a1, conv_idx + 1, pos, L)
            _, a3 = conv_bn_relu(a2, conv_idx + 2, pos, L, skip=c1)

            # MaxPool1d(2): pair-max then a single even-row selection matmul.
            ch = a3.shape[1]
            nxt = jnp.concatenate(
                [a3[1:, :], jnp.zeros((1, ch), jnp.float32)], axis=0)
            m = jnp.maximum(a3, nxt)                                   # m[r]=max(x[r],x[r+1])
            half = R // 2
            rr = jax.lax.broadcasted_iota(jnp.int32, (half, R), 0)
            cc = jax.lax.broadcasted_iota(jnp.int32, (half, R), 1)
            sel = (cc == 2 * rr).astype(jnp.float32)
            x = jnp.dot(sel, m, preferred_element_type=jnp.float32)    # (R//2, ch)

            L = L // 2
            conv_idx += 3
            # dropout: identity in eval mode

        # AdaptiveAvgPool1d(1) per element (block-diagonal averaging matmul),
        # FC, softmax -- all TB elements at once, one (TB, NC) store.
        R = TB * L
        rb = jax.lax.broadcasted_iota(jnp.int32, (TB, R), 0)
        cb = jax.lax.broadcasted_iota(jnp.int32, (TB, R), 1)
        in_elem = jnp.logical_and(cb >= rb * L, cb < (rb + 1) * L)
        avg = jnp.where(in_elem, 1.0 / L, 0.0)                         # (TB, TB*L)
        xm = jnp.dot(avg, x, preferred_element_type=jnp.float32)       # (TB, C_LAST)

        w_fc = fc_ref[0:C_LAST, :]
        b_row = fc_ref[C_LAST:C_LAST + 1, :]
        logits = jnp.dot(xm, w_fc, preferred_element_type=jnp.float32) + b_row
        mx = jnp.max(logits, axis=-1, keepdims=True)
        e = jnp.exp(logits - mx)
        o_ref[0] = e / jnp.sum(e, axis=-1, keepdims=True)              # (TB, NC)

    # ---------------- pallas_call ----------------
    in_specs = [
        pl.BlockSpec((TB, CIN, L0), lambda i: (i, 0, 0)),              # NCL input, TB/step
        pl.BlockSpec(w_pack.shape, lambda i: (0, 0, 0)),               # weights: resident
        pl.BlockSpec(ss_pack.shape, lambda i: (0, 0)),                 # scale/shift: resident
        pl.BlockSpec(fc_pack.shape, lambda i: (0, 0)),                 # fc: resident
    ]
    out = pl.pallas_call(
        kernel,
        out_shape=jax.ShapeDtypeStruct((G, TB, NC), jnp.float32),
        grid=(G,),
        in_specs=in_specs,
        out_specs=pl.BlockSpec((1, TB, NC), lambda i: (i, 0, 0)),
        compiler_params=pltpu.CompilerParams(
            dimension_semantics=("parallel",)),
    )(x_ncl, w_pack, ss_pack, fc_pack)
    return out.reshape(B, NC)


# --------------------------------------------------------------------------
# Parameter construction (PyTorch-shaped, then re-laid-out + BN/bias folding)
# --------------------------------------------------------------------------
def make_conv_weight(key, cin, cout, k):
    kw, kb = jax.random.split(key)
    w_torch = jax.random.normal(kw, (cout, cin, k), jnp.float32) / math.sqrt(cin * k)
    b = jax.random.normal(kb, (cout,), jnp.float32) * 0.1
    w_kco = jnp.transpose(w_torch, (2, 1, 0))              # (K, Cin, Cout)
    return w_kco, b


def make_block_params(key, cin, ch, k, eps=1e-5):
    """ConvNormPool params, eval-mode BatchNorm folded to per-channel scale/shift.

    Conv biases are folded into the BN shifts (b1 into norm1 and norm3, b3 into
    norm3) so the kernel never adds a separate bias term.
    """
    k1, k2, k3 = jax.random.split(key, 3)
    w1, b1 = make_conv_weight(k1, cin, ch, k)
    w2, b2 = make_conv_weight(k2, ch, ch, k)
    w3, b3 = make_conv_weight(k3, ch, ch, k)
    # Fresh BatchNorm1d buffers: gamma=1, beta=0, running_mean=0, running_var=1.
    gamma = jnp.ones((ch,), jnp.float32)
    beta = jnp.zeros((ch,), jnp.float32)
    mean = jnp.zeros((ch,), jnp.float32)
    var = jnp.ones((ch,), jnp.float32)
    s = gamma / jnp.sqrt(var + eps)
    t1 = beta + s * (b1 - mean)
    t2 = beta + s * (b2 - mean)
    t3 = beta + s * (b1 + b3 - mean)
    row = lambda v: v.reshape(1, -1)
    return [w1, row(s), row(t1), w2, row(s), row(t2), w3, row(s), row(t3)]


# --------------------------------------------------------------------------
# Pure-JAX reference (same folded params) for correctness checking.
# --------------------------------------------------------------------------
def _ref_forward(x_ncl, conv_flat, w_fc_t, b_fc):
    x = jnp.transpose(x_ncl, (0, 2, 1)).astype(jnp.float32)

    def conv(x, w):
        ksz = w.shape[0]
        pad = (ksz - 1) // 2
        L = x.shape[1]
        xp = jnp.pad(x, ((0, 0), (pad, pad), (0, 0)))
        return sum(jnp.einsum("blc,cd->bld", xp[:, k:k + L, :], w[k])
                   for k in range(ksz))

    n_blocks = len(conv_flat) // 9
    for bix in range(n_blocks):
        w1, s1, t1, w2, s2, t2, w3, s3, t3 = conv_flat[9 * bix:9 * (bix + 1)]
        c1 = conv(x, w1)
        a1 = jax.nn.relu(c1 * s1 + t1)
        c2 = conv(a1, w2)
        a2 = jax.nn.relu(c2 * s2 + t2)
        c3 = conv(a2, w3)
        a3 = jax.nn.relu((c1 + c3) * s3 + t3)
        B, L, C = a3.shape
        x = jnp.max(a3.reshape(B, L // 2, 2, C), axis=2)

    xm = jnp.mean(x, axis=1)
    logits = xm @ w_fc_t + b_fc
    return jax.nn.softmax(logits, axis=-1)


# --------------------------------------------------------------------------
if __name__ == "__main__":
    # Small shapes consistent with the module: input_size=12, reduced hid_size=32.
    B, CIN, L = 2, 12, 64
    HID, K, NUM_CLASSES = 32, 3, 5

    root = jax.random.PRNGKey(0)
    kx, kb1, kb2, kb3, kfw, kfb = jax.random.split(root, 6)

    conv_flat = (make_block_params(kb1, CIN, HID, K)
                 + make_block_params(kb2, HID, HID // 2, K)
                 + make_block_params(kb3, HID // 2, HID // 4, K))
    w_fc = jax.random.normal(kfw, (NUM_CLASSES, HID // 4), jnp.float32) / math.sqrt(HID // 4)
    b_fc = jax.random.normal(kfb, (NUM_CLASSES,), jnp.float32) * 0.1
    w_fc_t = w_fc.T                                        # (C, NUM_CLASSES)

    x = jax.random.normal(kx, (B, CIN, L), jnp.float32)    # PyTorch NCL input

    ref = _ref_forward(x, conv_flat, w_fc_t, b_fc)

    fwd = jax.jit(cnn_forward, static_argnames=("batch_tile",))

    # Whole batch per grid step (grid=(1,)) -- best for single-TC v5e/v6e.
    out = jax.block_until_ready(fwd(x, conv_flat, w_fc_t, b_fc))
    assert out.shape == (B, NUM_CLASSES), out.shape
    assert bool(jnp.all(jnp.isfinite(out)))
    assert bool(jnp.allclose(jnp.sum(out, axis=1), 1.0, atol=1e-5))
    assert bool(jnp.allclose(out, ref, atol=5e-5, rtol=1e-3)), (
        float(jnp.max(jnp.abs(out - ref))))

    # Two parallel grid steps (one element each) -- the v7x 2-TensorCore split.
    out2 = jax.block_until_ready(fwd(x, conv_flat, w_fc_t, b_fc, batch_tile=1))
    assert bool(jnp.allclose(out2, ref, atol=5e-5, rtol=1e-3)), (
        float(jnp.max(jnp.abs(out2 - ref))))

    print("KERNEL_OK")
</pallas_src>

<mosaic_0001>
module attributes {stable_mosaic.version = 11 : i64} {
  func.func @kernel(%arg0: i32, %arg1: memref<2x12x64xf32, #tpu.memory_space<vmem>>, %arg2: memref<9x96x32xf32, #tpu.memory_space<vmem>>, %arg3: memref<18x32xf32, #tpu.memory_space<vmem>>, %arg4: memref<9x5xf32, #tpu.memory_space<vmem>>, %arg5: memref<1x2x5xf32, #tpu.memory_space<vmem>>) attributes {dimension_semantics = [#tpu.dimension_semantics<parallel>], iteration_bounds = array<i64: 1>, scalar_prefetch = 0 : i64, scratch_operands = 0 : i64, tpu.core_type = #tpu.core_type<tc>, window_params = [{transform_indices = @transform_0, window_bounds = array<i64: 2, 12, 64>}, {pipeline_mode = #tpu.pipeline_mode<synchronous>, transform_indices = @transform_1, window_bounds = array<i64: 9, 96, 32>}, {pipeline_mode = #tpu.pipeline_mode<synchronous>, transform_indices = @transform_2, window_bounds = array<i64: 18, 32>}, {pipeline_mode = #tpu.pipeline_mode<synchronous>, transform_indices = @transform_3, window_bounds = array<i64: 9, 5>}, {transform_indices = @transform_4, window_bounds = array<i64: 1, 2, 5>}]} {
    %0 = tpu.iota {dimensions = array<i32: 0>} : vector<64x64xi32>
    %1 = tpu.iota {dimensions = array<i32: 1>} : vector<64x64xi32>
    %2 = arith.cmpi eq, %0, %1 : vector<64x64xi32>
    %3 = arith.extui %2 : vector<64x64xi1> to vector<64x64xi32>
    %4 = arith.sitofp %3 : vector<64x64xi32> to vector<64x64xf32>
    %c0 = arith.constant 0 : index
    %c0_0 = arith.constant 0 : index
    %c0_1 = arith.constant 0 : index
    %5 = vector.load %arg1[%c0, %c0_0, %c0_1] : memref<2x12x64xf32, #tpu.memory_space<vmem>>, vector<1x12x64xf32>
    %6 = vector.shape_cast %5 : vector<1x12x64xf32> to vector<12x64xf32>
    %cst = arith.constant dense<0.000000e+00> : vector<64x12xf32>
    %7 = tpu.matmul %4, %6, %cst {dimension_numbers = #tpu.dot_dimension_numbers<[1], [1], [0], [0], [0, 0, 1, 0], [], []>} : vector<64x64xf32>, vector<12x64xf32>, vector<64x12xf32> -> vector<64x12xf32>
    %c1 = arith.constant 1 : index
    %c0_2 = arith.constant 0 : index
    %c0_3 = arith.constant 0 : index
    %8 = vector.load %arg1[%c1, %c0_2, %c0_3] : memref<2x12x64xf32, #tpu.memory_space<vmem>>, vector<1x12x64xf32>
    %9 = vector.shape_cast %8 : vector<1x12x64xf32> to vector<12x64xf32>
    %cst_4 = arith.constant dense<0.000000e+00> : vector<64x12xf32>
    %10 = tpu.matmul %4, %9, %cst_4 {dimension_numbers = #tpu.dot_dimension_numbers<[1], [1], [0], [0], [0, 0, 1, 0], [], []>} : vector<64x64xf32>, vector<12x64xf32>, vector<64x12xf32> -> vector<64x12xf32>
    %11 = tpu.concatenate %7, %10 in 0 : vector<64x12xf32>, vector<64x12xf32> -> vector<128x12xf32>
    %12 = tpu.iota {dimensions = array<i32: 1>} : vector<2x64x1xi32>
    %13 = vector.shape_cast %12 : vector<2x64x1xi32> to vector<128x1xi32>
    %cst_5 = arith.constant 0.000000e+00 : f32
    %14 = vector.broadcast %cst_5 : f32 to vector<1x12xf32>
    %15 = tpu.concatenate %14, %11, %14 in 0 : vector<1x12xf32>, vector<128x12xf32>, vector<1x12xf32> -> vector<130x12xf32>
    %16 = vector.extract_strided_slice %15 {offsets = [0, 0], sizes = [128, 12], strides = [1, 1]} : vector<130x12xf32> to vector<128x12xf32>
    %c-1_i32 = arith.constant -1 : i32
    %17 = vector.broadcast %c-1_i32 : i32 to vector<128x1xi32>
    %18 = arith.addi %13, %17 : vector<128x1xi32>
    %c0_i32 = arith.constant 0 : i32
    %19 = vector.broadcast %c0_i32 : i32 to vector<128x1xi32>
    %20 = arith.cmpi sge, %18, %19 : vector<128x1xi32>
    %c-1_i32_6 = arith.constant -1 : i32
    %21 = vector.broadcast %c-1_i32_6 : i32 to vector<128x1xi32>
    %22 = arith.addi %13, %21 : vector<128x1xi32>
    %c64_i32 = arith.constant 64 : i32
    %23 = vector.broadcast %c64_i32 : i32 to vector<128x1xi32>
    %24 = arith.cmpi slt, %22, %23 : vector<128x1xi32>
    %25 = arith.andi %20, %24 : vector<128x1xi1>
    %cst_7 = arith.constant 0.000000e+00 : f32
    %26 = vector.shape_cast %25 : vector<128x1xi1> to vector<128x1xi1>
    %27 = vector.broadcast %26 : vector<128x1xi1> to vector<128x12xi1>
    %28 = vector.broadcast %cst_7 : f32 to vector<128x12xf32>
    %29 = arith.select %27, %16, %28 : vector<128x12xi1>, vector<128x12xf32>
    %30 = vector.extract_strided_slice %15 {offsets = [1, 0], sizes = [128, 12], strides = [1, 1]} : vector<130x12xf32> to vector<128x12xf32>
    %31 = vector.extract_strided_slice %15 {offsets = [2, 0], sizes = [128, 12], strides = [1, 1]} : vector<130x12xf32> to vector<128x12xf32>
    %c1_i32 = arith.constant 1 : i32
    %32 = vector.broadcast %c1_i32 : i32 to vector<128x1xi32>
    %33 = arith.addi %13, %32 : vector<128x1xi32>
    %c0_i32_8 = arith.constant 0 : i32
    %34 = vector.broadcast %c0_i32_8 : i32 to vector<128x1xi32>
    %35 = arith.cmpi sge, %33, %34 : vector<128x1xi32>
    %c1_i32_9 = arith.constant 1 : i32
    %36 = vector.broadcast %c1_i32_9 : i32 to vector<128x1xi32>
    %37 = arith.addi %13, %36 : vector<128x1xi32>
    %c64_i32_10 = arith.constant 64 : i32
    %38 = vector.broadcast %c64_i32_10 : i32 to vector<128x1xi32>
    %39 = arith.cmpi slt, %37, %38 : vector<128x1xi32>
    %40 = arith.andi %35, %39 : vector<128x1xi1>
    %cst_11 = arith.constant 0.000000e+00 : f32
    %41 = vector.shape_cast %40 : vector<128x1xi1> to vector<128x1xi1>
    %42 = vector.broadcast %41 : vector<128x1xi1> to vector<128x12xi1>
    %43 = vector.broadcast %cst_11 : f32 to vector<128x12xf32>
    %44 = arith.select %42, %31, %43 : vector<128x12xi1>, vector<128x12xf32>
    %45 = tpu.concatenate %29, %30, %44 in 1 : vector<128x12xf32>, vector<128x12xf32>, vector<128x12xf32> -> vector<128x36xf32>
    %c0_12 = arith.constant 0 : index
    %c0_13 = arith.constant 0 : index
    %c0_14 = arith.constant 0 : index
    %46 = vector.load %arg2[%c0_12, %c0_13, %c0_14] : memref<9x96x32xf32, #tpu.memory_space<vmem>>, vector<1x36x32xf32>
    %47 = vector.shape_cast %46 : vector<1x36x32xf32> to vector<36x32xf32>
    %cst_15 = arith.constant dense<0.000000e+00> : vector<128x32xf32>
    %48 = tpu.matmul %45, %47, %cst_15 {dimension_numbers = #tpu.dot_dimension_numbers<[1], [0], [0], [1], [0, 0, 1, 1], [], []>} : vector<128x36xf32>, vector<36x32xf32>, vector<128x32xf32> -> vector<128x32xf32>
    %c0_16 = arith.constant 0 : index
    %c0_17 = arith.constant 0 : index
    %49 = vector.load %arg3[%c0_16, %c0_17] : memref<18x32xf32, #tpu.memory_space<vmem>>, vector<1x32xf32>
    %c1_18 = arith.constant 1 : index
    %c0_19 = arith.constant 0 : index
    %50 = vector.load %arg3[%c1_18, %c0_19] : memref<18x32xf32, #tpu.memory_space<vmem>>, vector<1x32xf32>
    %51 = vector.broadcast %49 : vector<1x32xf32> to vector<128x32xf32>
    %52 = arith.mulf %48, %51 : vector<128x32xf32>
    %53 = vector.broadcast %50 : vector<1x32xf32> to vector<128x32xf32>
    %54 = arith.addf %52, %53 : vector<128x32xf32>
    %cst_20 = arith.constant 0.000000e+00 : f32
    %55 = vector.broadcast %cst_20 : f32 to vector<128x32xf32>
    %56 = arith.maximumf %54, %55 : vector<128x32xf32>
    %cst_21 = arith.constant 0.000000e+00 : f32
    %57 = vector.broadcast %cst_21 : f32 to vector<1x32xf32>
    %58 = tpu.concatenate %57, %56, %57 in 0 : vector<1x32xf32>, vector<128x32xf32>, vector<1x32xf32> -> vector<130x32xf32>
    %59 = vector.extract_strided_slice %58 {offsets = [0, 0], sizes = [128, 32], strides = [1, 1]} : vector<130x32xf32> to vector<128x32xf32>
    %c-1_i32_22 = arith.constant -1 : i32
    %60 = vector.broadcast %c-1_i32_22 : i32 to vector<128x1xi32>
    %61 = arith.addi %13, %60 : vector<128x1xi32>
    %c0_i32_23 = arith.constant 0 : i32
    %62 = vector.broadcast %c0_i32_23 : i32 to vector<128x1xi32>
    %63 = arith.cmpi sge, %61, %62 : vector<128x1xi32>
    %c-1_i32_24 = arith.constant -1 : i32
    %64 = vector.broadcast %c-1_i32_24 : i32 to vector<128x1xi32>
    %65 = arith.addi %13, %64 : vector<128x1xi32>
    %c64_i32_25 = arith.constant 64 : i32
    %66 = vector.broadcast %c64_i32_25 : i32 to vector<128x1xi32>
    %67 = arith.cmpi slt, %65, %66 : vector<128x1xi32>
    %68 = arith.andi %63, %67 : vector<128x1xi1>
    %cst_26 = arith.constant 0.000000e+00 : f32
    %69 = vector.shape_cast %68 : vector<128x1xi1> to vector<128x1xi1>
    %70 = vector.broadcast %69 : vector<128x1xi1> to vector<128x32xi1>
    %71 = vector.broadcast %cst_26 : f32 to vector<128x32xf32>
    %72 = arith.select %70, %59, %71 : vector<128x32xi1>, vector<128x32xf32>
    %73 = vector.extract_strided_slice %58 {offsets = [1, 0], sizes = [128, 32], strides = [1, 1]} : vector<130x32xf32> to vector<128x32xf32>
    %74 = vector.extract_strided_slice %58 {offsets = [2, 0], sizes = [128, 32], strides = [1, 1]} : vector<130x32xf32> to vector<128x32xf32>
    %c1_i32_27 = arith.constant 1 : i32
    %75 = vector.broadcast %c1_i32_27 : i32 to vector<128x1xi32>
    %76 = arith.addi %13, %75 : vector<128x1xi32>
    %c0_i32_28 = arith.constant 0 : i32
    %77 = vector.broadcast %c0_i32_28 : i32 to vector<128x1xi32>
    %78 = arith.cmpi sge, %76, %77 : vector<128x1xi32>
    %c1_i32_29 = arith.constant 1 : i32
    %79 = vector.broadcast %c1_i32_29 : i32 to vector<128x1xi32>
    %80 = arith.addi %13, %79 : vector<128x1xi32>
    %c64_i32_30 = arith.constant 64 : i32
    %81 = vector.broadcast %c64_i32_30 : i32 to vector<128x1xi32>
    %82 = arith.cmpi slt, %80, %81 : vector<128x1xi32>
    %83 = arith.andi %78, %82 : vector<128x1xi1>
    %cst_31 = arith.constant 0.000000e+00 : f32
    %84 = vector.shape_cast %83 : vector<128x1xi1> to vector<128x1xi1>
    %85 = vector.broadcast %84 : vector<128x1xi1> to vector<128x32xi1>
    %86 = vector.broadcast %cst_31 : f32 to vector<128x32xf32>
    %87 = arith.select %85, %74, %86 : vector<128x32xi1>, vector<128x32xf32>
    %88 = tpu.concatenate %72, %73, %87 in 1 : vector<128x32xf32>, vector<128x32xf32>, vector<128x32xf32> -> vector<128x96xf32>
    %c1_32 = arith.constant 1 : index
    %c0_33 = arith.constant 0 : index
    %c0_34 = arith.constant 0 : index
    %89 = vector.load %arg2[%c1_32, %c0_33, %c0_34] : memref<9x96x32xf32, #tpu.memory_space<vmem>>, vector<1x96x32xf32>
    %90 = vector.shape_cast %89 : vector<1x96x32xf32> to vector<96x32xf32>
    %cst_35 = arith.constant dense<0.000000e+00> : vector<128x32xf32>
    %91 = tpu.matmul %88, %90, %cst_35 {dimension_numbers = #tpu.dot_dimension_numbers<[1], [0], [0], [1], [0, 0, 1, 1], [], []>} : vector<128x96xf32>, vector<96x32xf32>, vector<128x32xf32> -> vector<128x32xf32>
    %c2 = arith.constant 2 : index
    %c0_36 = arith.constant 0 : index
    %92 = vector.load %arg3[%c2, %c0_36] : memref<18x32xf32, #tpu.memory_space<vmem>>, vector<1x32xf32>
    %c3 = arith.constant 3 : index
    %c0_37 = arith.constant 0 : index
    %93 = vector.load %arg3[%c3, %c0_37] : memref<18x32xf32, #tpu.memory_space<vmem>>, vector<1x32xf32>
    %94 = vector.broadcast %92 : vector<1x32xf32> to vector<128x32xf32>
    %95 = arith.mulf %91, %94 : vector<128x32xf32>
    %96 = vector.broadcast %93 : vector<1x32xf32> to vector<128x32xf32>
    %97 = arith.addf %95, %96 : vector<128x32xf32>
    %cst_38 = arith.constant 0.000000e+00 : f32
    %98 = vector.broadcast %cst_38 : f32 to vector<128x32xf32>
    %99 = arith.maximumf %97, %98 : vector<128x32xf32>
    %cst_39 = arith.constant 0.000000e+00 : f32
    %100 = vector.broadcast %cst_39 : f32 to vector<1x32xf32>
    %101 = tpu.concatenate %100, %99, %100 in 0 : vector<1x32xf32>, vector<128x32xf32>, vector<1x32xf32> -> vector<130x32xf32>
    %102 = vector.extract_strided_slice %101 {offsets = [0, 0], sizes = [128, 32], strides = [1, 1]} : vector<130x32xf32> to vector<128x32xf32>
    %c-1_i32_40 = arith.constant -1 : i32
    %103 = vector.broadcast %c-1_i32_40 : i32 to vector<128x1xi32>
    %104 = arith.addi %13, %103 : vector<128x1xi32>
    %c0_i32_41 = arith.constant 0 : i32
    %105 = vector.broadcast %c0_i32_41 : i32 to vector<128x1xi32>
    %106 = arith.cmpi sge, %104, %105 : vector<128x1xi32>
    %c-1_i32_42 = arith.constant -1 : i32
    %107 = vector.broadcast %c-1_i32_42 : i32 to vector<128x1xi32>
    %108 = arith.addi %13, %107 : vector<128x1xi32>
    %c64_i32_43 = arith.constant 64 : i32
    %109 = vector.broadcast %c64_i32_43 : i32 to vector<128x1xi32>
    %110 = arith.cmpi slt, %108, %109 : vector<128x1xi32>
    %111 = arith.andi %106, %110 : vector<128x1xi1>
    %cst_44 = arith.constant 0.000000e+00 : f32
    %112 = vector.shape_cast %111 : vector<128x1xi1> to vector<128x1xi1>
    %113 = vector.broadcast %112 : vector<128x1xi1> to vector<128x32xi1>
    %114 = vector.broadcast %cst_44 : f32 to vector<128x32xf32>
    %115 = arith.select %113, %102, %114 : vector<128x32xi1>, vector<128x32xf32>
    %116 = vector.extract_strided_slice %101 {offsets = [1, 0], sizes = [128, 32], strides = [1, 1]} : vector<130x32xf32> to vector<128x32xf32>
    %117 = vector.extract_strided_slice %101 {offsets = [2, 0], sizes = [128, 32], strides = [1, 1]} : vector<130x32xf32> to vector<128x32xf32>
    %c1_i32_45 = arith.constant 1 : i32
    %118 = vector.broadcast %c1_i32_45 : i32 to vector<128x1xi32>
    %119 = arith.addi %13, %118 : vector<128x1xi32>
    %c0_i32_46 = arith.constant 0 : i32
    %120 = vector.broadcast %c0_i32_46 : i32 to vector<128x1xi32>
    %121 = arith.cmpi sge, %119, %120 : vector<128x1xi32>
    %c1_i32_47 = arith.constant 1 : i32
    %122 = vector.broadcast %c1_i32_47 : i32 to vector<128x1xi32>
    %123 = arith.addi %13, %122 : vector<128x1xi32>
    %c64_i32_48 = arith.constant 64 : i32
    %124 = vector.broadcast %c64_i32_48 : i32 to vector<128x1xi32>
    %125 = arith.cmpi slt, %123, %124 : vector<128x1xi32>
    %126 = arith.andi %121, %125 : vector<128x1xi1>
    %cst_49 = arith.constant 0.000000e+00 : f32
    %127 = vector.shape_cast %126 : vector<128x1xi1> to vector<128x1xi1>
    %128 = vector.broadcast %127 : vector<128x1xi1> to vector<128x32xi1>
    %129 = vector.broadcast %cst_49 : f32 to vector<128x32xf32>
    %130 = arith.select %128, %117, %129 : vector<128x32xi1>, vector<128x32xf32>
    %131 = tpu.concatenate %115, %116, %130 in 1 : vector<128x32xf32>, vector<128x32xf32>, vector<128x32xf32> -> vector<128x96xf32>
    %c2_50 = arith.constant 2 : index
    %c0_51 = arith.constant 0 : index
    %c0_52 = arith.constant 0 : index
    %132 = vector.load %arg2[%c2_50, %c0_51, %c0_52] : memref<9x96x32xf32, #tpu.memory_space<vmem>>, vector<1x96x32xf32>
    %133 = vector.shape_cast %132 : vector<1x96x32xf32> to vector<96x32xf32>
    %cst_53 = arith.constant dense<0.000000e+00> : vector<128x32xf32>
    %134 = tpu.matmul %131, %133, %cst_53 {dimension_numbers = #tpu.dot_dimension_numbers<[1], [0], [0], [1], [0, 0, 1, 1], [], []>} : vector<128x96xf32>, vector<96x32xf32>, vector<128x32xf32> -> vector<128x32xf32>
    %135 = arith.addf %134, %48 : vector<128x32xf32>
    %c4 = arith.constant 4 : index
    %c0_54 = arith.constant 0 : index
    %136 = vector.load %arg3[%c4, %c0_54] : memref<18x32xf32, #tpu.memory_space<vmem>>, vector<1x32xf32>
    %c5 = arith.constant 5 : index
    %c0_55 = arith.constant 0 : index
    %137 = vector.load %arg3[%c5, %c0_55] : memref<18x32xf32, #tpu.memory_space<vmem>>, vector<1x32xf32>
    %138 = vector.broadcast %136 : vector<1x32xf32> to vector<128x32xf32>
    %139 = arith.mulf %135, %138 : vector<128x32xf32>
    %140 = vector.broadcast %137 : vector<1x32xf32> to vector<128x32xf32>
    %141 = arith.addf %139, %140 : vector<128x32xf32>
    %cst_56 = arith.constant 0.000000e+00 : f32
    %142 = vector.broadcast %cst_56 : f32 to vector<128x32xf32>
    %143 = arith.maximumf %141, %142 : vector<128x32xf32>
    %144 = vector.extract_strided_slice %143 {offsets = [1, 0], sizes = [127, 32], strides = [1, 1]} : vector<128x32xf32> to vector<127x32xf32>
    %cst_57 = arith.constant 0.000000e+00 : f32
    %145 = vector.broadcast %cst_57 : f32 to vector<1x32xf32>
    %146 = tpu.concatenate %144, %145 in 0 : vector<127x32xf32>, vector<1x32xf32> -> vector<128x32xf32>
    %147 = arith.maximumf %143, %146 : vector<128x32xf32>
    %148 = tpu.iota {dimensions = array<i32: 0>} : vector<64x128xi32>
    %149 = tpu.iota {dimensions = array<i32: 1>} : vector<64x128xi32>
    %c2_i32 = arith.constant 2 : i32
    %150 = vector.broadcast %c2_i32 : i32 to vector<64x128xi32>
    %151 = arith.muli %150, %148 : vector<64x128xi32>
    %152 = arith.cmpi eq, %149, %151 : vector<64x128xi32>
    %153 = arith.extui %152 : vector<64x128xi1> to vector<64x128xi32>
    %154 = arith.sitofp %153 : vector<64x128xi32> to vector<64x128xf32>
    %cst_58 = arith.constant dense<0.000000e+00> : vector<64x32xf32>
    %155 = tpu.matmul %154, %147, %cst_58 {dimension_numbers = #tpu.dot_dimension_numbers<[1], [0], [0], [1], [0, 0, 1, 1], [], []>} : vector<64x128xf32>, vector<128x32xf32>, vector<64x32xf32> -> vector<64x32xf32>
    %156 = tpu.iota {dimensions = array<i32: 1>} : vector<2x32x1xi32>
    %157 = vector.shape_cast %156 : vector<2x32x1xi32> to vector<64x1xi32>
    %cst_59 = arith.constant 0.000000e+00 : f32
    %158 = vector.broadcast %cst_59 : f32 to vector<1x32xf32>
    %159 = tpu.concatenate %158, %155, %158 in 0 : vector<1x32xf32>, vector<64x32xf32>, vector<1x32xf32> -> vector<66x32xf32>
    %160 = vector.extract_strided_slice %159 {offsets = [0, 0], sizes = [64, 32], strides = [1, 1]} : vector<66x32xf32> to vector<64x32xf32>
    %c-1_i32_60 = arith.constant -1 : i32
    %161 = vector.broadcast %c-1_i32_60 : i32 to vector<64x1xi32>
    %162 = arith.addi %157, %161 : vector<64x1xi32>
    %c0_i32_61 = arith.constant 0 : i32
    %163 = vector.broadcast %c0_i32_61 : i32 to vector<64x1xi32>
    %164 = arith.cmpi sge, %162, %163 : vector<64x1xi32>
    %c-1_i32_62 = arith.constant -1 : i32
    %165 = vector.broadcast %c-1_i32_62 : i32 to vector<64x1xi32>
    %166 = arith.addi %157, %165 : vector<64x1xi32>
    %c32_i32 = arith.constant 32 : i32
    %167 = vector.broadcast %c32_i32 : i32 to vector<64x1xi32>
    %168 = arith.cmpi slt, %166, %167 : vector<64x1xi32>
    %169 = arith.andi %164, %168 : vector<64x1xi1>
    %cst_63 = arith.constant 0.000000e+00 : f32
    %170 = vector.shape_cast %169 : vector<64x1xi1> to vector<64x1xi1>
    %171 = vector.broadcast %170 : vector<64x1xi1> to vector<64x32xi1>
    %172 = vector.broadcast %cst_63 : f32 to vector<64x32xf32>
    %173 = arith.select %171, %160, %172 : vector<64x32xi1>, vector<64x32xf32>
    %174 = vector.extract_strided_slice %159 {offsets = [1, 0], sizes = [64, 32], strides = [1, 1]} : vector<66x32xf32> to vector<64x32xf32>
    %175 = vector.extract_strided_slice %159 {offsets = [2, 0], sizes = [64, 32], strides = [1, 1]} : vector<66x32xf32> to vector<64x32xf32>
    %c1_i32_64 = arith.constant 1 : i32
    %176 = vector.broadcast %c1_i32_64 : i32 to vector<64x1xi32>
    %177 = arith.addi %157, %176 : vector<64x1xi32>
    %c0_i32_65 = arith.constant 0 : i32
    %178 = vector.broadcast %c0_i32_65 : i32 to vector<64x1xi32>
    %179 = arith.cmpi sge, %177, %178 : vector<64x1xi32>
    %c1_i32_66 = arith.constant 1 : i32
    %180 = vector.broadcast %c1_i32_66 : i32 to vector<64x1xi32>
    %181 = arith.addi %157, %180 : vector<64x1xi32>
    %c32_i32_67 = arith.constant 32 : i32
    %182 = vector.broadcast %c32_i32_67 : i32 to vector<64x1xi32>
    %183 = arith.cmpi slt, %181, %182 : vector<64x1xi32>
    %184 = arith.andi %179, %183 : vector<64x1xi1>
    %cst_68 = arith.constant 0.000000e+00 : f32
    %185 = vector.shape_cast %184 : vector<64x1xi1> to vector<64x1xi1>
    %186 = vector.broadcast %185 : vector<64x1xi1> to vector<64x32xi1>
    %187 = vector.broadcast %cst_68 : f32 to vector<64x32xf32>
    %188 = arith.select %186, %175, %187 : vector<64x32xi1>, vector<64x32xf32>
    %189 = tpu.concatenate %173, %174, %188 in 1 : vector<64x32xf32>, vector<64x32xf32>, vector<64x32xf32> -> vector<64x96xf32>
    %c3_69 = arith.constant 3 : index
    %c0_70 = arith.constant 0 : index
    %c0_71 = arith.constant 0 : index
    %190 = vector.load %arg2[%c3_69, %c0_70, %c0_71] : memref<9x96x32xf32, #tpu.memory_space<vmem>>, vector<1x96x16xf32>
    %191 = vector.shape_cast %190 : vector<1x96x16xf32> to vector<96x16xf32>
    %cst_72 = arith.constant dense<0.000000e+00> : vector<64x16xf32>
    %192 = tpu.matmul %189, %191, %cst_72 {dimension_numbers = #tpu.dot_dimension_numbers<[1], [0], [0], [1], [0, 0, 1, 1], [], []>} : vector<64x96xf32>, vector<96x16xf32>, vector<64x16xf32> -> vector<64x16xf32>
    %c6 = arith.constant 6 : index
    %c0_73 = arith.constant 0 : index
    %193 = vector.load %arg3[%c6, %c0_73] : memref<18x32xf32, #tpu.memory_space<vmem>>, vector<1x16xf32>
    %c7 = arith.constant 7 : index
    %c0_74 = arith.constant 0 : index
    %194 = vector.load %arg3[%c7, %c0_74] : memref<18x32xf32, #tpu.memory_space<vmem>>, vector<1x16xf32>
    %195 = vector.broadcast %193 : vector<1x16xf32> to vector<64x16xf32>
    %196 = arith.mulf %192, %195 : vector<64x16xf32>
    %197 = vector.broadcast %194 : vector<1x16xf32> to vector<64x16xf32>
    %198 = arith.addf %196, %197 : vector<64x16xf32>
    %cst_75 = arith.constant 0.000000e+00 : f32
    %199 = vector.broadcast %cst_75 : f32 to vector<64x16xf32>
    %200 = arith.maximumf %198, %199 : vector<64x16xf32>
    %cst_76 = arith.constant 0.000000e+00 : f32
    %201 = vector.broadcast %cst_76 : f32 to vector<1x16xf32>
    %202 = tpu.concatenate %201, %200, %201 in 0 : vector<1x16xf32>, vector<64x16xf32>, vector<1x16xf32> -> vector<66x16xf32>
    %203 = vector.extract_strided_slice %202 {offsets = [0, 0], sizes = [64, 16], strides = [1, 1]} : vector<66x16xf32> to vector<64x16xf32>
    %c-1_i32_77 = arith.constant -1 : i32
    %204 = vector.broadcast %c-1_i32_77 : i32 to vector<64x1xi32>
    %205 = arith.addi %157, %204 : vector<64x1xi32>
    %c0_i32_78 = arith.constant 0 : i32
    %206 = vector.broadcast %c0_i32_78 : i32 to vector<64x1xi32>
    %207 = arith.cmpi sge, %205, %206 : vector<64x1xi32>
    %c-1_i32_79 = arith.constant -1 : i32
    %208 = vector.broadcast %c-1_i32_79 : i32 to vector<64x1xi32>
    %209 = arith.addi %157, %208 : vector<64x1xi32>
    %c32_i32_80 = arith.constant 32 : i32
    %210 = vector.broadcast %c32_i32_80 : i32 to vector<64x1xi32>
    %211 = arith.cmpi slt, %209, %210 : vector<64x1xi32>
    %212 = arith.andi %207, %211 : vector<64x1xi1>
    %cst_81 = arith.constant 0.000000e+00 : f32
    %213 = vector.shape_cast %212 : vector<64x1xi1> to vector<64x1xi1>
    %214 = vector.broadcast %213 : vector<64x1xi1> to vector<64x16xi1>
    %215 = vector.broadcast %cst_81 : f32 to vector<64x16xf32>
    %216 = arith.select %214, %203, %215 : vector<64x16xi1>, vector<64x16xf32>
    %217 = vector.extract_strided_slice %202 {offsets = [1, 0], sizes = [64, 16], strides = [1, 1]} : vector<66x16xf32> to vector<64x16xf32>
    %218 = vector.extract_strided_slice %202 {offsets = [2, 0], sizes = [64, 16], strides = [1, 1]} : vector<66x16xf32> to vector<64x16xf32>
    %c1_i32_82 = arith.constant 1 : i32
    %219 = vector.broadcast %c1_i32_82 : i32 to vector<64x1xi32>
    %220 = arith.addi %157, %219 : vector<64x1xi32>
    %c0_i32_83 = arith.constant 0 : i32
    %221 = vector.broadcast %c0_i32_83 : i32 to vector<64x1xi32>
    %222 = arith.cmpi sge, %220, %221 : vector<64x1xi32>
    %c1_i32_84 = arith.constant 1 : i32
    %223 = vector.broadcast %c1_i32_84 : i32 to vector<64x1xi32>
    %224 = arith.addi %157, %223 : vector<64x1xi32>
    %c32_i32_85 = arith.constant 32 : i32
    %225 = vector.broadcast %c32_i32_85 : i32 to vector<64x1xi32>
    %226 = arith.cmpi slt, %224, %225 : vector<64x1xi32>
    %227 = arith.andi %222, %226 : vector<64x1xi1>
    %cst_86 = arith.constant 0.000000e+00 : f32
    %228 = vector.shape_cast %227 : vector<64x1xi1> to vector<64x1xi1>
    %229 = vector.broadcast %228 : vector<64x1xi1> to vector<64x16xi1>
    %230 = vector.broadcast %cst_86 : f32 to vector<64x16xf32>
    %231 = arith.select %229, %218, %230 : vector<64x16xi1>, vector<64x16xf32>
    %232 = tpu.concatenate %216, %217, %231 in 1 : vector<64x16xf32>, vector<64x16xf32>, vector<64x16xf32> -> vector<64x48xf32>
    %c4_87 = arith.constant 4 : index
    %c0_88 = arith.constant 0 : index
    %c0_89 = arith.constant 0 : index
    %233 = vector.load %arg2[%c4_87, %c0_88, %c0_89] : memref<9x96x32xf32, #tpu.memory_space<vmem>>, vector<1x48x16xf32>
    %234 = vector.shape_cast %233 : vector<1x48x16xf32> to vector<48x16xf32>
    %cst_90 = arith.constant dense<0.000000e+00> : vector<64x16xf32>
    %235 = tpu.matmul %232, %234, %cst_90 {dimension_numbers = #tpu.dot_dimension_numbers<[1], [0], [0], [1], [0, 0, 1, 1], [], []>} : vector<64x48xf32>, vector<48x16xf32>, vector<64x16xf32> -> vector<64x16xf32>
    %c8 = arith.constant 8 : index
    %c0_91 = arith.constant 0 : index
    %236 = vector.load %arg3[%c8, %c0_91] : memref<18x32xf32, #tpu.memory_space<vmem>>, vector<1x16xf32>
    %c9 = arith.constant 9 : index
    %c0_92 = arith.constant 0 : index
    %237 = vector.load %arg3[%c9, %c0_92] : memref<18x32xf32, #tpu.memory_space<vmem>>, vector<1x16xf32>
    %238 = vector.broadcast %236 : vector<1x16xf32> to vector<64x16xf32>
    %239 = arith.mulf %235, %238 : vector<64x16xf32>
    %240 = vector.broadcast %237 : vector<1x16xf32> to vector<64x16xf32>
    %241 = arith.addf %239, %240 : vector<64x16xf32>
    %cst_93 = arith.constant 0.000000e+00 : f32
    %242 = vector.broadcast %cst_93 : f32 to vector<64x16xf32>
    %243 = arith.maximumf %241, %242 : vector<64x16xf32>
    %cst_94 = arith.constant 0.000000e+00 : f32
    %244 = vector.broadcast %cst_94 : f32 to vector<1x16xf32>
    %245 = tpu.concatenate %244, %243, %244 in 0 : vector<1x16xf32>, vector<64x16xf32>, vector<1x16xf32> -> vector<66x16xf32>
    %246 = vector.extract_strided_slice %245 {offsets = [0, 0], sizes = [64, 16], strides = [1, 1]} : vector<66x16xf32> to vector<64x16xf32>
    %c-1_i32_95 = arith.constant -1 : i32
    %247 = vector.broadcast %c-1_i32_95 : i32 to vector<64x1xi32>
    %248 = arith.addi %157, %247 : vector<64x1xi32>
    %c0_i32_96 = arith.constant 0 : i32
    %249 = vector.broadcast %c0_i32_96 : i32 to vector<64x1xi32>
    %250 = arith.cmpi sge, %248, %249 : vector<64x1xi32>
    %c-1_i32_97 = arith.constant -1 : i32
    %251 = vector.broadcast %c-1_i32_97 : i32 to vector<64x1xi32>
    %252 = arith.addi %157, %251 : vector<64x1xi32>
    %c32_i32_98 = arith.constant 32 : i32
    %253 = vector.broadcast %c32_i32_98 : i32 to vector<64x1xi32>
    %254 = arith.cmpi slt, %252, %253 : vector<64x1xi32>
    %255 = arith.andi %250, %254 : vector<64x1xi1>
    %cst_99 = arith.constant 0.000000e+00 : f32
    %256 = vector.shape_cast %255 : vector<64x1xi1> to vector<64x1xi1>
    %257 = vector.broadcast %256 : vector<64x1xi1> to vector<64x16xi1>
    %258 = vector.broadcast %cst_99 : f32 to vector<64x16xf32>
    %259 = arith.select %257, %246, %258 : vector<64x16xi1>, vector<64x16xf32>
    %260 = vector.extract_strided_slice %245 {offsets = [1, 0], sizes = [64, 16], strides = [1, 1]} : vector<66x16xf32> to vector<64x16xf32>
    %261 = vector.extract_strided_slice %245 {offsets = [2, 0], sizes = [64, 16], strides = [1, 1]} : vector<66x16xf32> to vector<64x16xf32>
    %c1_i32_100 = arith.constant 1 : i32
    %262 = vector.broadcast %c1_i32_100 : i32 to vector<64x1xi32>
    %263 = arith.addi %157, %262 : vector<64x1xi32>
    %c0_i32_101 = arith.constant 0 : i32
    %264 = vector.broadcast %c0_i32_101 : i32 to vector<64x1xi32>
    %265 = arith.cmpi sge, %263, %264 : vector<64x1xi32>
    %c1_i32_102 = arith.constant 1 : i32
    %266 = vector.broadcast %c1_i32_102 : i32 to vector<64x1xi32>
    %267 = arith.addi %157, %266 : vector<64x1xi32>
    %c32_i32_103 = arith.constant 32 : i32
    %268 = vector.broadcast %c32_i32_103 : i32 to vector<64x1xi32>
    %269 = arith.cmpi slt, %267, %268 : vector<64x1xi32>
    %270 = arith.andi %265, %269 : vector<64x1xi1>
    %cst_104 = arith.constant 0.000000e+00 : f32
    %271 = vector.shape_cast %270 : vector<64x1xi1> to vector<64x1xi1>
    %272 = vector.broadcast %271 : vector<64x1xi1> to vector<64x16xi1>
    %273 = vector.broadcast %cst_104 : f32 to vector<64x16xf32>
    %274 = arith.select %272, %261, %273 : vector<64x16xi1>, vector<64x16xf32>
    %275 = tpu.concatenate %259, %260, %274 in 1 : vector<64x16xf32>, vector<64x16xf32>, vector<64x16xf32> -> vector<64x48xf32>
    %c5_105 = arith.constant 5 : index
    %c0_106 = arith.constant 0 : index
    %c0_107 = arith.constant 0 : index
    %276 = vector.load %arg2[%c5_105, %c0_106, %c0_107] : memref<9x96x32xf32, #tpu.memory_space<vmem>>, vector<1x48x16xf32>
    %277 = vector.shape_cast %276 : vector<1x48x16xf32> to vector<48x16xf32>
    %cst_108 = arith.constant dense<0.000000e+00> : vector<64x16xf32>
    %278 = tpu.matmul %275, %277, %cst_108 {dimension_numbers = #tpu.dot_dimension_numbers<[1], [0], [0], [1], [0, 0, 1, 1], [], []>} : vector<64x48xf32>, vector<48x16xf32>, vector<64x16xf32> -> vector<64x16xf32>
    %279 = arith.addf %278, %192 : vector<64x16xf32>
    %c10 = arith.constant 10 : index
    %c0_109 = arith.constant 0 : index
    %280 = vector.load %arg3[%c10, %c0_109] : memref<18x32xf32, #tpu.memory_space<vmem>>, vector<1x16xf32>
    %c11 = arith.constant 11 : index
    %c0_110 = arith.constant 0 : index
    %281 = vector.load %arg3[%c11, %c0_110] : memref<18x32xf32, #tpu.memory_space<vmem>>, vector<1x16xf32>
    %282 = vector.broadcast %280 : vector<1x16xf32> to vector<64x16xf32>
    %283 = arith.mulf %279, %282 : vector<64x16xf32>
    %284 = vector.broadcast %281 : vector<1x16xf32> to vector<64x16xf32>
    %285 = arith.addf %283, %284 : vector<64x16xf32>
    %cst_111 = arith.constant 0.000000e+00 : f32
    %286 = vector.broadcast %cst_111 : f32 to vector<64x16xf32>
    %287 = arith.maximumf %285, %286 : vector<64x16xf32>
    %288 = vector.extract_strided_slice %287 {offsets = [1, 0], sizes = [63, 16], strides = [1, 1]} : vector<64x16xf32> to vector<63x16xf32>
    %cst_112 = arith.constant 0.000000e+00 : f32
    %289 = vector.broadcast %cst_112 : f32 to vector<1x16xf32>
    %290 = tpu.concatenate %288, %289 in 0 : vector<63x16xf32>, vector<1x16xf32> -> vector<64x16xf32>
    %291 = arith.maximumf %287, %290 : vector<64x16xf32>
    %292 = tpu.iota {dimensions = array<i32: 0>} : vector<32x64xi32>
    %293 = tpu.iota {dimensions = array<i32: 1>} : vector<32x64xi32>
    %c2_i32_113 = arith.constant 2 : i32
    %294 = vector.broadcast %c2_i32_113 : i32 to vector<32x64xi32>
    %295 = arith.muli %294, %292 : vector<32x64xi32>
    %296 = arith.cmpi eq, %293, %295 : vector<32x64xi32>
    %297 = arith.extui %296 : vector<32x64xi1> to vector<32x64xi32>
    %298 = arith.sitofp %297 : vector<32x64xi32> to vector<32x64xf32>
    %cst_114 = arith.constant dense<0.000000e+00> : vector<32x16xf32>
    %299 = tpu.matmul %298, %291, %cst_114 {dimension_numbers = #tpu.dot_dimension_numbers<[1], [0], [0], [1], [0, 0, 1, 1], [], []>} : vector<32x64xf32>, vector<64x16xf32>, vector<32x16xf32> -> vector<32x16xf32>
    %300 = tpu.iota {dimensions = array<i32: 1>} : vector<2x16x1xi32>
    %301 = vector.shape_cast %300 : vector<2x16x1xi32> to vector<32x1xi32>
    %cst_115 = arith.constant 0.000000e+00 : f32
    %302 = vector.broadcast %cst_115 : f32 to vector<1x16xf32>
    %303 = tpu.concatenate %302, %299, %302 in 0 : vector<1x16xf32>, vector<32x16xf32>, vector<1x16xf32> -> vector<34x16xf32>
    %304 = vector.extract_strided_slice %303 {offsets = [0, 0], sizes = [32, 16], strides = [1, 1]} : vector<34x16xf32> to vector<32x16xf32>
    %c-1_i32_116 = arith.constant -1 : i32
    %305 = vector.broadcast %c-1_i32_116 : i32 to vector<32x1xi32>
    %306 = arith.addi %301, %305 : vector<32x1xi32>
    %c0_i32_117 = arith.constant 0 : i32
    %307 = vector.broadcast %c0_i32_117 : i32 to vector<32x1xi32>
    %308 = arith.cmpi sge, %306, %307 : vector<32x1xi32>
    %c-1_i32_118 = arith.constant -1 : i32
    %309 = vector.broadcast %c-1_i32_118 : i32 to vector<32x1xi32>
    %310 = arith.addi %301, %309 : vector<32x1xi32>
    %c16_i32 = arith.constant 16 : i32
    %311 = vector.broadcast %c16_i32 : i32 to vector<32x1xi32>
    %312 = arith.cmpi slt, %310, %311 : vector<32x1xi32>
    %313 = arith.andi %308, %312 : vector<32x1xi1>
    %cst_119 = arith.constant 0.000000e+00 : f32
    %314 = vector.shape_cast %313 : vector<32x1xi1> to vector<32x1xi1>
    %315 = vector.broadcast %314 : vector<32x1xi1> to vector<32x16xi1>
    %316 = vector.broadcast %cst_119 : f32 to vector<32x16xf32>
    %317 = arith.select %315, %304, %316 : vector<32x16xi1>, vector<32x16xf32>
    %318 = vector.extract_strided_slice %303 {offsets = [1, 0], sizes = [32, 16], strides = [1, 1]} : vector<34x16xf32> to vector<32x16xf32>
    %319 = vector.extract_strided_slice %303 {offsets = [2, 0], sizes = [32, 16], strides = [1, 1]} : vector<34x16xf32> to vector<32x16xf32>
    %c1_i32_120 = arith.constant 1 : i32
    %320 = vector.broadcast %c1_i32_120 : i32 to vector<32x1xi32>
    %321 = arith.addi %301, %320 : vector<32x1xi32>
    %c0_i32_121 = arith.constant 0 : i32
    %322 = vector.broadcast %c0_i32_121 : i32 to vector<32x1xi32>
    %323 = arith.cmpi sge, %321, %322 : vector<32x1xi32>
    %c1_i32_122 = arith.constant 1 : i32
    %324 = vector.broadcast %c1_i32_122 : i32 to vector<32x1xi32>
    %325 = arith.addi %301, %324 : vector<32x1xi32>
    %c16_i32_123 = arith.constant 16 : i32
    %326 = vector.broadcast %c16_i32_123 : i32 to vector<32x1xi32>
    %327 = arith.cmpi slt, %325, %326 : vector<32x1xi32>
    %328 = arith.andi %323, %327 : vector<32x1xi1>
    %cst_124 = arith.constant 0.000000e+00 : f32
    %329 = vector.shape_cast %328 : vector<32x1xi1> to vector<32x1xi1>
    %330 = vector.broadcast %329 : vector<32x1xi1> to vector<32x16xi1>
    %331 = vector.broadcast %cst_124 : f32 to vector<32x16xf32>
    %332 = arith.select %330, %319, %331 : vector<32x16xi1>, vector<32x16xf32>
    %333 = tpu.concatenate %317, %318, %332 in 1 : vector<32x16xf32>, vector<32x16xf32>, vector<32x16xf32> -> vector<32x48xf32>
    %c6_125 = arith.constant 6 : index
    %c0_126 = arith.constant 0 : index
    %c0_127 = arith.constant 0 : index
    %334 = vector.load %arg2[%c6_125, %c0_126, %c0_127] : memref<9x96x32xf32, #tpu.memory_space<vmem>>, vector<1x48x8xf32>
    %335 = vector.shape_cast %334 : vector<1x48x8xf32> to vector<48x8xf32>
    %cst_128 = arith.constant dense<0.000000e+00> : vector<32x8xf32>
    %336 = tpu.matmul %333, %335, %cst_128 {dimension_numbers = #tpu.dot_dimension_numbers<[1], [0], [0], [1], [0, 0, 1, 1], [], []>} : vector<32x48xf32>, vector<48x8xf32>, vector<32x8xf32> -> vector<32x8xf32>
    %c12 = arith.constant 12 : index
    %c0_129 = arith.constant 0 : index
    %337 = vector.load %arg3[%c12, %c0_129] : memref<18x32xf32, #tpu.memory_space<vmem>>, vector<1x8xf32>
    %c13 = arith.constant 13 : index
    %c0_130 = arith.constant 0 : index
    %338 = vector.load %arg3[%c13, %c0_130] : memref<18x32xf32, #tpu.memory_space<vmem>>, vector<1x8xf32>
    %339 = vector.broadcast %337 : vector<1x8xf32> to vector<32x8xf32>
    %340 = arith.mulf %336, %339 : vector<32x8xf32>
    %341 = vector.broadcast %338 : vector<1x8xf32> to vector<32x8xf32>
    %342 = arith.addf %340, %341 : vector<32x8xf32>
    %cst_131 = arith.constant 0.000000e+00 : f32
    %343 = vector.broadcast %cst_131 : f32 to vector<32x8xf32>
    %344 = arith.maximumf %342, %343 : vector<32x8xf32>
    %cst_132 = arith.constant 0.000000e+00 : f32
    %345 = vector.broadcast %cst_132 : f32 to vector<1x8xf32>
    %346 = tpu.concatenate %345, %344, %345 in 0 : vector<1x8xf32>, vector<32x8xf32>, vector<1x8xf32> -> vector<34x8xf32>
    %347 = vector.extract_strided_slice %346 {offsets = [0, 0], sizes = [32, 8], strides = [1, 1]} : vector<34x8xf32> to vector<32x8xf32>
    %c-1_i32_133 = arith.constant -1 : i32
    %348 = vector.broadcast %c-1_i32_133 : i32 to vector<32x1xi32>
    %349 = arith.addi %301, %348 : vector<32x1xi32>
    %c0_i32_134 = arith.constant 0 : i32
    %350 = vector.broadcast %c0_i32_134 : i32 to vector<32x1xi32>
    %351 = arith.cmpi sge, %349, %350 : vector<32x1xi32>
    %c-1_i32_135 = arith.constant -1 : i32
    %352 = vector.broadcast %c-1_i32_135 : i32 to vector<32x1xi32>
    %353 = arith.addi %301, %352 : vector<32x1xi32>
    %c16_i32_136 = arith.constant 16 : i32
    %354 = vector.broadcast %c16_i32_136 : i32 to vector<32x1xi32>
    %355 = arith.cmpi slt, %353, %354 : vector<32x1xi32>
    %356 = arith.andi %351, %355 : vector<32x1xi1>
    %cst_137 = arith.constant 0.000000e+00 : f32
    %357 = vector.shape_cast %356 : vector<32x1xi1> to vector<32x1xi1>
    %358 = vector.broadcast %357 : vector<32x1xi1> to vector<32x8xi1>
    %359 = vector.broadcast %cst_137 : f32 to vector<32x8xf32>
    %360 = arith.select %358, %347, %359 : vector<32x8xi1>, vector<32x8xf32>
    %361 = vector.extract_strided_slice %346 {offsets = [1, 0], sizes = [32, 8], strides = [1, 1]} : vector<34x8xf32> to vector<32x8xf32>
    %362 = vector.extract_strided_slice %346 {offsets = [2, 0], sizes = [32, 8], strides = [1, 1]} : vector<34x8xf32> to vector<32x8xf32>
    %c1_i32_138 = arith.constant 1 : i32
    %363 = vector.broadcast %c1_i32_138 : i32 to vector<32x1xi32>
    %364 = arith.addi %301, %363 : vector<32x1xi32>
    %c0_i32_139 = arith.constant 0 : i32
    %365 = vector.broadcast %c0_i32_139 : i32 to vector<32x1xi32>
    %366 = arith.cmpi sge, %364, %365 : vector<32x1xi32>
    %c1_i32_140 = arith.constant 1 : i32
    %367 = vector.broadcast %c1_i32_140 : i32 to vector<32x1xi32>
    %368 = arith.addi %301, %367 : vector<32x1xi32>
    %c16_i32_141 = arith.constant 16 : i32
    %369 = vector.broadcast %c16_i32_141 : i32 to vector<32x1xi32>
    %370 = arith.cmpi slt, %368, %369 : vector<32x1xi32>
    %371 = arith.andi %366, %370 : vector<32x1xi1>
    %cst_142 = arith.constant 0.000000e+00 : f32
    %372 = vector.shape_cast %371 : vector<32x1xi1> to vector<32x1xi1>
    %373 = vector.broadcast %372 : vector<32x1xi1> to vector<32x8xi1>
    %374 = vector.broadcast %cst_142 : f32 to vector<32x8xf32>
    %375 = arith.select %373, %362, %374 : vector<32x8xi1>, vector<32x8xf32>
    %376 = tpu.concatenate %360, %361, %375 in 1 : vector<32x8xf32>, vector<32x8xf32>, vector<32x8xf32> -> vector<32x24xf32>
    %c7_143 = arith.constant 7 : index
    %c0_144 = arith.constant 0 : index
    %c0_145 = arith.constant 0 : index
    %377 = vector.load %arg2[%c7_143, %c0_144, %c0_145] : memref<9x96x32xf32, #tpu.memory_space<vmem>>, vector<1x24x8xf32>
    %378 = vector.shape_cast %377 : vector<1x24x8xf32> to vector<24x8xf32>
    %cst_146 = arith.constant dense<0.000000e+00> : vector<32x8xf32>
    %379 = tpu.matmul %376, %378, %cst_146 {dimension_numbers = #tpu.dot_dimension_numbers<[1], [0], [0], [1], [0, 0, 1, 1], [], []>} : vector<32x24xf32>, vector<24x8xf32>, vector<32x8xf32> -> vector<32x8xf32>
    %c14 = arith.constant 14 : index
    %c0_147 = arith.constant 0 : index
    %380 = vector.load %arg3[%c14, %c0_147] : memref<18x32xf32, #tpu.memory_space<vmem>>, vector<1x8xf32>
    %c15 = arith.constant 15 : index
    %c0_148 = arith.constant 0 : index
    %381 = vector.load %arg3[%c15, %c0_148] : memref<18x32xf32, #tpu.memory_space<vmem>>, vector<1x8xf32>
    %382 = vector.broadcast %380 : vector<1x8xf32> to vector<32x8xf32>
    %383 = arith.mulf %379, %382 : vector<32x8xf32>
    %384 = vector.broadcast %381 : vector<1x8xf32> to vector<32x8xf32>
    %385 = arith.addf %383, %384 : vector<32x8xf32>
    %cst_149 = arith.constant 0.000000e+00 : f32
    %386 = vector.broadcast %cst_149 : f32 to vector<32x8xf32>
    %387 = arith.maximumf %385, %386 : vector<32x8xf32>
    %cst_150 = arith.constant 0.000000e+00 : f32
    %388 = vector.broadcast %cst_150 : f32 to vector<1x8xf32>
    %389 = tpu.concatenate %388, %387, %388 in 0 : vector<1x8xf32>, vector<32x8xf32>, vector<1x8xf32> -> vector<34x8xf32>
    %390 = vector.extract_strided_slice %389 {offsets = [0, 0], sizes = [32, 8], strides = [1, 1]} : vector<34x8xf32> to vector<32x8xf32>
    %c-1_i32_151 = arith.constant -1 : i32
    %391 = vector.broadcast %c-1_i32_151 : i32 to vector<32x1xi32>
    %392 = arith.addi %301, %391 : vector<32x1xi32>
    %c0_i32_152 = arith.constant 0 : i32
    %393 = vector.broadcast %c0_i32_152 : i32 to vector<32x1xi32>
    %394 = arith.cmpi sge, %392, %393 : vector<32x1xi32>
    %c-1_i32_153 = arith.constant -1 : i32
    %395 = vector.broadcast %c-1_i32_153 : i32 to vector<32x1xi32>
    %396 = arith.addi %301, %395 : vector<32x1xi32>
    %c16_i32_154 = arith.constant 16 : i32
    %397 = vector.broadcast %c16_i32_154 : i32 to vector<32x1xi32>
    %398 = arith.cmpi slt, %396, %397 : vector<32x1xi32>
    %399 = arith.andi %394, %398 : vector<32x1xi1>
    %cst_155 = arith.constant 0.000000e+00 : f32
    %400 = vector.shape_cast %399 : vector<32x1xi1> to vector<32x1xi1>
    %401 = vector.broadcast %400 : vector<32x1xi1> to vector<32x8xi1>
    %402 = vector.broadcast %cst_155 : f32 to vector<32x8xf32>
    %403 = arith.select %401, %390, %402 : vector<32x8xi1>, vector<32x8xf32>
    %404 = vector.extract_strided_slice %389 {offsets = [1, 0], sizes = [32, 8], strides = [1, 1]} : vector<34x8xf32> to vector<32x8xf32>
    %405 = vector.extract_strided_slice %389 {offsets = [2, 0], sizes = [32, 8], strides = [1, 1]} : vector<34x8xf32> to vector<32x8xf32>
    %c1_i32_156 = arith.constant 1 : i32
    %406 = vector.broadcast %c1_i32_156 : i32 to vector<32x1xi32>
    %407 = arith.addi %301, %406 : vector<32x1xi32>
    %c0_i32_157 = arith.constant 0 : i32
    %408 = vector.broadcast %c0_i32_157 : i32 to vector<32x1xi32>
    %409 = arith.cmpi sge, %407, %408 : vector<32x1xi32>
    %c1_i32_158 = arith.constant 1 : i32
    %410 = vector.broadcast %c1_i32_158 : i32 to vector<32x1xi32>
    %411 = arith.addi %301, %410 : vector<32x1xi32>
    %c16_i32_159 = arith.constant 16 : i32
    %412 = vector.broadcast %c16_i32_159 : i32 to vector<32x1xi32>
    %413 = arith.cmpi slt, %411, %412 : vector<32x1xi32>
    %414 = arith.andi %409, %413 : vector<32x1xi1>
    %cst_160 = arith.constant 0.000000e+00 : f32
    %415 = vector.shape_cast %414 : vector<32x1xi1> to vector<32x1xi1>
    %416 = vector.broadcast %415 : vector<32x1xi1> to vector<32x8xi1>
    %417 = vector.broadcast %cst_160 : f32 to vector<32x8xf32>
    %418 = arith.select %416, %405, %417 : vector<32x8xi1>, vector<32x8xf32>
    %419 = tpu.concatenate %403, %404, %418 in 1 : vector<32x8xf32>, vector<32x8xf32>, vector<32x8xf32> -> vector<32x24xf32>
    %c8_161 = arith.constant 8 : index
    %c0_162 = arith.constant 0 : index
    %c0_163 = arith.constant 0 : index
    %420 = vector.load %arg2[%c8_161, %c0_162, %c0_163] : memref<9x96x32xf32, #tpu.memory_space<vmem>>, vector<1x24x8xf32>
    %421 = vector.shape_cast %420 : vector<1x24x8xf32> to vector<24x8xf32>
    %cst_164 = arith.constant dense<0.000000e+00> : vector<32x8xf32>
    %422 = tpu.matmul %419, %421, %cst_164 {dimension_numbers = #tpu.dot_dimension_numbers<[1], [0], [0], [1], [0, 0, 1, 1], [], []>} : vector<32x24xf32>, vector<24x8xf32>, vector<32x8xf32> -> vector<32x8xf32>
    %423 = arith.addf %422, %336 : vector<32x8xf32>
    %c16 = arith.constant 16 : index
    %c0_165 = arith.constant 0 : index
    %424 = vector.load %arg3[%c16, %c0_165] : memref<18x32xf32, #tpu.memory_space<vmem>>, vector<1x8xf32>
    %c17 = arith.constant 17 : index
    %c0_166 = arith.constant 0 : index
    %425 = vector.load %arg3[%c17, %c0_166] : memref<18x32xf32, #tpu.memory_space<vmem>>, vector<1x8xf32>
    %426 = vector.broadcast %424 : vector<1x8xf32> to vector<32x8xf32>
    %427 = arith.mulf %423, %426 : vector<32x8xf32>
    %428 = vector.broadcast %425 : vector<1x8xf32> to vector<32x8xf32>
    %429 = arith.addf %427, %428 : vector<32x8xf32>
    %cst_167 = arith.constant 0.000000e+00 : f32
    %430 = vector.broadcast %cst_167 : f32 to vector<32x8xf32>
    %431 = arith.maximumf %429, %430 : vector<32x8xf32>
    %432 = vector.extract_strided_slice %431 {offsets = [1, 0], sizes = [31, 8], strides = [1, 1]} : vector<32x8xf32> to vector<31x8xf32>
    %cst_168 = arith.constant 0.000000e+00 : f32
    %433 = vector.broadcast %cst_168 : f32 to vector<1x8xf32>
    %434 = tpu.concatenate %432, %433 in 0 : vector<31x8xf32>, vector<1x8xf32> -> vector<32x8xf32>
    %435 = arith.maximumf %431, %434 : vector<32x8xf32>
    %436 = tpu.iota {dimensions = array<i32: 0>} : vector<16x32xi32>
    %437 = tpu.iota {dimensions = array<i32: 1>} : vector<16x32xi32>
    %c2_i32_169 = arith.constant 2 : i32
    %438 = vector.broadcast %c2_i32_169 : i32 to vector<16x32xi32>
    %439 = arith.muli %438, %436 : vector<16x32xi32>
    %440 = arith.cmpi eq, %437, %439 : vector<16x32xi32>
    %441 = arith.extui %440 : vector<16x32xi1> to vector<16x32xi32>
    %442 = arith.sitofp %441 : vector<16x32xi32> to vector<16x32xf32>
    %cst_170 = arith.constant dense<0.000000e+00> : vector<16x8xf32>
    %443 = tpu.matmul %442, %435, %cst_170 {dimension_numbers = #tpu.dot_dimension_numbers<[1], [0], [0], [1], [0, 0, 1, 1], [], []>} : vector<16x32xf32>, vector<32x8xf32>, vector<16x8xf32> -> vector<16x8xf32>
    %444 = tpu.iota {dimensions = array<i32: 0>} : vector<2x16xi32>
    %445 = tpu.iota {dimensions = array<i32: 1>} : vector<2x16xi32>
    %c8_i32 = arith.constant 8 : i32
    %446 = vector.broadcast %c8_i32 : i32 to vector<2x16xi32>
    %447 = arith.muli %444, %446 : vector<2x16xi32>
    %448 = arith.cmpi sge, %445, %447 : vector<2x16xi32>
    %c1_i32_171 = arith.constant 1 : i32
    %449 = vector.broadcast %c1_i32_171 : i32 to vector<2x16xi32>
    %450 = arith.addi %444, %449 : vector<2x16xi32>
    %c8_i32_172 = arith.constant 8 : i32
    %451 = vector.broadcast %c8_i32_172 : i32 to vector<2x16xi32>
    %452 = arith.muli %450, %451 : vector<2x16xi32>
    %453 = arith.cmpi slt, %445, %452 : vector<2x16xi32>
    %454 = arith.andi %448, %453 : vector<2x16xi1>
    %cst_173 = arith.constant 1.250000e-01 : f32
    %cst_174 = arith.constant 0.000000e+00 : f32
    %455 = vector.broadcast %cst_173 : f32 to vector<2x16xf32>
    %456 = vector.broadcast %cst_174 : f32 to vector<2x16xf32>
    %457 = arith.select %454, %455, %456 : vector<2x16xi1>, vector<2x16xf32>
    %cst_175 = arith.constant dense<0.000000e+00> : vector<2x8xf32>
    %458 = tpu.matmul %457, %443, %cst_175 {dimension_numbers = #tpu.dot_dimension_numbers<[1], [0], [0], [1], [0, 0, 1, 1], [], []>} : vector<2x16xf32>, vector<16x8xf32>, vector<2x8xf32> -> vector<2x8xf32>
    %c0_176 = arith.constant 0 : index
    %c0_177 = arith.constant 0 : index
    %459 = vector.load %arg4[%c0_176, %c0_177] : memref<9x5xf32, #tpu.memory_space<vmem>>, vector<8x5xf32>
    %c8_178 = arith.constant 8 : index
    %c0_179 = arith.constant 0 : index
    %460 = vector.load %arg4[%c8_178, %c0_179] : memref<9x5xf32, #tpu.memory_space<vmem>>, vector<1x5xf32>
    %cst_180 = arith.constant dense<0.000000e+00> : vector<2x5xf32>
    %461 = tpu.matmul %458, %459, %cst_180 {dimension_numbers = #tpu.dot_dimension_numbers<[1], [0], [0], [1], [0, 0, 1, 1], [], []>} : vector<2x8xf32>, vector<8x5xf32>, vector<2x5xf32> -> vector<2x5xf32>
    %462 = vector.broadcast %460 : vector<1x5xf32> to vector<2x5xf32>
    %463 = arith.addf %461, %462 : vector<2x5xf32>
    %cst_181 = arith.constant dense<0xFF800000> : vector<2xf32>
    %464 = vector.multi_reduction <maximumf>, %463, %cst_181 [1] : vector<2x5xf32> to vector<2xf32>
    %465 = vector.shape_cast %464 : vector<2xf32> to vector<2x1xf32>
    %466 = vector.broadcast %465 : vector<2x1xf32> to vector<2x5xf32>
    %467 = arith.subf %463, %466 : vector<2x5xf32>
    %468 = math.exp %467 : vector<2x5xf32>
    %cst_182 = arith.constant dense<0.000000e+00> : vector<2xf32>
    %469 = vector.multi_reduction <add>, %468, %cst_182 [1] : vector<2x5xf32> to vector<2xf32>
    %470 = vector.shape_cast %469 : vector<2xf32> to vector<2x1xf32>
    %471 = vector.broadcast %470 : vector<2x1xf32> to vector<2x5xf32>
    %472 = arith.divf %468, %471 : vector<2x5xf32>
    %c0_183 = arith.constant 0 : index
    %c0_184 = arith.constant 0 : index
    %c0_185 = arith.constant 0 : index
    %473 = vector.load %arg5[%c0_183, %c0_184, %c0_185] : memref<1x2x5xf32, #tpu.memory_space<vmem>>, vector<1x2x5xf32>
    %474 = vector.shape_cast %473 : vector<1x2x5xf32> to vector<2x5xf32>
    %475 = vector.shape_cast %472 : vector<2x5xf32> to vector<1x2x5xf32>
    tpu.vector_store %arg5[%c0_183, %c0_184, %c0_185], %475 {strides = array<i32>} : memref<1x2x5xf32, #tpu.memory_space<vmem>>, vector<1x2x5xf32>,
    return
  }
  func.func @transform_0(%arg0: i32) -> (i32, i32, i32) {
    %c0_i32 = arith.constant 0 : i32
    %c0_i32_0 = arith.constant 0 : i32
    %c0_i32_1 = arith.constant 0 : i32
    return %arg0, %c0_i32, %c0_i32_0 : i32, i32, i32
  }
  func.func @transform_1(%arg0: i32) -> (i32, i32, i32) {
    %c0_i32 = arith.constant 0 : i32
    %c0_i32_0 = arith.constant 0 : i32
    %c0_i32_1 = arith.constant 0 : i32
    %c0_i32_2 = arith.constant 0 : i32
    return %c0_i32, %c0_i32_0, %c0_i32_1 : i32, i32, i32
  }
  func.func @transform_2(%arg0: i32) -> (i32, i32) {
    %c0_i32 = arith.constant 0 : i32
    %c0_i32_0 = arith.constant 0 : i32
    %c0_i32_1 = arith.constant 0 : i32
    return %c0_i32, %c0_i32_0 : i32, i32
  }
  func.func @transform_3(%arg0: i32) -> (i32, i32) {
    %c0_i32 = arith.constant 0 : i32
    %c0_i32_0 = arith.constant 0 : i32
    %c0_i32_1 = arith.constant 0 : i32
    return %c0_i32, %c0_i32_0 : i32, i32
  }
  func.func @transform_4(%arg0: i32) -> (i32, i32, i32) {
    %c0_i32 = arith.constant 0 : i32
    %c0_i32_0 = arith.constant 0 : i32
    %c0_i32_1 = arith.constant 0 : i32
    return %arg0, %c0_i32, %c0_i32_0 : i32, i32, i32
  }
}

</mosaic_0001>

<bundles_post_ra>
// kernel: cnn_forward.1
= control target key start
LH: loop header
LB: loop body
LE: loop exit
PB: predicated region body
PF: predicated region fallthrough
CT: control target
= control target key end

     0   :  { %vm55_vm0 = vcmask 523264   ;;  %v18_v3 = vlaneseq  ;;  %s7433_s0 = inlined_call_operand.vmem [shape: f32[2,12,64], index: 0, kind: input, shape index: {}]   ;;  %s7434_s1 = inlined_call_operand.vmem [shape: f32[9,96,32], index: 1, kind: input, shape index: {}]   ;;  %s7435_s2 = inlined_call_operand.vmem [shape: f32[18,32], index: 2, kind: input, shape index: {}]   ;;  %s7436_s3 = inlined_call_operand.vmem [shape: f32[9,5], index: 3, kind: input, shape index: {}]   ;;  %s7437_s4 = inlined_call_operand.hbm [shape: f32[1,2,5], index: 4, kind: output, shape index: {}]  }
   0x1   :  { %v53_v0 = vld [vmem:[%s7433_s0] sm:$0xff]  ;;  %v54_v1 = vld [vmem:[%s7433_s0 + $0x8] sm:$0xf]  ;;  %v4526_v2 = vld [vmem:[%s7433_s0 + $0x10] sm:$0xff] }
   0x2   :  { %v5319_v4 = vpack.c.bf16 %v54_v1, %v53_v0  ;;  %vm5320_vm1 = vmpackc.low %vm55_vm0, %vm55_vm0  ;;  %v4527_v5 = vld [vmem:[%s7433_s0 + $0x18] sm:$0xf]  ;;  %v5603_v7 = vshrl.u32 %v18_v3, 7  ;;  %v5605_v8 = vand.u32 127, %v18_v3 }
   0x3   :  { %v5325_v6 = vpack.c.bf16 %v4527_v5, %v4526_v2 }
   0x4   :  { %9 = vsyncpa [#allocation3], 0  ;;  %5321 = vmatprep.subr.msk.bf16.mxu0 %vm5320_vm1, %v5319_v4  ;;  %vm29_vm2 = vcmp.eq.s32.totalorder %v5603_v7, %v5605_v8  ;;  %v5610_v9 = vadd.s32 8, %v5603_v7  ;;  %v5613_v10 = vadd.s32 16, %v5603_v7  ;;  %v5553_v11 = vmov 0.0   ;;  %v732_v25 = vld [vmem:[%s7434_s1] sm:$0xff] }
   0x5   :  { %5327 = vmatprep.subr.msk.bf16.mxu1 %vm5320_vm1, %v5325_v6  ;;  %5324 = vmatpush3.bf16.xpose.msk.msra.mxu0 %vm5320_vm1, %v5319_v4  ;;  %v4508_v12 = vsel %vm29_vm2, 1.0, %v5553_v11  ;;  %v5617_v13 = vadd.s32 24, %v5603_v7  ;;  %v5626_v14 = vadd.s32 32, %v5603_v7  ;;  %v5633_v17 = vadd.s32 40, %v5603_v7  ;;  %v733_v26 = vld [vmem:[%s7434_s1 + $0x8] sm:$0xff]  ;;  %v734_v28 = vld [vmem:[%s7434_s1 + $0x10] sm:$0xff] }
   0x6   :  { %5330 = vmatpush3.bf16.xpose.msk.msra.mxu1 %vm5320_vm1, %v5325_v6  ;;  %4946 = vmatprep.mubr.msk.f32.mxu0 %vm55_vm0, %v4508_v12  ;;  %vm30_vm3 = vcmp.eq.s32.totalorder %v5610_v9, %v5605_v8  ;;  %vm31_vm4 = vcmp.eq.s32.totalorder %v5613_v10, %v5605_v8  ;;  %v5638_v18 = vadd.s32 48, %v5603_v7  ;;  %v5649_v21 = vadd.s32 56, %v5603_v7  ;;  %v735_v29 = vld [vmem:[%s7434_s1 + $0x18] sm:$0xff]  ;;  %v736_v35 = vld [vmem:[%s7434_s1 + $0x20] sm:$0xf]  ;;  %s5554_s6 = smov 12  }
   0x7   :  { %4962 = vmatprep.mubr.msk.f32.mxu1 %vm55_vm0, %v4508_v12  ;;  %v4509_v15 = vsel %vm30_vm3, 1.0, %v5553_v11  ;;  %v4510_v16 = vsel %vm31_vm4, 1.0, %v5553_v11  ;;  %vm32_vm5 = vcmp.eq.s32.totalorder %v5617_v13, %v5605_v8  ;;  %vm33_vm6 = vcmp.eq.s32.totalorder %v5626_v14, %v5605_v8  ;;  %s5555_s7 = smov 24   ;;  %s5556_s5 = smov 32  }
   0x8   :  { %v4511_v19 = vsel %vm32_vm5, 1.0, %v5553_v11  ;;  %v4512_v20 = vsel %vm33_vm6, 1.0, %v5553_v11  ;;  %vm34_vm7 = vcmp.eq.s32.totalorder %v5633_v17, %v5605_v8  ;;  %vm35_vm8 = vcmp.eq.s32.totalorder %v5638_v18, %v5605_v8  ;;  %s5557_s10 = smov 64   ;;  %s5560_s0 = smov 8  }
   0x9   :  { %v4513_v22 = vsel %vm34_vm7, 1.0, %v5553_v11  ;;  %v4514_v23 = vsel %vm35_vm8, 1.0, %v5553_v11  ;;  %vm36_vm9 = vcmp.eq.s32.totalorder %v5649_v21, %v5605_v8  ;;  %v5331_v27 = vpack.c.bf16 %v733_v26, %v732_v25 }
   0xa   :  { %v4515_v24 = vsel %vm36_vm9, 1.0, %v5553_v11  ;;  %v5335_v30 = vpack.c.bf16 %v735_v29, %v734_v28  ;;  %vm321_vm10 = vcmask 1040384   ;;  %vm786_vm11 = vcmask 1043456  }
   0xb   :  { %5332 = vmatprep.subr.bf16.mxu0 %v5331_v27  ;;  %vm552_vm12 = vcmask 1046528   ;;  %vm486_vm13 = vcmask 1045504   ;;  %vm698_vm1 = vcmask 97280   ;;  %vm715_vm2 = vcmask 195584  }
   0xc   :  { %4947 = vmatmul.mubr.msk.f32.vlgmr.msra.gmra.mrb[0].mxu0 %vm55_vm0, %v4509_v15  ;;  %vm737_vm3 = vcmask 293888   ;;  %vm1287_vm4 = vcmask 261120   ;;  %vm1333_vm5 = vcmask 785408  }
   0xd   :  { %4963 = vmatmul.mubr.msk.f32.vlgmr.msra.gmra.mrb[0].mxu1 %vm55_vm0, %v4509_v15  ;;  %4949 = vmatprep.mubr.msk.f32.mxu0 %vm55_vm0, %v4510_v16 }
   0xe   :  { %4965 = vmatprep.mubr.msk.f32.mxu1 %vm55_vm0, %v4510_v16  ;;  %5334 = vmatpush3.bf16.msra.mxu0 %v5331_v27 }
   0xf   :  { %5336 = vmatprep.subr.bf16.mxu0 %v5335_v30 }
  0x10   :  { %4950 = vmatmul.mubr.msk.f32.gmra.mrb[2].mxu0 %vm55_vm0, %v4511_v19 }
  0x11   :  { %4966 = vmatmul.mubr.msk.f32.gmra.mrb[2].mxu1 %vm55_vm0, %v4511_v19  ;;  %4952 = vmatprep.mubr.msk.f32.mxu0 %vm55_vm0, %v4512_v20 }
  0x12   :  { %4968 = vmatprep.mubr.msk.f32.mxu1 %vm55_vm0, %v4512_v20  ;;  %5338 = vmatpush3.bf16.msra.mxu0 %v5335_v30 }
  0x13   :  { %4982 = vmatprep.subr.msk.mxu0 %vm786_vm11, %v736_v35 }
  0x14   :  { %4953 = vmatmul.mubr.msk.f32.gmra.mrb[4].mxu0 %vm55_vm0, %v4513_v22 }
  0x15   :  { %4969 = vmatmul.mubr.msk.f32.gmra.mrb[4].mxu1 %vm55_vm0, %v4513_v22  ;;  %4955 = vmatprep.mubr.msk.f32.mxu0 %vm55_vm0, %v4514_v23 }
  0x16   :  { %4971 = vmatprep.mubr.msk.f32.mxu1 %vm55_vm0, %v4514_v23  ;;  %4983 = vmatpush3.msk.msra.mxu0 %vm786_vm11, %v736_v35 }
  0x18   :  { %4956 = vmatmul.mubr.msk.f32.gmra.mrb[6].mxu0 %vm55_vm0, %v4515_v24 }
  0x19   :  { %4972 = vmatmul.mubr.msk.f32.gmra.mrb[6].mxu1 %vm55_vm0, %v4515_v24 }
  0xdf   :  { %v4948_v31 = vpop.f32.mrb[0].mxu0 }
  0xe0   :  { %v323_v32 = vrot.slane %v4948_v31, 7  ;;  %v152_v33 = vpop.f32.mrb[1].mxu0  ;;  %v4964_v34 = vpop.f32.mrb[0].mxu1 }
  0xe1   :  { %v322_v36 = vrot.slane %v152_v33, 7  ;;  %v339_v37 = vrot.slane %v4964_v34, 7  ;;  %v266_v38 = vpop.f32.mrb[1].mxu1 }
  0xe2   :  { %v337_v39 = vrot.slane %v266_v38, 7 }
  0xe3   :  { %v5685_v40 = vsel %vm321_vm10, %v322_v36, %v323_v32  ;;  %v5688_v41 = vsel %vm321_vm10, 0.0, %v322_v36  ;;  %v4951_v42 = vpop.f32.mrb[2].mxu0 }
  0xe4   :  { %v487_v43 = vrot.slane %v5688_v41, 2  ;;  %v553_v44 = vrot.slane %v5688_v41, 1  ;;  %v5693_v45 = vsel %vm321_vm10, %v337_v39, %v339_v37  ;;  %v327_v46 = vrot.slane %v4951_v42, 7  ;;  %v4967_v47 = vpop.f32.mrb[2].mxu1  ;;  %v162_v48 = vpop.f32.mrb[3].mxu0 }
  0xe5   :  { %v343_v49 = vrot.slane %v4967_v47, 7  ;;  %v325_v50 = vrot.slane %v162_v48, 7  ;;  %v276_v51 = vpop.f32.mrb[3].mxu1  ;;  %v554_v52 = vrot.slane %v5685_v40, 1  ;;  %v488_v53 = vrot.slane %v5685_v40, 2 }
  0xe6   :  { %v341_v54 = vrot.slane %v276_v51, 7  ;;  %v570_v16 = vrot.slane %v5693_v45, 1  ;;  %v504_v31 = vrot.slane %v5693_v45, 2 }
  0xe7   :  { %v5699_v55 = vsel %vm321_vm10, %v323_v32, %v325_v50  ;;  %v5702_v56 = vsel %vm321_vm10, %v325_v50, %v327_v46  ;;  %v555_v57 = vsel %vm552_vm12, %v553_v44, %v554_v52  ;;  %v489_v58 = vsel %vm486_vm13, %v487_v43, %v488_v53  ;;  %v4954_v59 = vpop.f32.mrb[4].mxu0 }
  0xe8   :  { %v5707_v60 = vsel %vm321_vm10, %v339_v37, %v341_v54  ;;  %v5710_v61 = vsel %vm321_vm10, %v341_v54, %v343_v49  ;;  %v4970_v62 = vpop.f32.mrb[4].mxu1  ;;  %586 = vrot.lane.b32.xlu0 %v555_v57, %s5554_s6  ;;  %650 = vrot.lane.b32.xlu1 %v489_v58, %s5555_s7  ;;  %v331_v63 = vrot.slane %v4954_v59, 7  ;;  %v172_v0 = vpop.f32.mrb[5].mxu0  ;;  %v556_v1 = vrot.slane %v5699_v55, 1 }
  0xe9   :  { %v347_v2 = vrot.slane %v4970_v62, 7  ;;  %v329_v3 = vrot.slane %v172_v0, 7  ;;  %v286_v4 = vpop.f32.mrb[5].mxu1  ;;  %v490_v5 = vrot.slane %v5699_v55, 2  ;;  %v558_v15 = vrot.slane %v5702_v56, 1 }
  0xea   :  { %v345_v6 = vrot.slane %v286_v4, 7  ;;  %v557_v12 = vsel %vm552_vm12, %v554_v52, %v556_v1  ;;  %v572_v24 = vrot.slane %v5707_v60, 1  ;;  %v492_v36 = vrot.slane %v5702_v56, 2 }
  0xeb   :  { %v5720_v19 = vsel %vm321_vm10, %v327_v46, %v329_v3  ;;  %v5723_v20 = vsel %vm321_vm10, %v329_v3, %v331_v63  ;;  %v491_v22 = vsel %vm486_vm13, %v488_v53, %v490_v5  ;;  %v4957_v23 = vpop.f32.mrb[6].mxu0  ;;  %v559_v35 = vsel %vm552_vm12, %v556_v1, %v558_v15 }
  0xec   :  { %v5728_v25 = vsel %vm321_vm10, %v343_v49, %v345_v6  ;;  %v5731_v26 = vsel %vm321_vm10, %v345_v6, %v347_v2  ;;  %588 = vrot.lane.b32.xlu0 %v557_v12, %s5554_s6  ;;  %652 = vrot.lane.b32.xlu1 %v491_v22, %s5555_s7  ;;  %v335_v27 = vrot.slane %v4957_v23, 7  ;;  %v182_v28 = vpop.f32.mrb[7].mxu0  ;;  %v5735_v29 = vpop.f32.mrb[6].mxu1  ;;  %v573_v43 = vsel %vm552_vm12, %v570_v16, %v572_v24 }
  0xed   :  { %v333_v30 = vrot.slane %v182_v28, 7  ;;  %v351_v32 = vrot.slane %v5735_v29, 7  ;;  %v296_v33 = vpop.f32.mrb[7].mxu1  ;;  %v506_v44 = vrot.slane %v5707_v60, 2  ;;  %v493_v47 = vsel %vm486_vm13, %v490_v5, %v492_v36 }
  0xee   :  { %v5740_v34 = vsel %vm321_vm10, %v335_v27, %v337_v39  ;;  %v349_v37 = vrot.slane %v296_v33, 7  ;;  %v574_v49 = vrot.slane %v5710_v61, 1  ;;  %v560_v50 = vrot.slane %v5720_v19, 1 }
  0xef   :  { %v5745_v38 = vsel %vm321_vm10, %v331_v63, %v333_v30  ;;  %v5748_v42 = vsel %vm321_vm10, %v333_v30, %v335_v27  ;;  %v507_v48 = vsel %vm486_vm13, %v504_v31, %v506_v44  ;;  %v508_v53 = vrot.slane %v5710_v61, 2 }
  0xf0   :  { %590 = vrot.lane.b32.xlu0 %v559_v35, %s5554_s6  ;;  %604 = vrot.lane.b32.xlu1 %v573_v43, %s5554_s6  ;;  %v5755_v39 = vsel %vm321_vm10, %v347_v2, %v349_v37  ;;  %v5760_v46 = vsel %vm321_vm10, %v349_v37, %v351_v32  ;;  %v575_v51 = vsel %vm552_vm12, %v572_v24, %v574_v49  ;;  %v494_v54 = vrot.slane %v5720_v19, 2 }
  0xf1   :  { %v561_v52 = vsel %vm552_vm12, %v558_v15, %v560_v50  ;;  %v509_v57 = vsel %vm486_vm13, %v506_v44, %v508_v53  ;;  %v562_v59 = vrot.slane %v5723_v20, 1  ;;  %v576_v62 = vrot.slane %v5728_v25, 1 }
  0xf2   :  { %v495_v58 = vsel %vm486_vm13, %v492_v36, %v494_v54  ;;  %v496_v1 = vrot.slane %v5723_v20, 2  ;;  %v510_v2 = vrot.slane %v5728_v25, 2  ;;  %v568_v5 = vrot.slane %v5740_v34, 1 }
  0xf3   :  { %v563_v63 = vsel %vm552_vm12, %v560_v50, %v562_v59  ;;  %v577_v0 = vsel %vm552_vm12, %v574_v49, %v576_v62  ;;  %v564_v6 = vrot.slane %v5745_v38, 1  ;;  %v502_v22 = vrot.slane %v5740_v34, 2 }
  0xf4   :  { %654 = vrot.lane.b32.xlu0 %v493_v47, %s5555_s7  ;;  %668 = vrot.lane.b32.xlu1 %v507_v48, %s5555_s7  ;;  %v497_v3 = vsel %vm486_vm13, %v494_v54, %v496_v1  ;;  %v511_v4 = vsel %vm486_vm13, %v508_v53, %v510_v2  ;;  %v571_v12 = vsel %vm552_vm12, %v568_v5, %v570_v16  ;;  %v498_v23 = vrot.slane %v5745_v38, 2 }
  0xf5   :  { %v565_v15 = vsel %vm552_vm12, %v562_v59, %v564_v6  ;;  %v505_v24 = vsel %vm486_vm13, %v502_v22, %v504_v31  ;;  %v566_v28 = vrot.slane %v5748_v42, 1  ;;  %v500_v16 = vrot.slane %v5748_v42, 2 }
  0xf6   :  { %v499_v27 = vsel %vm486_vm13, %v496_v1, %v498_v23  ;;  %v5805_v30 = vadd.s32 1, %v5649_v21  ;;  %v578_v43 = vrot.slane %v5731_v26, 1  ;;  %v580_v44 = vrot.slane %v5755_v39, 1 }
  0xf7   :  { %v567_v33 = vsel %vm552_vm12, %v564_v6, %v566_v28  ;;  %v569_v35 = vsel %vm552_vm12, %v566_v28, %v568_v5  ;;  %v503_v31 = vsel %vm486_vm13, %v500_v16, %v502_v22  ;;  %v501_v36 = vsel %vm486_vm13, %v498_v23, %v500_v16 }
  0xf8   :  { %606 = vrot.lane.b32.xlu0 %v575_v51, %s5554_s6  ;;  %592 = vrot.lane.b32.xlu1 %v561_v52, %s5554_s6  ;;  %vm459_vm14 = vcmp.lt.s32.totalorder %v5805_v30, 64  ;;  %v371_v47 = vsel %vm321_vm10, %v351_v32, 0.0  ;;  %v579_v48 = vsel %vm552_vm12, %v576_v62, %v578_v43  ;;  %v581_v49 = vsel %vm552_vm12, %v578_v43, %v580_v44 }
  0xf9   :  { %v543_v37 = vsel %vm459_vm14, %v503_v31, 0.0  ;;  %v512_v50 = vrot.slane %v5731_v26, 2  ;;  %v514_v51 = vrot.slane %v5755_v39, 2  ;;  %v584_v52 = vrot.slane %v371_v47, 1 }
  0xfa   :  { %v518_v53 = vrot.slane %v371_v47, 2  ;;  %v582_v32 = vrot.slane %v5760_v46, 1  ;;  %v5846_v1 = vadd.s32 4294967295, %v5603_v7 }
  0xfb   :  { %v513_v54 = vsel %vm486_vm13, %v510_v2, %v512_v50  ;;  %v515_v29 = vsel %vm486_vm13, %v512_v50, %v514_v51 }
  0xfc   :  { %670 = vrot.lane.b32.xlu0 %v509_v57, %s5555_s7  ;;  %656 = vrot.lane.b32.xlu1 %v495_v58, %s5555_s7  ;;  %v516_v57 = vrot.slane %v5760_v46, 2  ;;  %v585_v58 = vsel %vm552_vm12, %v582_v32, %v584_v52  ;;  %v583_v62 = vsel %vm552_vm12, %v580_v44, %v582_v32  ;;  %vm380_vm15 = vcmp.ge.s32.totalorder %v5846_v1, 0 }
  0xfd   :  { %v420_v2 = vsel %vm380_vm15, %v5688_v41, 0.0 }
  0xfe   :  { %v519_v59 = vsel %vm486_vm13, %v516_v57, %v518_v53 }
 0x100   :  { %594 = vrot.lane.b32.xlu0 %v563_v63, %s5554_s6  ;;  %608 = vrot.lane.b32.xlu1 %v577_v0, %s5554_s6  ;;  %v551_v63 = vsel %vm459_vm14, %v519_v59, 0.0  ;;  %v517_v0 = vsel %vm486_vm13, %v514_v51, %v516_v57 }
 0x104   :  { %658 = vrot.lane.b32.xlu0 %v497_v3, %s5555_s7  ;;  %672 = vrot.lane.b32.xlu1 %v511_v4, %s5555_s7 }
 0x108   :  { %602 = vrot.lane.b32.xlu0 %v571_v12, %s5554_s6  ;;  %596 = vrot.lane.b32.xlu1 %v565_v15, %s5554_s6 }
 0x10c   :  { %666 = vrot.lane.b32.xlu0 %v505_v24, %s5555_s7  ;;  %660 = vrot.lane.b32.xlu1 %v499_v27, %s5555_s7 }
 0x110   :  { %598 = vrot.lane.b32.xlu0 %v567_v33, %s5554_s6  ;;  %600 = vrot.lane.b32.xlu1 %v569_v35, %s5554_s6 }
 0x114   :  { %662 = vrot.lane.b32.xlu0 %v501_v36, %s5555_s7  ;;  %664 = vrot.lane.b32.xlu1 %v543_v37, %s5555_s7 }
 0x118   :  { %610 = vrot.lane.b32.xlu0 %v579_v48, %s5554_s6  ;;  %612 = vrot.lane.b32.xlu1 %v581_v49, %s5554_s6 }
 0x11c   :  { %674 = vrot.lane.b32.xlu0 %v513_v54, %s5555_s7  ;;  %676 = vrot.lane.b32.xlu1 %v515_v29, %s5555_s7 }
 0x120   :  { %614 = vrot.lane.b32.xlu0 %v583_v62, %s5554_s6  ;;  %616 = vrot.lane.b32.xlu1 %v585_v58, %s5554_s6  ;;  %s5559_s6 = smov 16  }
 0x124   :  { %678 = vrot.lane.b32.xlu0 %v517_v0, %s5555_s7  ;;  %680 = vrot.lane.b32.xlu1 %v551_v63, %s5555_s7 }
 0x15a   :  { %v587_v3 = vpop.permute.xlu0 %586  ;;  %v651_v4 = vpop.permute.xlu1 %650 }
 0x15b   :  { %v699_v5 = vsel %vm698_vm1, %v420_v2, %v587_v3 }
 0x15c   :  { %v716_v6 = vsel %vm715_vm2, %v699_v5, %v651_v4 }
 0x15d   :  { %4984 = vmatprep.mubr.msk.f32.mxu0 %vm737_vm3, %v716_v6 }
 0x15e   :  { %v589_v12 = vpop.permute.xlu0 %588  ;;  %v653_v15 = vpop.permute.xlu1 %652 }
 0x15f   :  { %v700_v22 = vsel %vm698_vm1, %v5685_v40, %v589_v12 }
 0x160   :  { %v717_v23 = vsel %vm715_vm2, %v700_v22, %v653_v15 }
 0x161   :  { %4985 = vmatmul.mubr.msk.f32.vlgmr.msra.gmra.mrb[8].mxu0 %vm737_vm3, %v717_v23 }
 0x162   :  { %v591_v24 = vpop.permute.xlu0 %590  ;;  %v605_v41 = vpop.permute.xlu1 %604 }
 0x163   :  { %v701_v27 = vsel %vm698_vm1, %v5699_v55, %v591_v24  ;;  %v708_v4 = vsel %vm698_vm1, %v5693_v45, %v605_v41 }
 0x166   :  { %v655_v28 = vpop.permute.xlu0 %654  ;;  %v669_v16 = vpop.permute.xlu1 %668 }
 0x167   :  { %v718_v33 = vsel %vm715_vm2, %v701_v27, %v655_v28 }
 0x168   :  { %4987 = vmatprep.mubr.msk.f32.mxu0 %vm737_vm3, %v718_v33 }
 0x16a   :  { %v607_v35 = vpop.permute.xlu0 %606  ;;  %v593_v31 = vpop.permute.xlu1 %592 }
 0x16b   :  { %v702_v40 = vsel %vm698_vm1, %v5702_v56, %v593_v31  ;;  %v709_v5 = vsel %vm698_vm1, %v5707_v60, %v607_v35 }
 0x16e   :  { %v671_v36 = vpop.permute.xlu0 %670  ;;  %v657_v37 = vpop.permute.xlu1 %656 }
 0x16f   :  { %v719_v43 = vsel %vm715_vm2, %v702_v40, %v657_v37  ;;  %v726_v6 = vsel %vm715_vm2, %v709_v5, %v671_v36  ;;  %v5933_v37 = vld [vmem:[%s7435_s2 + $0x1] ss:$0 sm:$0xff] }
 0x170   :  { %4988 = vmatmul.mubr.msk.f32.gmra.mrb[10].mxu0 %vm737_vm3, %v719_v43 }
 0x172   :  { %v595_v44 = vpop.permute.xlu0 %594  ;;  %v609_v47 = vpop.permute.xlu1 %608 }
 0x173   :  { %v703_v55 = vsel %vm698_vm1, %v5720_v19, %v595_v44  ;;  %v710_v22 = vsel %vm698_vm1, %v5710_v61, %v609_v47  ;;  %v4559_v47 = vld [vmem:[%s7434_s1 + $0x70] sm:$0xff] }
 0x176   :  { %v659_v48 = vpop.permute.xlu0 %658  ;;  %v673_v49 = vpop.permute.xlu1 %672 }
 0x177   :  { %v720_v50 = vsel %vm715_vm2, %v703_v55, %v659_v48  ;;  %v727_v23 = vsel %vm715_vm2, %v710_v22, %v673_v49  ;;  %v4560_v55 = vld [vmem:[%s7434_s1 + $0x78] sm:$0xff] }
 0x178   :  { %4990 = vmatprep.mubr.msk.f32.mxu0 %vm737_vm3, %v720_v50  ;;  %v5343_v49 = vpack.c.bf16 %v4560_v55, %v4559_v47  ;;  %v4568_v22 = vld [vmem:[%s7434_s1 + $0xb8] sm:$0xff] }
 0x17a   :  { %v603_v51 = vpop.permute.xlu0 %602  ;;  %v597_v52 = vpop.permute.xlu1 %596 }
 0x17b   :  { %v704_v56 = vsel %vm698_vm1, %v5723_v20, %v597_v52  ;;  %v428_v20 = vsel %vm380_vm15, %v5740_v34, 0.0  ;;  %v725_v34 = vsel %vm715_vm2, %v708_v4, %v669_v16 }
 0x17c   :  { %v707_v2 = vsel %vm698_vm1, %v428_v20, %v603_v51 }
 0x17e   :  { %v667_v53 = vpop.permute.xlu0 %666  ;;  %v661_v54 = vpop.permute.xlu1 %660 }
 0x17f   :  { %v721_v29 = vsel %vm715_vm2, %v704_v56, %v661_v54  ;;  %v724_v3 = vsel %vm715_vm2, %v707_v2, %v667_v53  ;;  %v4561_v56 = vld [vmem:[%s7434_s1 + $0x80] sm:$0xff]  ;;  %v4562_v53 = vld [vmem:[%s7434_s1 + $0x88] sm:$0xff] }
 0x180   :  { %4991 = vmatmul.mubr.msk.f32.gmra.mrb[12].mxu0 %vm737_vm3, %v721_v29  ;;  %v5347_v29 = vpack.c.bf16 %v4562_v53, %v4561_v56 }
 0x182   :  { %v599_v32 = vpop.permute.xlu0 %598  ;;  %v601_v57 = vpop.permute.xlu1 %600 }
 0x183   :  { %v705_v19 = vsel %vm698_vm1, %v5745_v38, %v599_v32  ;;  %v706_v58 = vsel %vm698_vm1, %v5748_v42, %v601_v57  ;;  %v4563_v32 = vld [vmem:[%s7434_s1 + $0x90] sm:$0xff]  ;;  %v4564_v57 = vld [vmem:[%s7434_s1 + $0x98] sm:$0xff] }
 0x186   :  { %v663_v59 = vpop.permute.xlu0 %662  ;;  %v665_v62 = vpop.permute.xlu1 %664 }
 0x187   :  { %v722_v63 = vsel %vm715_vm2, %v705_v19, %v663_v59  ;;  %v723_v0 = vsel %vm715_vm2, %v706_v58, %v665_v62  ;;  %v5351_v58 = vpack.c.bf16 %v4564_v57, %v4563_v32  ;;  %v4565_v59 = vld [vmem:[%s7434_s1 + $0xa0] sm:$0xff]  ;;  %v4566_v62 = vld [vmem:[%s7434_s1 + $0xa8] sm:$0xff] }
 0x188   :  { %4993 = vmatprep.mubr.msk.f32.mxu0 %vm737_vm3, %v722_v63  ;;  %v5355_v2 = vpack.c.bf16 %v4566_v62, %v4565_v59 }
 0x189   :  { %4994 = vmatmul.mubr.msk.f32.gmra.mrb[14].mxu0 %vm737_vm3, %v723_v0 }
 0x18a   :  { %v611_v38 = vpop.permute.xlu0 %610  ;;  %4996 = vmatprep.mubr.msk.f32.mxu0 %vm737_vm3, %v724_v3  ;;  %v613_v42 = vpop.permute.xlu1 %612 }
 0x18b   :  { %v711_v45 = vsel %vm698_vm1, %v5728_v25, %v611_v38  ;;  %v712_v27 = vsel %vm698_vm1, %v5731_v26, %v613_v42  ;;  %v4557_v26 = vld [vmem:[%s7434_s1 + $0x60] sm:$0xff] }
 0x18d   :  { %4997 = vmatmul.mubr.msk.f32.gmra.mrb[16].mxu0 %vm737_vm3, %v725_v34 }
 0x18e   :  { %v675_v12 = vpop.permute.xlu0 %674  ;;  %4999 = vmatprep.mubr.msk.f32.mxu0 %vm737_vm3, %v726_v6  ;;  %v677_v15 = vpop.permute.xlu1 %676 }
 0x18f   :  { %v728_v24 = vsel %vm715_vm2, %v711_v45, %v675_v12  ;;  %v729_v28 = vsel %vm715_vm2, %v712_v27, %v677_v15  ;;  %v4567_v15 = vld [vmem:[%s7434_s1 + $0xb0] sm:$0xff] }
 0x191   :  { %5000 = vmatmul.mubr.msk.f32.gmra.mrb[18].mxu0 %vm737_vm3, %v727_v23 }
 0x192   :  { %v615_v60 = vpop.permute.xlu0 %614  ;;  %5002 = vmatprep.mubr.msk.f32.mxu0 %vm737_vm3, %v728_v24  ;;  %v617_v41 = vpop.permute.xlu1 %616  ;;  %v5359_v24 = vpack.c.bf16 %v4568_v22, %v4567_v15 }
 0x193   :  { %v713_v61 = vsel %vm698_vm1, %v5755_v39, %v615_v60  ;;  %v714_v25 = vsel %vm698_vm1, %v5760_v46, %v617_v41  ;;  %v4558_v39 = vld [vmem:[%s7434_s1 + $0x68] sm:$0xff]  ;;  %v5926_v46 = vld [vmem:[%s7435_s2] ss:$0 sm:$0xff] }
 0x194   :  { %v5339_v40 = vpack.c.bf16 %v4558_v39, %v4557_v26 }
 0x195   :  { %5003 = vmatmul.mubr.msk.f32.gmra.mrb[20].mxu0 %vm737_vm3, %v729_v28 }
 0x196   :  { %v679_v16 = vpop.permute.xlu0 %678  ;;  %v681_v33 = vpop.permute.xlu1 %680  ;;  %5340 = vmatprep.subr.bf16.mxu1 %v5339_v40 }
 0x197   :  { %v730_v35 = vsel %vm715_vm2, %v713_v61, %v679_v16  ;;  %v731_v31 = vsel %vm715_vm2, %v714_v25, %v681_v33  ;;  %5342 = vmatpush3.bf16.msra.mxu1 %v5339_v40 }
 0x198   :  { %5005 = vmatprep.mubr.msk.f32.mxu0 %vm737_vm3, %v730_v35  ;;  %5344 = vmatprep.subr.bf16.mxu1 %v5343_v49 }
 0x199   :  { %5006 = vmatmul.mubr.msk.f32.gmra.mrb[22].mxu0 %vm737_vm3, %v731_v31 }
 0x19b   :  { %5346 = vmatpush3.bf16.msra.mxu1 %v5343_v49 }
 0x19c   :  { %5348 = vmatprep.subr.bf16.mxu1 %v5347_v29 }
 0x19f   :  { %5350 = vmatpush3.bf16.msra.mxu1 %v5347_v29 }
 0x1a0   :  { %5352 = vmatprep.subr.bf16.mxu1 %v5351_v58 }
 0x1a3   :  { %5354 = vmatpush3.bf16.msra.mxu1 %v5351_v58 }
 0x1a4   :  { %5356 = vmatprep.subr.bf16.mxu1 %v5355_v2 }
 0x1a7   :  { %5358 = vmatpush3.bf16.msra.mxu1 %v5355_v2 }
 0x1a8   :  { %5360 = vmatprep.subr.bf16.mxu1 %v5359_v24 }
 0x1ab   :  { %5362 = vmatpush3.bf16.msra.mxu1 %v5359_v24 }
 0x234   :  { %v5928_v36 = vpop.f32.mrb[8].mxu0 }
 0x235   :  { %v942_v43 = vmul.f32 %v5928_v36, %v5926_v46  ;;  %v5937_v44 = vpop.f32.mrb[9].mxu0 }
 0x236   :  { %v941_v48 = vmul.f32 %v5926_v46, %v5937_v44 }
 0x237   :  { %v962_v50 = vadd.f32 %v5933_v37, %v942_v43 }
 0x238   :  { %v961_v51 = vadd.f32 %v5933_v37, %v941_v48 }
 0x239   :  { %v978_v52 = vmax.f32 %v962_v50, 0.0 }
 0x23a   :  { %v977_v54 = vmax.f32 %v961_v51, 0.0 }
 0x23b   :  { %v1010_v19 = vrot.slane %v978_v52, 7 }
 0x23c   :  { %v1009_v20 = vrot.slane %v977_v54, 7 }
 0x23e   :  { %v5968_v63 = vsel %vm321_vm10, 0.0, %v1009_v20  ;;  %v5971_v0 = vsel %vm321_vm10, %v1009_v20, %v1010_v19 }
 0x23f   :  { %v1142_v3 = vrot.slane %v5968_v63, 1  ;;  %v1143_v38 = vrot.slane %v5971_v0, 1  ;;  %v1077_v4 = vrot.slane %v5968_v63, 2  ;;  %v1078_v34 = vrot.slane %v5971_v0, 2 }
 0x241   :  { %v1144_v42 = vsel %vm552_vm12, %v1142_v3, %v1143_v38  ;;  %v1079_v45 = vsel %vm486_vm13, %v1077_v4, %v1078_v34 }
 0x242   :  { %1175 = vrot.lane.b32.xlu0 %v1144_v42, %s5556_s5 }
 0x243   :  { %v5979_v5 = vpop.f32.mrb[10].mxu0 }
 0x244   :  { %v944_v6 = vmul.f32 %v5979_v5, %v5926_v46  ;;  %v5983_v12 = vpop.f32.mrb[11].mxu0 }
 0x245   :  { %v943_v23 = vmul.f32 %v5926_v46, %v5983_v12 }
 0x246   :  { %v964_v60 = vadd.f32 %v5933_v37, %v944_v6  ;;  %1239 = vrot.lane.b32.xlu0 %v1079_v45, %s5557_s10 }
 0x247   :  { %v963_v41 = vadd.f32 %v5933_v37, %v943_v23 }
 0x248   :  { %v980_v27 = vmax.f32 %v964_v60, 0.0 }
 0x249   :  { %v979_v28 = vmax.f32 %v963_v41, 0.0 }
 0x24a   :  { %v1014_v61 = vrot.slane %v980_v27, 7 }
 0x24b   :  { %v1012_v25 = vrot.slane %v979_v28, 7 }
 0x24d   :  { %v5998_v16 = vsel %vm321_vm10, %v1010_v19, %v1012_v25  ;;  %v6001_v33 = vsel %vm321_vm10, %v1012_v25, %v1014_v61 }
 0x24e   :  { %v1145_v35 = vrot.slane %v5998_v16, 1  ;;  %v1147_v31 = vrot.slane %v6001_v33, 1  ;;  %v1080_v40 = vrot.slane %v5998_v16, 2  ;;  %v1082_v43 = vrot.slane %v6001_v33, 2 }
 0x250   :  { %v1148_v26 = vsel %vm552_vm12, %v1145_v35, %v1147_v31  ;;  %v1146_v39 = vsel %vm552_vm12, %v1143_v38, %v1145_v35  ;;  %v1083_v49 = vsel %vm486_vm13, %v1080_v40, %v1082_v43  ;;  %v1081_v50 = vsel %vm486_vm13, %v1078_v34, %v1080_v40 }
 0x251   :  { %1179 = vrot.lane.b32.xlu0 %v1148_v26, %s5556_s5  ;;  %1177 = vrot.lane.b32.xlu1 %v1146_v39, %s5556_s5 }
 0x253   :  { %v6011_v47 = vpop.f32.mrb[12].mxu0 }
 0x254   :  { %v946_v55 = vmul.f32 %v6011_v47, %v5926_v46  ;;  %v6015_v48 = vpop.f32.mrb[13].mxu0 }
 0x255   :  { %v945_v51 = vmul.f32 %v5926_v46, %v6015_v48  ;;  %1243 = vrot.lane.b32.xlu0 %v1083_v49, %s5557_s10  ;;  %1241 = vrot.lane.b32.xlu1 %v1081_v50, %s5557_s10 }
 0x256   :  { %v966_v52 = vadd.f32 %v5933_v37, %v946_v55 }
 0x257   :  { %v965_v56 = vadd.f32 %v5933_v37, %v945_v51 }
 0x258   :  { %v982_v53 = vmax.f32 %v966_v52, 0.0 }
 0x259   :  { %v981_v54 = vmax.f32 %v965_v56, 0.0 }
 0x25a   :  { %v1018_v29 = vrot.slane %v982_v53, 7 }
 0x25b   :  { %v1016_v32 = vrot.slane %v981_v54, 7 }
 0x25c   :  { %v6025_v57 = vpop.f32.mrb[14].mxu0 }
 0x25d   :  { %v948_v19 = vmul.f32 %v6025_v57, %v5926_v46  ;;  %v6029_v58 = vpop.f32.mrb[15].mxu0  ;;  %v6032_v59 = vsel %vm321_vm10, %v1014_v61, %v1016_v32  ;;  %v6035_v62 = vsel %vm321_vm10, %v1016_v32, %v1018_v29 }
 0x25e   :  { %v947_v20 = vmul.f32 %v5926_v46, %v6029_v58  ;;  %v1149_v2 = vrot.slane %v6032_v59, 1  ;;  %v1151_v3 = vrot.slane %v6035_v62, 1  ;;  %v1084_v42 = vrot.slane %v6032_v59, 2 }
 0x25f   :  { %v968_v38 = vadd.f32 %v5933_v37, %v948_v19  ;;  %v1086_v22 = vrot.slane %v6035_v62, 2 }
 0x260   :  { %v967_v4 = vadd.f32 %v5933_v37, %v947_v20  ;;  %v6044_v34 = vpop.f32.mrb[16].mxu0  ;;  %v1152_v6 = vsel %vm552_vm12, %v1149_v2, %v1151_v3  ;;  %v1150_v15 = vsel %vm552_vm12, %v1147_v31, %v1149_v2  ;;  %v1085_v26 = vsel %vm486_vm13, %v1082_v43, %v1084_v42 }
 0x261   :  { %v984_v23 = vmax.f32 %v968_v38, 0.0  ;;  %v950_v45 = vmul.f32 %v6044_v34, %v5926_v46  ;;  %1183 = vrot.lane.b32.xlu0 %v1152_v6, %s5556_s5  ;;  %1181 = vrot.lane.b32.xlu1 %v1150_v15, %s5556_s5  ;;  %v6053_v24 = vpop.f32.mrb[17].mxu0  ;;  %v1087_v31 = vsel %vm486_vm13, %v1084_v42, %v1086_v22 }
 0x262   :  { %v983_v60 = vmax.f32 %v967_v4, 0.0  ;;  %v949_v41 = vmul.f32 %v5926_v46, %v6053_v24 }
 0x263   :  { %v1022_v27 = vrot.slane %v984_v23, 7  ;;  %v970_v28 = vadd.f32 %v5933_v37, %v950_v45 }
 0x264   :  { %v1020_v61 = vrot.slane %v983_v60, 7  ;;  %v969_v25 = vadd.f32 %v5933_v37, %v949_v41  ;;  %v6059_v35 = vpop.f32.mrb[18].mxu0 }
 0x265   :  { %v986_v39 = vmax.f32 %v970_v28, 0.0  ;;  %v952_v40 = vmul.f32 %v6059_v35, %v5926_v46  ;;  %1247 = vrot.lane.b32.xlu0 %v1087_v31, %s5557_s10  ;;  %1245 = vrot.lane.b32.xlu1 %v1085_v26, %s5557_s10  ;;  %v6067_v55 = vpop.f32.mrb[19].mxu0 }
 0x266   :  { %v985_v49 = vmax.f32 %v969_v25, 0.0  ;;  %v951_v50 = vmul.f32 %v5926_v46, %v6067_v55  ;;  %v6072_v51 = vsel %vm321_vm10, %v1018_v29, %v1020_v61  ;;  %v6075_v52 = vsel %vm321_vm10, %v1020_v61, %v1022_v27 }
 0x267   :  { %v1026_v43 = vrot.slane %v986_v39, 7  ;;  %v972_v56 = vadd.f32 %v5933_v37, %v952_v40  ;;  %v1153_v53 = vrot.slane %v6072_v51, 1  ;;  %v1155_v54 = vrot.slane %v6075_v52, 1 }
 0x268   :  { %v1024_v32 = vrot.slane %v985_v49, 7  ;;  %v971_v19 = vadd.f32 %v5933_v37, %v951_v50  ;;  %v6081_v20 = vpop.f32.mrb[20].mxu0  ;;  %v1088_v2 = vrot.slane %v6072_v51, 2  ;;  %v1090_v29 = vrot.slane %v6075_v52, 2 }
 0x269   :  { %v988_v38 = vmax.f32 %v972_v56, 0.0  ;;  %v954_v42 = vmul.f32 %v6081_v20, %v5926_v46  ;;  %v6087_v4 = vpop.f32.mrb[21].mxu0  ;;  %v1156_v6 = vsel %vm552_vm12, %v1153_v53, %v1155_v54  ;;  %v1154_v15 = vsel %vm552_vm12, %v1151_v3, %v1153_v53 }
 0x26a   :  { %v987_v23 = vmax.f32 %v971_v19, 0.0  ;;  %v953_v45 = vmul.f32 %v5926_v46, %v6087_v4  ;;  %1187 = vrot.lane.b32.xlu0 %v1156_v6, %s5556_s5  ;;  %1185 = vrot.lane.b32.xlu1 %v1154_v15, %s5556_s5  ;;  %v1091_v41 = vsel %vm486_vm13, %v1088_v2, %v1090_v29  ;;  %v6098_v28 = vsel %vm321_vm10, %v1022_v27, %v1024_v32 }
 0x26b   :  { %v974_v60 = vadd.f32 %v5933_v37, %v954_v42  ;;  %v6101_v61 = vsel %vm321_vm10, %v1024_v32, %v1026_v43  ;;  %v1030_v25 = vrot.slane %v988_v38, 7  ;;  %v1089_v39 = vsel %vm486_vm13, %v1086_v22, %v1088_v2 }
 0x26c   :  { %v1028_v3 = vrot.slane %v987_v23, 7  ;;  %v973_v31 = vadd.f32 %v5933_v37, %v953_v45  ;;  %v6104_v26 = vpop.f32.mrb[22].mxu0  ;;  %v1157_v27 = vrot.slane %v6098_v28, 1  ;;  %v1159_v56 = vrot.slane %v6101_v61, 1 }
 0x26d   :  { %v990_v40 = vmax.f32 %v974_v60, 0.0  ;;  %v956_v49 = vmul.f32 %v6104_v26, %v5926_v46  ;;  %v6109_v50 = vpop.f32.mrb[23].mxu0  ;;  %v1092_v22 = vrot.slane %v6098_v28, 2  ;;  %v1094_v6 = vrot.slane %v6101_v61, 2 }
 0x26e   :  { %v989_v53 = vmax.f32 %v973_v31, 0.0  ;;  %v955_v32 = vmul.f32 %v5926_v46, %v6109_v50  ;;  %1251 = vrot.lane.b32.xlu0 %v1091_v41, %s5557_s10  ;;  %1249 = vrot.lane.b32.xlu1 %v1089_v39, %s5557_s10  ;;  %v6122_v15 = vsel %vm321_vm10, %v1026_v43, %v1028_v3  ;;  %v1160_v46 = vsel %vm552_vm12, %v1157_v27, %v1159_v56 }
 0x26f   :  { %v1034_v19 = vrot.slane %v990_v40, 7  ;;  %v976_v2 = vadd.f32 %v5933_v37, %v956_v49  ;;  %v1158_v45 = vsel %vm552_vm12, %v1155_v54, %v1157_v27  ;;  %v6127_v60 = vsel %vm321_vm10, %v1028_v3, %v1030_v25 }
 0x270   :  { %v1032_v38 = vrot.slane %v989_v53, 7  ;;  %v975_v42 = vadd.f32 %v5933_v37, %v955_v32  ;;  %v1093_v37 = vsel %vm486_vm13, %v1090_v29, %v1092_v22  ;;  %v1095_v54 = vsel %vm486_vm13, %v1092_v22, %v1094_v6 }
 0x271   :  { %v992_v23 = vmax.f32 %v976_v2, 0.0  ;;  %v1133_v3 = vsel %vm459_vm14, %v1093_v37, 0.0  ;;  %v1161_v49 = vrot.slane %v6122_v15, 1  ;;  %v1163_v27 = vrot.slane %v6127_v60, 1 }
 0x272   :  { %v991_v41 = vmax.f32 %v975_v42, 0.0  ;;  %1191 = vrot.lane.b32.xlu0 %v1160_v46, %s5556_s5  ;;  %1189 = vrot.lane.b32.xlu1 %v1158_v45, %s5556_s5  ;;  %v6133_v31 = vsel %vm321_vm10, %v1030_v25, %v1032_v38  ;;  %v6136_v39 = vsel %vm321_vm10, %v1032_v38, %v1034_v19  ;;  %v1096_v22 = vrot.slane %v6122_v15, 2 }
 0x273   :  { %v1038_v43 = vrot.slane %v992_v23, 7  ;;  %v1164_v53 = vsel %vm552_vm12, %v1161_v49, %v1163_v27  ;;  %v1162_v32 = vsel %vm552_vm12, %v1159_v56, %v1161_v49  ;;  %v1098_v2 = vrot.slane %v6127_v60, 2 }
 0x274   :  { %v1036_v40 = vrot.slane %v991_v41, 7  ;;  %v1165_v42 = vrot.slane %v6133_v31, 1  ;;  %v1167_v23 = vrot.slane %v6136_v39, 1  ;;  %v1100_v45 = vrot.slane %v6133_v31, 2 }
 0x275   :  { %v1099_v38 = vsel %vm486_vm13, %v1096_v22, %v1098_v2  ;;  %v1102_v41 = vrot.slane %v6136_v39, 2 }
 0x276   :  { %1255 = vrot.lane.b32.xlu0 %v1095_v54, %s5557_s10  ;;  %1253 = vrot.lane.b32.xlu1 %v1133_v3, %s5557_s10  ;;  %v6146_v29 = vsel %vm321_vm10, %v1034_v19, %v1036_v40  ;;  %v6149_v25 = vsel %vm321_vm10, %v1036_v40, %v1038_v43  ;;  %v1097_v19 = vsel %vm486_vm13, %v1094_v6, %v1096_v22 }
 0x277   :  { %v1168_v56 = vsel %vm552_vm12, %v1165_v42, %v1167_v23  ;;  %v1166_v46 = vsel %vm552_vm12, %v1163_v27, %v1165_v42  ;;  %v1103_v6 = vsel %vm486_vm13, %v1100_v45, %v1102_v41  ;;  %v1101_v37 = vsel %vm486_vm13, %v1098_v2, %v1100_v45 }
 0x278   :  { %v1169_v40 = vrot.slane %v6146_v29, 1  ;;  %v1171_v54 = vrot.slane %v6149_v25, 1  ;;  %v1104_v27 = vrot.slane %v6146_v29, 2 }
 0x27a   :  { %1195 = vrot.lane.b32.xlu0 %v1164_v53, %s5556_s5  ;;  %1193 = vrot.lane.b32.xlu1 %v1162_v32, %s5556_s5  ;;  %v1172_v3 = vsel %vm552_vm12, %v1169_v40, %v1171_v54  ;;  %v1170_v49 = vsel %vm552_vm12, %v1167_v23, %v1169_v40  ;;  %v1106_v53 = vrot.slane %v6149_v25, 2  ;;  %v1058_v32 = vsel %vm321_vm10, %v1038_v43, 0.0 }
 0x27b   :  { %v1105_v2 = vsel %vm486_vm13, %v1102_v41, %v1104_v27 }
 0x27c   :  { %v1107_v22 = vsel %vm486_vm13, %v1104_v27, %v1106_v53 }
 0x27e   :  { %1259 = vrot.lane.b32.xlu0 %v1099_v38, %s5557_s10  ;;  %1257 = vrot.lane.b32.xlu1 %v1097_v19, %s5557_s10  ;;  %v1173_v38 = vrot.slane %v1058_v32, 1  ;;  %v1108_v19 = vrot.slane %v1058_v32, 2 }
 0x280   :  { %v1174_v42 = vsel %vm552_vm12, %v1171_v54, %v1173_v38  ;;  %v1109_v43 = vsel %vm486_vm13, %v1106_v53, %v1108_v19 }
 0x281   :  { %v1141_v23 = vsel %vm459_vm14, %v1109_v43, 0.0 }
 0x282   :  { %1199 = vrot.lane.b32.xlu0 %v1168_v56, %s5556_s5  ;;  %1197 = vrot.lane.b32.xlu1 %v1166_v46, %s5556_s5  ;;  %v1059_v46 = vsel %vm380_vm15, %v5968_v63, 0.0 }
 0x286   :  { %1263 = vrot.lane.b32.xlu0 %v1103_v6, %s5557_s10  ;;  %1261 = vrot.lane.b32.xlu1 %v1101_v37, %s5557_s10 }
 0x28a   :  { %1203 = vrot.lane.b32.xlu0 %v1172_v3, %s5556_s5  ;;  %1201 = vrot.lane.b32.xlu1 %v1170_v49, %s5556_s5 }
 0x28e   :  { %1267 = vrot.lane.b32.xlu0 %v1107_v22, %s5557_s10  ;;  %1265 = vrot.lane.b32.xlu1 %v1105_v2, %s5557_s10 }
 0x292   :  { %1205 = vrot.lane.b32.xlu1 %v1174_v42, %s5556_s5 }
 0x296   :  { %1269 = vrot.lane.b32.xlu1 %v1141_v23, %s5557_s10 }
 0x2b4   :  { %v1176_v56 = vpop.permute.xlu0 %1175 }
 0x2b5   :  { %v1288_v45 = vsel %vm1287_vm4, %v1059_v46, %v1176_v56 }
 0x2b8   :  { %v1240_v41 = vpop.permute.xlu0 %1239 }
 0x2b9   :  { %v1304_v6 = vsel %vm55_vm0, %v1288_v45, %v1240_v41 }
 0x2ba   :  { %5032 = vmatprep.mubr.msk.f32.mxu1 %vm1333_vm5, %v1304_v6 }
 0x2c3   :  { %v1180_v37 = vpop.permute.xlu0 %1179  ;;  %v1178_v40 = vpop.permute.xlu1 %1177 }
 0x2c4   :  { %v1290_v54 = vsel %vm1287_vm4, %v5998_v16, %v1180_v37  ;;  %v1289_v3 = vsel %vm1287_vm4, %v5971_v0, %v1178_v40  ;;  %v1067_v40 = vsel %vm380_vm15, %v6098_v28, 0.0 }
 0x2c7   :  { %v1244_v49 = vpop.permute.xlu0 %1243  ;;  %v1242_v27 = vpop.permute.xlu1 %1241 }
 0x2c8   :  { %v1306_v63 = vsel %vm55_vm0, %v1290_v54, %v1244_v49  ;;  %v1305_v53 = vsel %vm55_vm0, %v1289_v3, %v1242_v27 }
 0x2c9   :  { %5033 = vmatmul.mubr.msk.f32.vlgmr.msra.gmra.mrb[8].mxu1 %vm1333_vm5, %v1305_v53 }
 0x2ca   :  { %5035 = vmatprep.mubr.msk.f32.mxu1 %vm1333_vm5, %v1306_v63 }
 0x2d3   :  { %v1184_v32 = vpop.permute.xlu0 %1183  ;;  %v1182_v22 = vpop.permute.xlu1 %1181 }
 0x2d4   :  { %v1292_v2 = vsel %vm1287_vm4, %v6032_v59, %v1184_v32  ;;  %v1291_v16 = vsel %vm1287_vm4, %v6001_v33, %v1182_v22 }
 0x2d7   :  { %v1248_v38 = vpop.permute.xlu0 %1247  ;;  %v1246_v0 = vpop.permute.xlu1 %1245 }
 0x2d8   :  { %v1308_v19 = vsel %vm55_vm0, %v1292_v2, %v1248_v38  ;;  %v1307_v42 = vsel %vm55_vm0, %v1291_v16, %v1246_v0 }
 0x2d9   :  { %5036 = vmatmul.mubr.msk.f32.gmra.mrb[10].mxu1 %vm1333_vm5, %v1307_v42 }
 0x2da   :  { %5038 = vmatprep.mubr.msk.f32.mxu1 %vm1333_vm5, %v1308_v19 }
 0x2dc   :  { %v1188_v43 = vpop.permute.xlu0 %1187  ;;  %v1186_v23 = vpop.permute.xlu1 %1185 }
 0x2dd   :  { %v1294_v56 = vsel %vm1287_vm4, %v6072_v51, %v1188_v43  ;;  %v1293_v59 = vsel %vm1287_vm4, %v6035_v62, %v1186_v23 }
 0x2e0   :  { %v1252_v46 = vpop.permute.xlu0 %1251  ;;  %v1250_v33 = vpop.permute.xlu1 %1249 }
 0x2e1   :  { %v1310_v45 = vsel %vm55_vm0, %v1294_v56, %v1252_v46  ;;  %v1309_v41 = vsel %vm55_vm0, %v1293_v59, %v1250_v33 }
 0x2e2   :  { %5039 = vmatmul.mubr.msk.f32.gmra.mrb[12].mxu1 %vm1333_vm5, %v1309_v41 }
 0x2e3   :  { %5041 = vmatprep.mubr.msk.f32.mxu1 %vm1333_vm5, %v1310_v45 }
 0x2e4   :  { %v1192_v6 = vpop.permute.xlu0 %1191  ;;  %v1190_v37 = vpop.permute.xlu1 %1189 }
 0x2e5   :  { %v1296_v51 = vsel %vm1287_vm4, %v1067_v40, %v1192_v6  ;;  %v1295_v62 = vsel %vm1287_vm4, %v6075_v52, %v1190_v37 }
 0x2e8   :  { %v1256_v54 = vpop.permute.xlu0 %1255  ;;  %v1254_v3 = vpop.permute.xlu1 %1253 }
 0x2e9   :  { %v1312_v49 = vsel %vm55_vm0, %v1296_v51, %v1256_v54  ;;  %v1311_v27 = vsel %vm55_vm0, %v1295_v62, %v1254_v3  ;;  %v4588_v51 = vld [vmem:[%s7434_s1 + $0xc8] sm:$0xff]  ;;  %v6274_v3 = vld [vmem:[%s7435_s2 + $0x3] ss:$0 sm:$0xff] }
 0x2ea   :  { %5042 = vmatmul.mubr.msk.f32.gmra.mrb[14].mxu1 %vm1333_vm5, %v1311_v27 }
 0x2eb   :  { %5044 = vmatprep.mubr.msk.f32.mxu1 %vm1333_vm5, %v1312_v49 }
 0x2ec   :  { %v1196_v63 = vpop.permute.xlu0 %1195  ;;  %v1194_v53 = vpop.permute.xlu1 %1193 }
 0x2ed   :  { %v1298_v28 = vsel %vm1287_vm4, %v6122_v15, %v1196_v63  ;;  %v1297_v32 = vsel %vm1287_vm4, %v6101_v61, %v1194_v53  ;;  %v4589_v63 = vld [vmem:[%s7434_s1 + $0xd0] sm:$0xff]  ;;  %v4590_v53 = vld [vmem:[%s7434_s1 + $0xd8] sm:$0xff] }
 0x2f0   :  { %v1260_v22 = vpop.permute.xlu0 %1259  ;;  %v1258_v52 = vpop.permute.xlu1 %1257 }
 0x2f1   :  { %v1314_v2 = vsel %vm55_vm0, %v1298_v28, %v1260_v22  ;;  %v1313_v16 = vsel %vm55_vm0, %v1297_v32, %v1258_v52  ;;  %v5367_v32 = vpack.c.bf16 %v4590_v53, %v4589_v63 }
 0x2f2   :  { %5045 = vmatmul.mubr.msk.f32.gmra.mrb[16].mxu1 %vm1333_vm5, %v1313_v16  ;;  %v4591_v16 = vld [vmem:[%s7434_s1 + $0xe0] sm:$0xff] }
 0x2f3   :  { %5047 = vmatprep.mubr.msk.f32.mxu1 %vm1333_vm5, %v1314_v2 }
 0x2f4   :  { %v1200_v38 = vpop.permute.xlu0 %1199  ;;  %v1198_v0 = vpop.permute.xlu1 %1197 }
 0x2f5   :  { %v1300_v19 = vsel %vm1287_vm4, %v6133_v31, %v1200_v38  ;;  %v1299_v15 = vsel %vm1287_vm4, %v6127_v60, %v1198_v0  ;;  %v4592_v38 = vld [vmem:[%s7434_s1 + $0xe8] sm:$0xff] }
 0x2f8   :  { %v1264_v42 = vpop.permute.xlu0 %1263  ;;  %v1262_v61 = vpop.permute.xlu1 %1261 }
 0x2f9   :  { %v1316_v43 = vsel %vm55_vm0, %v1300_v19, %v1264_v42  ;;  %v1315_v23 = vsel %vm55_vm0, %v1299_v15, %v1262_v61  ;;  %v5371_v19 = vpack.c.bf16 %v4592_v38, %v4591_v16  ;;  %v4593_v15 = vld [vmem:[%s7434_s1 + $0xf0] sm:$0xff]  ;;  %v4594_v42 = vld [vmem:[%s7434_s1 + $0xf8] sm:$0xff] }
 0x2fa   :  { %5048 = vmatmul.mubr.msk.f32.gmra.mrb[18].mxu1 %vm1333_vm5, %v1315_v23  ;;  %v4595_v23 = vld [vmem:[%s7434_s1 + $0x100] sm:$0xff] }
 0x2fb   :  { %5050 = vmatprep.mubr.msk.f32.mxu1 %vm1333_vm5, %v1316_v43  ;;  %v5375_v43 = vpack.c.bf16 %v4594_v42, %v4593_v15 }
 0x2fc   :  { %v1204_v56 = vpop.permute.xlu0 %1203  ;;  %v1202_v59 = vpop.permute.xlu1 %1201 }
 0x2fd   :  { %v1302_v46 = vsel %vm1287_vm4, %v6146_v29, %v1204_v56  ;;  %v1301_v31 = vsel %vm1287_vm4, %v6136_v39, %v1202_v59  ;;  %v4587_v39 = vld [vmem:[%s7434_s1 + $0xc0] sm:$0xff]  ;;  %v4596_v56 = vld [vmem:[%s7434_s1 + $0x108] sm:$0xff] }
 0x2fe   :  { %v5363_v62 = vpack.c.bf16 %v4588_v51, %v4587_v39 }
 0x300   :  { %v1268_v33 = vpop.permute.xlu0 %1267  ;;  %v1266_v60 = vpop.permute.xlu1 %1265  ;;  %5364 = vmatprep.subr.bf16.mxu0 %v5363_v62 }
 0x301   :  { %v1318_v45 = vsel %vm55_vm0, %v1302_v46, %v1268_v33  ;;  %v1317_v41 = vsel %vm55_vm0, %v1301_v31, %v1266_v60  ;;  %5366 = vmatpush3.bf16.msra.mxu0 %v5363_v62  ;;  %v5379_v33 = vpack.c.bf16 %v4596_v56, %v4595_v23  ;;  %v4597_v62 = vld [vmem:[%s7434_s1 + $0x110] sm:$0xff] }
 0x302   :  { %5051 = vmatmul.mubr.msk.f32.gmra.mrb[20].mxu1 %vm1333_vm5, %v1317_v41  ;;  %5368 = vmatprep.subr.bf16.mxu0 %v5367_v32 }
 0x303   :  { %5053 = vmatprep.mubr.msk.f32.mxu1 %vm1333_vm5, %v1318_v45 }
 0x304   :  { %v1206_v6 = vpop.permute.xlu1 %1205 }
 0x305   :  { %v1303_v37 = vsel %vm1287_vm4, %v6149_v25, %v1206_v6  ;;  %v6269_v25 = vld [vmem:[%s7435_s2 + $0x2] ss:$0 sm:$0xff]  ;;  %5370 = vmatpush3.bf16.msra.mxu0 %v5367_v32 }
 0x306   :  { %5372 = vmatprep.subr.bf16.mxu0 %v5371_v19 }
 0x308   :  { %v1270_v40 = vpop.permute.xlu1 %1269 }
 0x309   :  { %v1319_v29 = vsel %vm55_vm0, %v1303_v37, %v1270_v40  ;;  %5374 = vmatpush3.bf16.msra.mxu0 %v5371_v19 }
 0x30a   :  { %5054 = vmatmul.mubr.msk.f32.gmra.mrb[22].mxu1 %vm1333_vm5, %v1319_v29  ;;  %5376 = vmatprep.subr.bf16.mxu0 %v5375_v43 }
 0x30d   :  { %5378 = vmatpush3.bf16.msra.mxu0 %v5375_v43 }
 0x30e   :  { %5380 = vmatprep.subr.bf16.mxu0 %v5379_v33 }
 0x311   :  { %5382 = vmatpush3.bf16.msra.mxu0 %v5379_v33 }
 0x39c   :  { %v5034_v54 = vpop.f32.mrb[8].mxu1 }
 0x39d   :  { %v1534_v49 = vmul.f32 %v5034_v54, %v6269_v25  ;;  %v1448_v27 = vpop.f32.mrb[9].mxu1  ;;  %v4598_v54 = vld [vmem:[%s7434_s1 + $0x118] sm:$0xff] }
 0x39e   :  { %v1533_v28 = vmul.f32 %v6269_v25, %v1448_v27  ;;  %v5383_v27 = vpack.c.bf16 %v4598_v54, %v4597_v62 }
 0x39f   :  { %v1554_v22 = vadd.f32 %v6274_v3, %v1534_v49 }
 0x3a0   :  { %v1553_v52 = vadd.f32 %v6274_v3, %v1533_v28  ;;  %5384 = vmatprep.subr.bf16.mxu0 %v5383_v27 }
 0x3a1   :  { %v1570_v2 = vmax.f32 %v1554_v22, 0.0  ;;  %5386 = vmatpush3.bf16.msra.mxu0 %v5383_v27 }
 0x3a2   :  { %v1569_v0 = vmax.f32 %v1553_v52, 0.0 }
 0x3a3   :  { %v1602_v61 = vrot.slane %v1570_v2, 7 }
 0x3a4   :  { %v1601_v59 = vrot.slane %v1569_v0, 7 }
 0x3a6   :  { %v6305_v46 = vsel %vm321_vm10, %v1601_v59, %v1602_v61  ;;  %v6308_v31 = vsel %vm321_vm10, 0.0, %v1601_v59 }
 0x3a7   :  { %v1734_v60 = vrot.slane %v6308_v31, 1  ;;  %v1735_v45 = vrot.slane %v6305_v46, 1  ;;  %v1669_v6 = vrot.slane %v6308_v31, 2  ;;  %v1670_v37 = vrot.slane %v6305_v46, 2 }
 0x3a9   :  { %v1736_v41 = vsel %vm552_vm12, %v1734_v60, %v1735_v45  ;;  %v1671_v51 = vsel %vm486_vm13, %v1669_v6, %v1670_v37 }
 0x3aa   :  { %1767 = vrot.lane.b32.xlu0 %v1736_v41, %s5556_s5 }
 0x3ac   :  { %v5037_v40 = vpop.f32.mrb[10].mxu1 }
 0x3ad   :  { %v1536_v29 = vmul.f32 %v5037_v40, %v6269_v25  ;;  %v1458_v39 = vpop.f32.mrb[11].mxu1 }
 0x3ae   :  { %v1535_v49 = vmul.f32 %v6269_v25, %v1458_v39  ;;  %1831 = vrot.lane.b32.xlu0 %v1671_v51, %s5557_s10 }
 0x3af   :  { %v1556_v63 = vadd.f32 %v6274_v3, %v1536_v29 }
 0x3b0   :  { %v1555_v53 = vadd.f32 %v6274_v3, %v1535_v49 }
 0x3b1   :  { %v1572_v28 = vmax.f32 %v1556_v63, 0.0 }
 0x3b2   :  { %v1571_v32 = vmax.f32 %v1555_v53, 0.0 }
 0x3b3   :  { %v1606_v22 = vrot.slane %v1572_v28, 7 }
 0x3b4   :  { %v1604_v52 = vrot.slane %v1571_v32, 7 }
 0x3b5   :  { %v5040_v2 = vpop.f32.mrb[12].mxu1 }
 0x3b6   :  { %v6329_v16 = vsel %vm321_vm10, %v1602_v61, %v1604_v52  ;;  %v6332_v38 = vsel %vm321_vm10, %v1604_v52, %v1606_v22  ;;  %v1538_v0 = vmul.f32 %v5040_v2, %v6269_v25  ;;  %v1468_v19 = vpop.f32.mrb[13].mxu1 }
 0x3b7   :  { %v1537_v15 = vmul.f32 %v6269_v25, %v1468_v19  ;;  %v1737_v42 = vrot.slane %v6329_v16, 1  ;;  %v1739_v43 = vrot.slane %v6332_v38, 1  ;;  %v1672_v56 = vrot.slane %v6329_v16, 2 }
 0x3b8   :  { %v1558_v23 = vadd.f32 %v6274_v3, %v1538_v0  ;;  %v1674_v60 = vrot.slane %v6332_v38, 2 }
 0x3b9   :  { %v1557_v59 = vadd.f32 %v6274_v3, %v1537_v15  ;;  %v1740_v61 = vsel %vm552_vm12, %v1737_v42, %v1739_v43  ;;  %v1738_v33 = vsel %vm552_vm12, %v1735_v45, %v1737_v42  ;;  %v1673_v62 = vsel %vm486_vm13, %v1670_v37, %v1672_v56 }
 0x3ba   :  { %v1574_v41 = vmax.f32 %v1558_v23, 0.0  ;;  %1771 = vrot.lane.b32.xlu0 %v1740_v61, %s5556_s5  ;;  %1769 = vrot.lane.b32.xlu1 %v1738_v33, %s5556_s5  ;;  %v1675_v51 = vsel %vm486_vm13, %v1672_v56, %v1674_v60 }
 0x3bb   :  { %v1573_v6 = vmax.f32 %v1557_v59, 0.0 }
 0x3bc   :  { %v1610_v40 = vrot.slane %v1574_v41, 7 }
 0x3bd   :  { %v1608_v29 = vrot.slane %v1573_v6, 7  ;;  %v5043_v39 = vpop.f32.mrb[14].mxu1 }
 0x3be   :  { %v1540_v54 = vmul.f32 %v5043_v39, %v6269_v25  ;;  %1835 = vrot.lane.b32.xlu0 %v1675_v51, %s5557_s10  ;;  %1833 = vrot.lane.b32.xlu1 %v1673_v62, %s5557_s10  ;;  %v1478_v45 = vpop.f32.mrb[15].mxu1 }
 0x3bf   :  { %v6352_v49 = vsel %vm321_vm10, %v1606_v22, %v1608_v29  ;;  %v6355_v27 = vsel %vm321_vm10, %v1608_v29, %v1610_v40  ;;  %v1539_v63 = vmul.f32 %v6269_v25, %v1478_v45 }
 0x3c0   :  { %v1560_v53 = vadd.f32 %v6274_v3, %v1540_v54  ;;  %v1741_v28 = vrot.slane %v6352_v49, 1  ;;  %v1743_v37 = vrot.slane %v6355_v27, 1  ;;  %v1676_v52 = vrot.slane %v6352_v49, 2 }
 0x3c1   :  { %v1559_v32 = vadd.f32 %v6274_v3, %v1539_v63  ;;  %v1678_v19 = vrot.slane %v6355_v27, 2 }
 0x3c2   :  { %v1576_v2 = vmax.f32 %v1560_v53, 0.0  ;;  %v1744_v0 = vsel %vm552_vm12, %v1741_v28, %v1743_v37  ;;  %v1742_v22 = vsel %vm552_vm12, %v1739_v43, %v1741_v28  ;;  %v1677_v41 = vsel %vm486_vm13, %v1674_v60, %v1676_v52 }
 0x3c3   :  { %v1575_v15 = vmax.f32 %v1559_v32, 0.0  ;;  %1775 = vrot.lane.b32.xlu0 %v1744_v0, %s5556_s5  ;;  %1773 = vrot.lane.b32.xlu1 %v1742_v22, %s5556_s5  ;;  %v1679_v33 = vsel %vm486_vm13, %v1676_v52, %v1678_v19 }
 0x3c4   :  { %v1614_v42 = vrot.slane %v1576_v2, 7 }
 0x3c5   :  { %v1612_v23 = vrot.slane %v1575_v15, 7  ;;  %v5046_v56 = vpop.f32.mrb[16].mxu1 }
 0x3c6   :  { %v1542_v59 = vmul.f32 %v5046_v56, %v6269_v25  ;;  %v1488_v61 = vpop.f32.mrb[17].mxu1 }
 0x3c7   :  { %v6372_v6 = vsel %vm321_vm10, %v1610_v40, %v1612_v23  ;;  %v6375_v43 = vsel %vm321_vm10, %v1612_v23, %v1614_v42  ;;  %v1541_v29 = vmul.f32 %v6269_v25, %v1488_v61  ;;  %1839 = vrot.lane.b32.xlu0 %v1679_v33, %s5557_s10  ;;  %1837 = vrot.lane.b32.xlu1 %v1677_v41, %s5557_s10 }
 0x3c8   :  { %v1562_v39 = vadd.f32 %v6274_v3, %v1542_v59  ;;  %v1745_v51 = vrot.slane %v6372_v6, 1  ;;  %v1747_v62 = vrot.slane %v6375_v43, 1  ;;  %v1680_v40 = vrot.slane %v6372_v6, 2 }
 0x3c9   :  { %v1561_v60 = vadd.f32 %v6274_v3, %v1541_v29  ;;  %v1682_v53 = vrot.slane %v6375_v43, 2 }
 0x3ca   :  { %v1578_v54 = vmax.f32 %v1562_v39, 0.0  ;;  %v1748_v45 = vsel %vm552_vm12, %v1745_v51, %v1747_v62  ;;  %v1746_v63 = vsel %vm552_vm12, %v1743_v37, %v1745_v51  ;;  %v1681_v23 = vsel %vm486_vm13, %v1678_v19, %v1680_v40 }
 0x3cb   :  { %v1577_v28 = vmax.f32 %v1561_v60, 0.0  ;;  %1779 = vrot.lane.b32.xlu0 %v1748_v45, %s5556_s5  ;;  %1777 = vrot.lane.b32.xlu1 %v1746_v63, %s5556_s5  ;;  %v1683_v15 = vsel %vm486_vm13, %v1680_v40, %v1682_v53 }
 0x3cc   :  { %v1618_v32 = vrot.slane %v1578_v54, 7 }
 0x3cd   :  { %v1616_v52 = vrot.slane %v1577_v28, 7  ;;  %v5049_v2 = vpop.f32.mrb[18].mxu1 }
 0x3ce   :  { %v1544_v0 = vmul.f32 %v5049_v2, %v6269_v25  ;;  %v1498_v22 = vpop.f32.mrb[19].mxu1 }
 0x3cf   :  { %v6394_v56 = vsel %vm321_vm10, %v1614_v42, %v1616_v52  ;;  %v6397_v37 = vsel %vm321_vm10, %v1616_v52, %v1618_v32  ;;  %v1543_v59 = vmul.f32 %v6269_v25, %v1498_v22  ;;  %1843 = vrot.lane.b32.xlu0 %v1683_v15, %s5557_s10  ;;  %1841 = vrot.lane.b32.xlu1 %v1681_v23, %s5557_s10 }
 0x3d0   :  { %v1564_v61 = vadd.f32 %v6274_v3, %v1544_v0  ;;  %v1749_v33 = vrot.slane %v6394_v56, 1  ;;  %v1751_v41 = vrot.slane %v6397_v37, 1  ;;  %v1684_v19 = vrot.slane %v6394_v56, 2 }
 0x3d1   :  { %v1563_v42 = vadd.f32 %v6274_v3, %v1543_v59  ;;  %v1686_v60 = vrot.slane %v6397_v37, 2 }
 0x3d2   :  { %v1580_v29 = vmax.f32 %v1564_v61, 0.0  ;;  %v1752_v39 = vsel %vm552_vm12, %v1749_v33, %v1751_v41  ;;  %v1750_v51 = vsel %vm552_vm12, %v1747_v62, %v1749_v33  ;;  %v1685_v54 = vsel %vm486_vm13, %v1682_v53, %v1684_v19 }
 0x3d3   :  { %v1579_v40 = vmax.f32 %v1563_v42, 0.0  ;;  %1783 = vrot.lane.b32.xlu0 %v1752_v39, %s5556_s5  ;;  %1781 = vrot.lane.b32.xlu1 %v1750_v51, %s5556_s5  ;;  %v1687_v0 = vsel %vm486_vm13, %v1684_v19, %v1686_v60  ;;  %v1725_v62 = vsel %vm459_vm14, %v1685_v54, 0.0 }
 0x3d4   :  { %v1622_v45 = vrot.slane %v1580_v29, 7 }
 0x3d5   :  { %v1620_v63 = vrot.slane %v1579_v40, 7  ;;  %v5052_v28 = vpop.f32.mrb[20].mxu1 }
 0x3d6   :  { %v1546_v52 = vmul.f32 %v5052_v28, %v6269_v25  ;;  %v1508_v2 = vpop.f32.mrb[21].mxu1 }
 0x3d7   :  { %v6418_v22 = vsel %vm321_vm10, %v1618_v32, %v1620_v63  ;;  %v6421_v15 = vsel %vm321_vm10, %v1620_v63, %v1622_v45  ;;  %v1545_v23 = vmul.f32 %v6269_v25, %v1508_v2  ;;  %1847 = vrot.lane.b32.xlu0 %v1687_v0, %s5557_s10  ;;  %1845 = vrot.lane.b32.xlu1 %v1725_v62, %s5557_s10 }
 0x3d8   :  { %v1566_v53 = vadd.f32 %v6274_v3, %v1546_v52  ;;  %v1753_v59 = vrot.slane %v6418_v22, 1  ;;  %v1755_v61 = vrot.slane %v6421_v15, 1  ;;  %v1688_v32 = vrot.slane %v6418_v22, 2 }
 0x3d9   :  { %v1565_v33 = vadd.f32 %v6274_v3, %v1545_v23  ;;  %v1690_v39 = vrot.slane %v6421_v15, 2 }
 0x3da   :  { %v1582_v19 = vmax.f32 %v1566_v53, 0.0  ;;  %v1756_v42 = vsel %vm552_vm12, %v1753_v59, %v1755_v61  ;;  %v1754_v29 = vsel %vm552_vm12, %v1751_v41, %v1753_v59  ;;  %v1689_v0 = vsel %vm486_vm13, %v1686_v60, %v1688_v32 }
 0x3db   :  { %v1581_v51 = vmax.f32 %v1565_v33, 0.0  ;;  %1787 = vrot.lane.b32.xlu0 %v1756_v42, %s5556_s5  ;;  %1785 = vrot.lane.b32.xlu1 %v1754_v29, %s5556_s5  ;;  %v1691_v2 = vsel %vm486_vm13, %v1688_v32, %v1690_v39 }
 0x3dc   :  { %v1626_v40 = vrot.slane %v1582_v19, 7 }
 0x3dd   :  { %v1624_v54 = vrot.slane %v1581_v51, 7  ;;  %v5055_v63 = vpop.f32.mrb[22].mxu1 }
 0x3de   :  { %v1548_v28 = vmul.f32 %v5055_v63, %v6269_v25  ;;  %v1518_v52 = vpop.f32.mrb[23].mxu1 }
 0x3df   :  { %v6440_v62 = vsel %vm321_vm10, %v1622_v45, %v1624_v54  ;;  %v6443_v41 = vsel %vm321_vm10, %v1624_v54, %v1626_v40  ;;  %v1547_v23 = vmul.f32 %v6269_v25, %v1518_v52  ;;  %1851 = vrot.lane.b32.xlu0 %v1691_v2, %s5557_s10  ;;  %1849 = vrot.lane.b32.xlu1 %v1689_v0, %s5557_s10 }
 0x3e0   :  { %v1568_v53 = vadd.f32 %v6274_v3, %v1548_v28  ;;  %v1757_v59 = vrot.slane %v6440_v62, 1  ;;  %v1759_v33 = vrot.slane %v6443_v41, 1  ;;  %v1692_v45 = vrot.slane %v6440_v62, 2 }
 0x3e1   :  { %v1567_v60 = vadd.f32 %v6274_v3, %v1547_v23  ;;  %v1694_v25 = vrot.slane %v6443_v41, 2 }
 0x3e2   :  { %v1584_v32 = vmax.f32 %v1568_v53, 0.0  ;;  %v1760_v19 = vsel %vm552_vm12, %v1757_v59, %v1759_v33  ;;  %v1758_v42 = vsel %vm552_vm12, %v1755_v61, %v1757_v59  ;;  %v1693_v3 = vsel %vm486_vm13, %v1690_v39, %v1692_v45 }
 0x3e3   :  { %v1583_v29 = vmax.f32 %v1567_v60, 0.0  ;;  %1791 = vrot.lane.b32.xlu0 %v1760_v19, %s5556_s5  ;;  %1789 = vrot.lane.b32.xlu1 %v1758_v42, %s5556_s5  ;;  %v1695_v63 = vsel %vm486_vm13, %v1692_v45, %v1694_v25 }
 0x3e4   :  { %v1630_v51 = vrot.slane %v1584_v32, 7 }
 0x3e5   :  { %v1628_v54 = vrot.slane %v1583_v29, 7 }
 0x3e6   :  { %v1650_v53 = vsel %vm321_vm10, %v1630_v51, 0.0 }
 0x3e7   :  { %v6461_v28 = vsel %vm321_vm10, %v1626_v40, %v1628_v54  ;;  %v6464_v52 = vsel %vm321_vm10, %v1628_v54, %v1630_v51  ;;  %1855 = vrot.lane.b32.xlu0 %v1695_v63, %s5557_s10  ;;  %1853 = vrot.lane.b32.xlu1 %v1693_v3, %s5557_s10  ;;  %v1765_v45 = vrot.slane %v1650_v53, 1  ;;  %v1700_v32 = vrot.slane %v1650_v53, 2 }
 0x3e8   :  { %v1761_v61 = vrot.slane %v6461_v28, 1  ;;  %v1763_v2 = vrot.slane %v6464_v52, 1  ;;  %v1696_v39 = vrot.slane %v6461_v28, 2  ;;  %v1698_v40 = vrot.slane %v6464_v52, 2 }
 0x3ea   :  { %v1764_v0 = vsel %vm552_vm12, %v1761_v61, %v1763_v2  ;;  %v1762_v23 = vsel %vm552_vm12, %v1759_v33, %v1761_v61  ;;  %v1699_v59 = vsel %vm486_vm13, %v1696_v39, %v1698_v40  ;;  %v1697_v60 = vsel %vm486_vm13, %v1694_v25, %v1696_v39 }
 0x3eb   :  { %1795 = vrot.lane.b32.xlu0 %v1764_v0, %s5556_s5  ;;  %1793 = vrot.lane.b32.xlu1 %v1762_v23, %s5556_s5  ;;  %v1766_v33 = vsel %vm552_vm12, %v1763_v2, %v1765_v45  ;;  %v1701_v19 = vsel %vm486_vm13, %v1698_v40, %v1700_v32  ;;  %v1651_v25 = vsel %vm380_vm15, %v6308_v31, 0.0 }
 0x3ec   :  { %v1733_v42 = vsel %vm459_vm14, %v1701_v19, 0.0 }
 0x3ef   :  { %1859 = vrot.lane.b32.xlu0 %v1699_v59, %s5557_s10  ;;  %1857 = vrot.lane.b32.xlu1 %v1697_v60, %s5557_s10 }
 0x3f3   :  { %1797 = vrot.lane.b32.xlu1 %v1766_v33, %s5556_s5 }
 0x3f7   :  { %1861 = vrot.lane.b32.xlu1 %v1733_v42, %s5557_s10 }
 0x41c   :  { %v1768_v29 = vpop.permute.xlu0 %1767 }
 0x41d   :  { %v1879_v51 = vsel %vm1287_vm4, %v1651_v25, %v1768_v29 }
 0x420   :  { %v1832_v54 = vpop.permute.xlu0 %1831 }
 0x421   :  { %v1895_v63 = vsel %vm55_vm0, %v1879_v51, %v1832_v54 }
 0x422   :  { %5080 = vmatprep.mubr.msk.f32.mxu0 %vm1333_vm5, %v1895_v63 }
 0x42c   :  { %v1772_v3 = vpop.permute.xlu0 %1771  ;;  %v1770_v61 = vpop.permute.xlu1 %1769 }
 0x42d   :  { %v1881_v30 = vsel %vm1287_vm4, %v6329_v16, %v1772_v3  ;;  %v1880_v2 = vsel %vm1287_vm4, %v6305_v46, %v1770_v61  ;;  %v1659_v3 = vsel %vm380_vm15, %v6394_v56, 0.0 }
 0x430   :  { %v1836_v0 = vpop.permute.xlu0 %1835  ;;  %v1834_v23 = vpop.permute.xlu1 %1833 }
 0x431   :  { %v1897_v39 = vsel %vm55_vm0, %v1881_v30, %v1836_v0  ;;  %v1896_v31 = vsel %vm55_vm0, %v1880_v2, %v1834_v23 }
 0x432   :  { %5081 = vmatmul.mubr.msk.f32.vlgmr.msra.gmra.mrb[24].mxu0 %vm1333_vm5, %v1896_v31 }
 0x433   :  { %5083 = vmatprep.mubr.msk.f32.mxu0 %vm1333_vm5, %v1897_v39 }
 0x435   :  { %v1776_v40 = vpop.permute.xlu0 %1775  ;;  %v1774_v53 = vpop.permute.xlu1 %1773 }
 0x436   :  { %v1883_v59 = vsel %vm1287_vm4, %v6352_v49, %v1776_v40  ;;  %v1882_v16 = vsel %vm1287_vm4, %v6332_v38, %v1774_v53 }
 0x439   :  { %v1840_v60 = vpop.permute.xlu0 %1839  ;;  %v1838_v46 = vpop.permute.xlu1 %1837 }
 0x43a   :  { %v1899_v45 = vsel %vm55_vm0, %v1883_v59, %v1840_v60  ;;  %v1898_v32 = vsel %vm55_vm0, %v1882_v16, %v1838_v46 }
 0x43b   :  { %5084 = vmatmul.mubr.msk.f32.gmra.mrb[26].mxu0 %vm1333_vm5, %v1898_v32 }
 0x43c   :  { %5086 = vmatprep.mubr.msk.f32.mxu0 %vm1333_vm5, %v1899_v45 }
 0x43d   :  { %v1780_v33 = vpop.permute.xlu0 %1779  ;;  %v1778_v19 = vpop.permute.xlu1 %1777 }
 0x43e   :  { %v1885_v42 = vsel %vm1287_vm4, %v6372_v6, %v1780_v33  ;;  %v1884_v49 = vsel %vm1287_vm4, %v6355_v27, %v1778_v19 }
 0x441   :  { %v1844_v29 = vpop.permute.xlu0 %1843  ;;  %v1842_v38 = vpop.permute.xlu1 %1841 }
 0x442   :  { %v1901_v25 = vsel %vm55_vm0, %v1885_v42, %v1844_v29  ;;  %v1900_v51 = vsel %vm55_vm0, %v1884_v49, %v1842_v38 }
 0x443   :  { %5087 = vmatmul.mubr.msk.f32.gmra.mrb[28].mxu0 %vm1333_vm5, %v1900_v51 }
 0x444   :  { %5089 = vmatprep.mubr.msk.f32.mxu0 %vm1333_vm5, %v1901_v25 }
 0x445   :  { %v1784_v54 = vpop.permute.xlu0 %1783  ;;  %v1782_v63 = vpop.permute.xlu1 %1781 }
 0x446   :  { %v1887_v6 = vsel %vm1287_vm4, %v1659_v3, %v1784_v54  ;;  %v1886_v27 = vsel %vm1287_vm4, %v6375_v43, %v1782_v63 }
 0x449   :  { %v1848_v61 = vpop.permute.xlu0 %1847  ;;  %v1846_v30 = vpop.permute.xlu1 %1845 }
 0x44a   :  { %v1903_v2 = vsel %vm55_vm0, %v1887_v6, %v1848_v61  ;;  %v1902_v0 = vsel %vm55_vm0, %v1886_v27, %v1846_v30  ;;  %v5558_v6 = vmov 1.0  }
 0x44b   :  { %5090 = vmatmul.mubr.msk.f32.gmra.mrb[30].mxu0 %vm1333_vm5, %v1902_v0 }
 0x44c   :  { %5092 = vmatprep.mubr.msk.f32.mxu0 %vm1333_vm5, %v1903_v2  ;;  %v6573_v2 = vld [vmem:[%s7435_s2 + $0x5] ss:$0 sm:$0xff] }
 0x44d   :  { %v1788_v23 = vpop.permute.xlu0 %1787  ;;  %v1786_v39 = vpop.permute.xlu1 %1785 }
 0x44e   :  { %v1889_v56 = vsel %vm1287_vm4, %v6418_v22, %v1788_v23  ;;  %v1888_v31 = vsel %vm1287_vm4, %v6397_v37, %v1786_v39 }
 0x451   :  { %v1852_v40 = vpop.permute.xlu0 %1851  ;;  %v1850_v43 = vpop.permute.xlu1 %1849 }
 0x452   :  { %v1905_v53 = vsel %vm55_vm0, %v1889_v56, %v1852_v40  ;;  %v1904_v59 = vsel %vm55_vm0, %v1888_v31, %v1850_v43 }
 0x453   :  { %5093 = vmatmul.mubr.msk.f32.gmra.mrb[32].mxu0 %vm1333_vm5, %v1904_v59 }
 0x454   :  { %5095 = vmatprep.mubr.msk.f32.mxu0 %vm1333_vm5, %v1905_v53 }
 0x455   :  { %v1792_v16 = vpop.permute.xlu0 %1791  ;;  %v1790_v60 = vpop.permute.xlu1 %1789 }
 0x456   :  { %v1891_v46 = vsel %vm1287_vm4, %v6440_v62, %v1792_v16  ;;  %v1890_v22 = vsel %vm1287_vm4, %v6421_v15, %v1790_v60 }
 0x459   :  { %v1856_v45 = vpop.permute.xlu0 %1855  ;;  %v1854_v37 = vpop.permute.xlu1 %1853 }
 0x45a   :  { %v1907_v32 = vsel %vm55_vm0, %v1891_v46, %v1856_v45  ;;  %v1906_v33 = vsel %vm55_vm0, %v1890_v22, %v1854_v37 }
 0x45b   :  { %5096 = vmatmul.mubr.msk.f32.gmra.mrb[34].mxu0 %vm1333_vm5, %v1906_v33 }
 0x45c   :  { %5098 = vmatprep.mubr.msk.f32.mxu0 %vm1333_vm5, %v1907_v32 }
 0x45d   :  { %v1796_v19 = vpop.permute.xlu0 %1795  ;;  %v1794_v42 = vpop.permute.xlu1 %1793 }
 0x45e   :  { %v1893_v49 = vsel %vm1287_vm4, %v6461_v28, %v1796_v19  ;;  %v1892_v62 = vsel %vm1287_vm4, %v6443_v41, %v1794_v42  ;;  %v2255_v41 = vmul.u32 2, %v5603_v7 }
 0x460   :  { %vm6557_vm6 = vcmp.eq.s32.totalorder %v5605_v8, %v2255_v41 }
 0x461   :  { %v1860_v29 = vpop.permute.xlu0 %1859  ;;  %v1858_v15 = vpop.permute.xlu1 %1857  ;;  %5136 = vmatprep.mubr.msk.f32.mxu1 %vm6557_vm6, %v5558_v6 }
 0x462   :  { %v1909_v38 = vsel %vm55_vm0, %v1893_v49, %v1860_v29  ;;  %v1908_v25 = vsel %vm55_vm0, %v1892_v62, %v1858_v15 }
 0x463   :  { %5099 = vmatmul.mubr.msk.f32.gmra.mrb[36].mxu0 %vm1333_vm5, %v1908_v25 }
 0x464   :  { %5101 = vmatprep.mubr.msk.f32.mxu0 %vm1333_vm5, %v1909_v38 }
 0x465   :  { %v1798_v51 = vpop.permute.xlu1 %1797 }
 0x466   :  { %v1894_v54 = vsel %vm1287_vm4, %v6464_v52, %v1798_v51  ;;  %v6567_v52 = vld [vmem:[%s7435_s2 + $0x4] ss:$0 sm:$0xff] }
 0x469   :  { %v1862_v63 = vpop.permute.xlu1 %1861 }
 0x46a   :  { %v1910_v28 = vsel %vm55_vm0, %v1894_v54, %v1862_v63 }
 0x46b   :  { %5102 = vmatmul.mubr.msk.f32.gmra.mrb[38].mxu0 %vm1333_vm5, %v1910_v28 }
 0x505   :  { %v5082_v27 = vpop.f32.mrb[24].mxu0 }
 0x506   :  { %v2044_v61 = vadd.f32 %v5082_v27, %v5928_v36  ;;  %v2038_v30 = vpop.f32.mrb[25].mxu0 }
 0x507   :  { %v2039_v0 = vadd.f32 %v2038_v30, %v5937_v44 }
 0x508   :  { %v2124_v23 = vmul.f32 %v6567_v52, %v2044_v61 }
 0x509   :  { %v2123_v39 = vmul.f32 %v6567_v52, %v2039_v0 }
 0x50a   :  { %v2144_v56 = vadd.f32 %v6573_v2, %v2124_v23 }
 0x50b   :  { %v2143_v31 = vadd.f32 %v6573_v2, %v2123_v39 }
 0x50c   :  { %v2160_v40 = vmax.f32 %v2144_v56, 0.0 }
 0x50d   :  { %v2159_v43 = vmax.f32 %v2143_v31, 0.0 }
 0x50e   :  { %v2192_v53 = vrot.slane %v2160_v40, 1  ;;  %v5085_v36 = vpop.f32.mrb[26].mxu0 }
 0x50f   :  { %v2191_v59 = vrot.slane %v2159_v43, 1  ;;  %v2054_v16 = vadd.f32 %v5085_v36, %v5979_v5  ;;  %v2048_v60 = vpop.f32.mrb[27].mxu0 }
 0x510   :  { %v2049_v46 = vadd.f32 %v2048_v60, %v5983_v12 }
 0x511   :  { %v2126_v44 = vmul.f32 %v6567_v52, %v2054_v16  ;;  %v2193_v22 = vsel %vm552_vm12, %v2191_v59, %v2192_v53 }
 0x512   :  { %v2125_v45 = vmul.f32 %v6567_v52, %v2049_v46  ;;  %v2239_v37 = vmax.f32 %v2159_v43, %v2193_v22 }
 0x513   :  { %v2146_v32 = vadd.f32 %v6573_v2, %v2126_v44 }
 0x514   :  { %v2145_v33 = vadd.f32 %v6573_v2, %v2125_v45 }
 0x515   :  { %v2162_v19 = vmax.f32 %v2146_v32, 0.0 }
 0x516   :  { %v2161_v42 = vmax.f32 %v2145_v33, 0.0  ;;  %v5088_v49 = vpop.f32.mrb[28].mxu0 }
 0x517   :  { %v2196_v62 = vrot.slane %v2162_v19, 1  ;;  %v2064_v5 = vadd.f32 %v5088_v49, %v6011_v47  ;;  %v2058_v29 = vpop.f32.mrb[29].mxu0 }
 0x518   :  { %v2194_v15 = vrot.slane %v2161_v42, 1  ;;  %v2059_v12 = vadd.f32 %v2058_v29, %v6015_v48 }
 0x519   :  { %v2128_v38 = vmul.f32 %v6567_v52, %v2064_v5 }
 0x51a   :  { %v2127_v25 = vmul.f32 %v6567_v52, %v2059_v12  ;;  %v2195_v51 = vsel %vm552_vm12, %v2192_v53, %v2194_v15  ;;  %v2197_v54 = vsel %vm552_vm12, %v2194_v15, %v2196_v62 }
 0x51b   :  { %v2148_v63 = vadd.f32 %v6573_v2, %v2128_v38  ;;  %v2240_v28 = vmax.f32 %v2160_v40, %v2195_v51  ;;  %v2241_v41 = vmax.f32 %v2161_v42, %v2197_v54 }
 0x51c   :  { %v2147_v27 = vadd.f32 %v6573_v2, %v2127_v25 }
 0x51d   :  { %v2164_v61 = vmax.f32 %v2148_v63, 0.0  ;;  %v5387_v47 = vpack.c.bf16 %v2240_v28, %v2239_v37 }
 0x51e   :  { %v2163_v30 = vmax.f32 %v2147_v27, 0.0  ;;  %v5091_v0 = vpop.f32.mrb[30].mxu0 }
 0x51f   :  { %v2200_v23 = vrot.slane %v2164_v61, 1  ;;  %v2074_v48 = vadd.f32 %v5091_v0, %v6025_v57  ;;  %v2068_v39 = vpop.f32.mrb[31].mxu0  ;;  %5388 = vmatprep.subr.bf16.mxu1 %v5387_v47 }
 0x520   :  { %v2198_v56 = vrot.slane %v2163_v30, 1  ;;  %v2069_v31 = vadd.f32 %v2068_v39, %v6029_v58  ;;  %5390 = vmatpush3.bf16.msra.mxu1 %v5387_v47 }
 0x521   :  { %v2130_v43 = vmul.f32 %v6567_v52, %v2074_v48 }
 0x522   :  { %v2129_v40 = vmul.f32 %v6567_v52, %v2069_v31  ;;  %v2199_v53 = vsel %vm552_vm12, %v2196_v62, %v2198_v56  ;;  %v2201_v36 = vsel %vm552_vm12, %v2198_v56, %v2200_v23 }
 0x523   :  { %v2150_v59 = vadd.f32 %v6573_v2, %v2130_v43  ;;  %v2242_v16 = vmax.f32 %v2162_v19, %v2199_v53  ;;  %v2243_v60 = vmax.f32 %v2163_v30, %v2201_v36 }
 0x524   :  { %v2149_v57 = vadd.f32 %v6573_v2, %v2129_v40 }
 0x525   :  { %v2166_v46 = vmax.f32 %v2150_v59, 0.0  ;;  %v5391_v44 = vpack.c.bf16 %v2242_v16, %v2241_v41 }
 0x526   :  { %v2165_v22 = vmax.f32 %v2149_v57, 0.0  ;;  %v5094_v45 = vpop.f32.mrb[32].mxu0 }
 0x527   :  { %v2204_v58 = vrot.slane %v2166_v46, 1  ;;  %v2084_v37 = vadd.f32 %v5094_v45, %v6044_v34  ;;  %v2078_v32 = vpop.f32.mrb[33].mxu0  ;;  %5392 = vmatprep.subr.bf16.mxu1 %v5391_v44 }
 0x528   :  { %v2202_v33 = vrot.slane %v2165_v22, 1  ;;  %v2079_v42 = vadd.f32 %v2078_v32, %v6053_v24  ;;  %5394 = vmatpush3.bf16.msra.mxu1 %v5391_v44 }
 0x529   :  { %v2132_v49 = vmul.f32 %v6567_v52, %v2084_v37 }
 0x52a   :  { %v2131_v19 = vmul.f32 %v6567_v52, %v2079_v42  ;;  %v2203_v62 = vsel %vm552_vm12, %v2200_v23, %v2202_v33  ;;  %v2205_v5 = vsel %vm552_vm12, %v2202_v33, %v2204_v58 }
 0x52b   :  { %v2152_v29 = vadd.f32 %v6573_v2, %v2132_v49  ;;  %v2244_v15 = vmax.f32 %v2164_v61, %v2203_v62  ;;  %v2245_v12 = vmax.f32 %v2165_v22, %v2205_v5 }
 0x52c   :  { %v2151_v34 = vadd.f32 %v6573_v2, %v2131_v19 }
 0x52d   :  { %v2168_v38 = vmax.f32 %v2152_v29, 0.0  ;;  %v5395_v25 = vpack.c.bf16 %v2244_v15, %v2243_v60 }
 0x52e   :  { %v2167_v51 = vmax.f32 %v2151_v34, 0.0  ;;  %v5097_v54 = vpop.f32.mrb[34].mxu0 }
 0x52f   :  { %v2208_v24 = vrot.slane %v2168_v38, 1  ;;  %v2094_v63 = vadd.f32 %v5097_v54, %v6059_v35  ;;  %v2088_v28 = vpop.f32.mrb[35].mxu0  ;;  %5396 = vmatprep.subr.bf16.mxu1 %v5395_v25 }
 0x530   :  { %v2206_v41 = vrot.slane %v2167_v51, 1  ;;  %v2089_v27 = vadd.f32 %v2088_v28, %v6067_v55  ;;  %5398 = vmatpush3.bf16.msra.mxu1 %v5395_v25 }
 0x531   :  { %v2134_v47 = vmul.f32 %v6567_v52, %v2094_v63 }
 0x532   :  { %v2133_v61 = vmul.f32 %v6567_v52, %v2089_v27  ;;  %v2207_v30 = vsel %vm552_vm12, %v2204_v58, %v2206_v41  ;;  %v2209_v0 = vsel %vm552_vm12, %v2206_v41, %v2208_v24 }
 0x533   :  { %v2154_v23 = vadd.f32 %v6573_v2, %v2134_v47  ;;  %v2246_v48 = vmax.f32 %v2166_v46, %v2207_v30  ;;  %v2247_v39 = vmax.f32 %v2167_v51, %v2209_v0 }
 0x534   :  { %v2153_v35 = vadd.f32 %v6573_v2, %v2133_v61 }
 0x535   :  { %v2170_v56 = vmax.f32 %v2154_v23, 0.0  ;;  %v5399_v31 = vpack.c.bf16 %v2246_v48, %v2245_v12  ;;  %v2257_v48 = vmul.u32 2, %v5613_v10  ;;  %v4694_v10 = vld [vmem:[%s7434_s1 + $0x258] sm:$0xff] }
 0x536   :  { %v2169_v43 = vmax.f32 %v2153_v35, 0.0  ;;  %v5100_v40 = vpop.f32.mrb[36].mxu0  ;;  %v2258_v35 = vmul.u32 2, %v5617_v13 }
 0x537   :  { %v2212_v55 = vrot.slane %v2170_v56, 1  ;;  %v2104_v53 = vadd.f32 %v5100_v40, %v6081_v20  ;;  %v2098_v36 = vpop.f32.mrb[37].mxu0  ;;  %5400 = vmatprep.subr.bf16.mxu1 %v5399_v31  ;;  %vm6647_vm8 = vcmp.eq.s32.totalorder %v5605_v8, %v2257_v48  ;;  %v2261_v40 = vmul.u32 2, %v5638_v18  ;;  %v4634_v18 = vld [vmem:[%s7434_s1 + $0x128] sm:$0xff] }
 0x538   :  { %v2210_v59 = vrot.slane %v2169_v43, 1  ;;  %v2099_v16 = vadd.f32 %v2098_v36, %v6087_v4  ;;  %5402 = vmatpush3.bf16.msra.mxu1 %v5399_v31  ;;  %v2259_v31 = vmul.u32 2, %v5626_v14  ;;  %vm6659_vm9 = vcmp.eq.s32.totalorder %v5605_v8, %v2258_v35 }
 0x539   :  { %v2136_v60 = vmul.f32 %v6567_v52, %v2104_v53  ;;  %v2262_v14 = vmul.u32 2, %v5649_v21  ;;  %vm2269_vm1 = vcmp.eq.s32.totalorder %v5605_v8, %v2261_v40  ;;  %v4635_v21 = vld [vmem:[%s7434_s1 + $0x130] sm:$0xff]  ;;  %v4636_v53 = vld [vmem:[%s7434_s1 + $0x138] sm:$0xff] }
 0x53a   :  { %v2135_v57 = vmul.f32 %v6567_v52, %v2099_v16  ;;  %v2211_v46 = vsel %vm552_vm12, %v2208_v24, %v2210_v59  ;;  %v2213_v44 = vsel %vm552_vm12, %v2210_v59, %v2212_v55  ;;  %vm2267_vm11 = vcmp.eq.s32.totalorder %v5605_v8, %v2259_v31  ;;  %v4638_v59 = vld [vmem:[%s7434_s1 + $0x148] sm:$0xff] }
 0x53b   :  { %v2156_v22 = vadd.f32 %v6573_v2, %v2136_v60  ;;  %v2248_v45 = vmax.f32 %v2168_v38, %v2211_v46  ;;  %v2249_v58 = vmax.f32 %v2169_v43, %v2213_v44  ;;  %v2260_v43 = vmul.u32 2, %v5633_v17  ;;  %v4633_v17 = vld [vmem:[%s7434_s1 + $0x120] sm:$0xff]  ;;  %v4639_v60 = vld [vmem:[%s7434_s1 + $0x150] sm:$0xff] }
 0x53c   :  { %v2155_v20 = vadd.f32 %v6573_v2, %v2135_v57  ;;  %vm2270_vm3 = vcmp.eq.s32.totalorder %v5605_v8, %v2262_v14  ;;  %v5423_v36 = vpack.c.bf16 %v4636_v53, %v4635_v21  ;;  %v4640_v57 = vld [vmem:[%s7434_s1 + $0x158] sm:$0xff]  ;;  %v4641_v44 = vld [vmem:[%s7434_s1 + $0x160] sm:$0xff] }
 0x53d   :  { %v2172_v37 = vmax.f32 %v2156_v22, 0.0  ;;  %v5403_v32 = vpack.c.bf16 %v2248_v45, %v2247_v39  ;;  %vm2268_vm14 = vcmp.eq.s32.totalorder %v5605_v8, %v2260_v43  ;;  %v5431_v46 = vpack.c.bf16 %v4640_v57, %v4639_v60  ;;  %v4642_v22 = vld [vmem:[%s7434_s1 + $0x168] sm:$0xff]  ;;  %v4691_v39 = vld [vmem:[%s7434_s1 + $0x240] sm:$0xff] }
 0x53e   :  { %v2171_v33 = vmax.f32 %v2155_v20, 0.0  ;;  %v5103_v42 = vpop.f32.mrb[38].mxu0  ;;  %v5435_v45 = vpack.c.bf16 %v4642_v22, %v4641_v44  ;;  %v4643_v20 = vld [vmem:[%s7434_s1 + $0x170] sm:$0xff] }
 0x53f   :  { %v2216_v4 = vrot.slane %v2172_v37, 1  ;;  %v2114_v49 = vadd.f32 %v5103_v42, %v6104_v26  ;;  %v2108_v19 = vpop.f32.mrb[39].mxu0  ;;  %5404 = vmatprep.subr.bf16.mxu1 %v5403_v32 }
 0x540   :  { %v2214_v62 = vrot.slane %v2171_v33, 1  ;;  %v2109_v5 = vadd.f32 %v2108_v19, %v6109_v50  ;;  %5406 = vmatpush3.bf16.msra.mxu1 %v5403_v32 }
 0x541   :  { %v2138_v29 = vmul.f32 %v6567_v52, %v2114_v49 }
 0x542   :  { %v2137_v15 = vmul.f32 %v6567_v52, %v2109_v5  ;;  %v2215_v12 = vsel %vm552_vm12, %v2212_v55, %v2214_v62  ;;  %v2217_v34 = vsel %vm552_vm12, %v2214_v62, %v2216_v4  ;;  %v5419_v55 = vpack.c.bf16 %v4634_v18, %v4633_v17 }
 0x543   :  { %v2158_v38 = vadd.f32 %v6573_v2, %v2138_v29  ;;  %v2250_v25 = vmax.f32 %v2170_v56, %v2215_v12  ;;  %v2251_v51 = vmax.f32 %v2171_v33, %v2217_v34  ;;  %v4692_v56 = vld [vmem:[%s7434_s1 + $0x248] sm:$0xff] }
 0x544   :  { %v2157_v26 = vadd.f32 %v6573_v2, %v2137_v15  ;;  %v2256_v2 = vmul.u32 2, %v5610_v9  ;;  %5420 = vmatprep.subr.bf16.mxu0 %v5419_v55 }
 0x545   :  { %v2174_v54 = vmax.f32 %v2158_v38, 0.0  ;;  %v5407_v24 = vpack.c.bf16 %v2250_v25, %v2249_v58  ;;  %5422 = vmatpush3.bf16.msra.mxu0 %v5419_v55  ;;  %v6758_v55 = vadd.s32 1, %v5617_v13 }
 0x546   :  { %v2173_v63 = vmax.f32 %v2157_v26, 0.0  ;;  %vm6641_vm7 = vcmp.eq.s32.totalorder %v5605_v8, %v2256_v2  ;;  %5424 = vmatprep.subr.bf16.mxu0 %v5423_v36 }
 0x547   :  { %v2220_v28 = vrot.slane %v2174_v54, 1  ;;  %5408 = vmatprep.subr.bf16.mxu1 %v5407_v24 }
 0x548   :  { %v2218_v50 = vrot.slane %v2173_v63, 1  ;;  %5410 = vmatpush3.bf16.msra.mxu1 %v5407_v24 }
 0x549   :  { %v2238_v41 = vsel %vm552_vm12, %v2220_v28, 0.0  ;;  %5426 = vmatpush3.bf16.msra.mxu0 %v5423_v36 }
 0x54a   :  { %v2219_v52 = vsel %vm552_vm12, %v2216_v4, %v2218_v50  ;;  %v2221_v27 = vsel %vm552_vm12, %v2218_v50, %v2220_v28  ;;  %v2254_v47 = vmax.f32 %v2174_v54, %v2238_v41 }
 0x54b   :  { %v2252_v61 = vmax.f32 %v2172_v37, %v2219_v52  ;;  %v2253_v30 = vmax.f32 %v2173_v63, %v2221_v27  ;;  %v4644_v37 = vld [vmem:[%s7434_s1 + $0x178] sm:$0xff] }
 0x54c   :  { %v5439_v42 = vpack.c.bf16 %v4644_v37, %v4643_v20 }
 0x54d   :  { %v5411_v0 = vpack.c.bf16 %v2252_v61, %v2251_v51  ;;  %v5415_v23 = vpack.c.bf16 %v2254_v47, %v2253_v30 }
 0x54f   :  { %5412 = vmatprep.subr.bf16.mxu1 %v5411_v0 }
 0x550   :  { %5414 = vmatpush3.bf16.msra.mxu1 %v5411_v0 }
 0x551   :  { %5416 = vmatprep.subr.bf16.mxu1 %v5415_v23 }
 0x554   :  { %5418 = vmatpush3.bf16.msra.mxu1 %v5415_v23 }
 0x557   :  { %5137 = vmatmul.mubr.msk.f32.vlgmr.msra.gmra.mrb[24].mxu1 %vm6641_vm7, %v5558_v6 }
 0x558   :  { %5139 = vmatprep.mubr.msk.f32.mxu1 %vm6647_vm8, %v5558_v6 }
 0x55b   :  { %5140 = vmatmul.mubr.msk.f32.gmra.mrb[26].mxu1 %vm6659_vm9, %v5558_v6 }
 0x55c   :  { %5142 = vmatprep.mubr.msk.f32.mxu1 %vm2267_vm11, %v5558_v6  ;;  %vm2453_vm11 = vcmp.lt.s32.totalorder %v6758_v55, 32 }
 0x55f   :  { %5143 = vmatmul.mubr.msk.f32.gmra.mrb[28].mxu1 %vm2268_vm14, %v5558_v6  ;;  %vm2940_vm14 = vcmask 392192  }
 0x560   :  { %5145 = vmatprep.mubr.msk.f32.mxu1 %vm2269_vm1, %v5558_v6 }
 0x563   :  { %5146 = vmatmul.mubr.msk.f32.gmra.mrb[30].mxu1 %vm2270_vm3, %v5558_v6  ;;  %v4637_v6 = vld [vmem:[%s7434_s1 + $0x140] sm:$0xff] }
 0x564   :  { %v5427_v16 = vpack.c.bf16 %v4638_v59, %v4637_v6 }
 0x566   :  { %5428 = vmatprep.subr.bf16.mxu0 %v5427_v16 }
 0x567   :  { %5430 = vmatpush3.bf16.msra.mxu0 %v5427_v16 }
 0x568   :  { %5432 = vmatprep.subr.bf16.mxu0 %v5431_v46 }
 0x56b   :  { %5434 = vmatpush3.bf16.msra.mxu0 %v5431_v46 }
 0x56c   :  { %5436 = vmatprep.subr.bf16.mxu0 %v5435_v45 }
 0x56f   :  { %5438 = vmatpush3.bf16.msra.mxu0 %v5435_v45 }
 0x570   :  { %5440 = vmatprep.subr.bf16.mxu0 %v5439_v42 }
 0x573   :  { %5442 = vmatpush3.bf16.msra.mxu0 %v5439_v42 }
 0x62a   :  { %v5138_v58 = vpop.f32.mrb[24].mxu1 }
 0x62b   :  { %v2401_v32 = vrot.slane %v5138_v58, 7  ;;  %v2353_v33 = vpop.f32.mrb[25].mxu1 }
 0x62c   :  { %v2400_v4 = vrot.slane %v2353_v33, 7 }
 0x62e   :  { %v6714_v49 = vsel %vm321_vm10, %v2400_v4, %v2401_v32  ;;  %v6717_v19 = vsel %vm321_vm10, 0.0, %v2400_v4  ;;  %v5141_v62 = vpop.f32.mrb[26].mxu1 }
 0x62f   :  { %v2501_v5 = vrot.slane %v6717_v19, 1  ;;  %v2405_v29 = vrot.slane %v5141_v62, 7  ;;  %v2363_v15 = vpop.f32.mrb[27].mxu1  ;;  %v2502_v34 = vrot.slane %v6714_v49, 1  ;;  %v2468_v38 = vrot.slane %v6717_v19, 2 }
 0x630   :  { %v2403_v12 = vrot.slane %v2363_v15, 7  ;;  %v2469_v25 = vrot.slane %v6714_v49, 2 }
 0x631   :  { %v2503_v54 = vsel %vm552_vm12, %v2501_v5, %v2502_v34 }
 0x632   :  { %v6724_v51 = vsel %vm321_vm10, %v2401_v32, %v2403_v12  ;;  %v6727_v26 = vsel %vm321_vm10, %v2403_v12, %v2405_v29  ;;  %v5144_v24 = vpop.f32.mrb[28].mxu1  ;;  %2518 = vrot.lane.b32.xlu0 %v2503_v54, %s5556_s5  ;;  %v2470_v27 = vsel %vm486_vm13, %v2468_v38, %v2469_v25  ;;  %v2442_v12 = vsel %vm380_vm15, %v6717_v19, 0.0 }
 0x633   :  { %v2409_v63 = vrot.slane %v5144_v24, 7  ;;  %v2373_v28 = vpop.f32.mrb[29].mxu1  ;;  %v2504_v41 = vrot.slane %v6724_v51, 1  ;;  %v2471_v52 = vrot.slane %v6724_v51, 2  ;;  %v2506_v47 = vrot.slane %v6727_v26, 1 }
 0x634   :  { %v2407_v50 = vrot.slane %v2373_v28, 7  ;;  %v2473_v31 = vrot.slane %v6727_v26, 2 }
 0x635   :  { %v2505_v0 = vsel %vm552_vm12, %v2502_v34, %v2504_v41  ;;  %v2472_v43 = vsel %vm486_vm13, %v2469_v25, %v2471_v52  ;;  %v2507_v18 = vsel %vm552_vm12, %v2504_v41, %v2506_v47 }
 0x636   :  { %v6736_v61 = vsel %vm321_vm10, %v2405_v29, %v2407_v50  ;;  %v6739_v30 = vsel %vm321_vm10, %v2407_v50, %v2409_v63  ;;  %v5147_v23 = vpop.f32.mrb[30].mxu1  ;;  %2550 = vrot.lane.b32.xlu0 %v2470_v27, %s5557_s10  ;;  %2520 = vrot.lane.b32.xlu1 %v2505_v0, %s5556_s5  ;;  %v2474_v36 = vsel %vm486_vm13, %v2471_v52, %v2473_v31 }
 0x637   :  { %v2383_v2 = vpop.f32.mrb[31].mxu1  ;;  %v2413_v48 = vrot.slane %v5147_v23, 7  ;;  %v2508_v40 = vrot.slane %v6736_v61, 1  ;;  %v2475_v21 = vrot.slane %v6736_v61, 2  ;;  %v2510_v53 = vrot.slane %v6739_v30, 1 }
 0x638   :  { %v2411_v35 = vrot.slane %v2383_v2, 7  ;;  %v2477_v16 = vrot.slane %v6739_v30, 2  ;;  %v2446_v2 = vsel %vm380_vm15, %v6736_v61, 0.0 }
 0x639   :  { %v2509_v6 = vsel %vm552_vm12, %v2506_v47, %v2508_v40  ;;  %v2476_v59 = vsel %vm486_vm13, %v2473_v31, %v2475_v21  ;;  %v2511_v13 = vsel %vm552_vm12, %v2508_v40, %v2510_v53  ;;  %v2425_v58 = vsel %vm321_vm10, %v2413_v48, 0.0 }
 0x63a   :  { %v6748_v14 = vsel %vm321_vm10, %v2409_v63, %v2411_v35  ;;  %v6751_v17 = vsel %vm321_vm10, %v2411_v35, %v2413_v48  ;;  %2522 = vrot.lane.b32.xlu0 %v2507_v18, %s5556_s5  ;;  %2552 = vrot.lane.b32.xlu1 %v2472_v43, %s5557_s10  ;;  %v2496_v57 = vsel %vm2453_vm11, %v2476_v59, 0.0  ;;  %v2478_v22 = vsel %vm486_vm13, %v2475_v21, %v2477_v16 }
 0x63b   :  { %v2512_v60 = vrot.slane %v6748_v14, 1  ;;  %v2479_v46 = vrot.slane %v6748_v14, 2  ;;  %v2514_v44 = vrot.slane %v6751_v17, 1  ;;  %v2516_v20 = vrot.slane %v2425_v58, 1 }
 0x63c   :  { %v2481_v37 = vrot.slane %v6751_v17, 2  ;;  %v2483_v42 = vrot.slane %v2425_v58, 2 }
 0x63d   :  { %v2513_v45 = vsel %vm552_vm12, %v2510_v53, %v2512_v60  ;;  %v2515_v32 = vsel %vm552_vm12, %v2512_v60, %v2514_v44  ;;  %v2480_v33 = vsel %vm486_vm13, %v2477_v16, %v2479_v46  ;;  %v2517_v62 = vsel %vm552_vm12, %v2514_v44, %v2516_v20  ;;  %v6833_v16 = vld [vmem:[%s7435_s2 + $0x6] ss:$0 sm:$0xff]  ;;  %v6840_v60 = vld [vmem:[%s7435_s2 + $0x7] ss:$0 sm:$0xff] }
 0x63e   :  { %2554 = vrot.lane.b32.xlu0 %v2474_v36, %s5557_s10  ;;  %2524 = vrot.lane.b32.xlu1 %v2509_v6, %s5556_s5  ;;  %v2482_v4 = vsel %vm486_vm13, %v2479_v46, %v2481_v37  ;;  %v2484_v5 = vsel %vm486_vm13, %v2481_v37, %v2483_v42  ;;  %v4656_v46 = vld [vmem:[%s7434_s1 + $0x188] sm:$0xff]  ;;  %v4657_v37 = vld [vmem:[%s7434_s1 + $0x190] sm:$0xff] }
 0x63f   :  { %v2500_v29 = vsel %vm2453_vm11, %v2484_v5, 0.0 }
 0x642   :  { %2526 = vrot.lane.b32.xlu0 %v2511_v13, %s5556_s5  ;;  %2556 = vrot.lane.b32.xlu1 %v2496_v57, %s5557_s10  ;;  %v4655_v57 = vld [vmem:[%s7434_s1 + $0x180] sm:$0xff] }
 0x646   :  { %2558 = vrot.lane.b32.xlu0 %v2478_v22, %s5557_s10  ;;  %2528 = vrot.lane.b32.xlu1 %v2513_v45, %s5556_s5  ;;  %v5443_v22 = vpack.c.bf16 %v4656_v46, %v4655_v57 }
 0x648   :  { %5444 = vmatprep.subr.bf16.mxu1 %v5443_v22 }
 0x649   :  { %5446 = vmatpush3.bf16.msra.mxu1 %v5443_v22 }
 0x64a   :  { %2530 = vrot.lane.b32.xlu0 %v2515_v32, %s5556_s5  ;;  %2560 = vrot.lane.b32.xlu1 %v2480_v33, %s5557_s10  ;;  %v4658_v32 = vld [vmem:[%s7434_s1 + $0x198] sm:$0xff] }
 0x64b   :  { %v5447_v42 = vpack.c.bf16 %v4658_v32, %v4657_v37 }
 0x64d   :  { %5448 = vmatprep.subr.bf16.mxu1 %v5447_v42 }
 0x64e   :  { %2562 = vrot.lane.b32.xlu0 %v2482_v4, %s5557_s10  ;;  %2532 = vrot.lane.b32.xlu1 %v2517_v62, %s5556_s5 }
 0x64f   :  { %5450 = vmatpush3.bf16.msra.mxu1 %v5447_v42 }
 0x652   :  { %2564 = vrot.lane.b32.xlu1 %v2500_v29, %s5557_s10 }
 0x6a4   :  { %v2519_v15 = vpop.permute.xlu0 %2518 }
 0x6a5   :  { %v2574_v34 = vsel %vm1287_vm4, %v2442_v12, %v2519_v15  ;;  %v4659_v12 = vld [vmem:[%s7434_s1 + $0x1a0] sm:$0xff] }
 0x6a8   :  { %v2551_v38 = vpop.permute.xlu0 %2550  ;;  %v2521_v25 = vpop.permute.xlu1 %2520 }
 0x6a9   :  { %v2582_v54 = vsel %vm55_vm0, %v2574_v34, %v2551_v38  ;;  %v2575_v24 = vsel %vm1287_vm4, %v6714_v49, %v2521_v25  ;;  %v4660_v34 = vld [vmem:[%s7434_s1 + $0x1a8] sm:$0xff] }
 0x6aa   :  { %5172 = vmatprep.mubr.msk.f32.mxu0 %vm1333_vm5, %v2582_v54 }
 0x6ac   :  { %v2523_v63 = vpop.permute.xlu0 %2522  ;;  %v2553_v28 = vpop.permute.xlu1 %2552 }
 0x6ad   :  { %v2583_v50 = vsel %vm55_vm0, %v2575_v24, %v2553_v28  ;;  %v2576_v19 = vsel %vm1287_vm4, %v6724_v51, %v2523_v63  ;;  %v5451_v24 = vpack.c.bf16 %v4660_v34, %v4659_v12 }
 0x6ae   :  { %5173 = vmatmul.mubr.msk.f32.vlgmr.msra.gmra.mrb[40].mxu0 %vm1333_vm5, %v2583_v50 }
 0x6af   :  { %5452 = vmatprep.subr.bf16.mxu1 %v5451_v24 }
 0x6b0   :  { %v2555_v41 = vpop.permute.xlu0 %2554  ;;  %v2525_v52 = vpop.permute.xlu1 %2524  ;;  %5454 = vmatpush3.bf16.msra.mxu1 %v5451_v24 }
 0x6b1   :  { %v2584_v27 = vsel %vm55_vm0, %v2576_v19, %v2555_v41  ;;  %v2577_v47 = vsel %vm1287_vm4, %v6727_v26, %v2525_v52 }
 0x6b2   :  { %5175 = vmatprep.mubr.msk.f32.mxu0 %vm1333_vm5, %v2584_v27 }
 0x6b4   :  { %v2527_v0 = vpop.permute.xlu0 %2526  ;;  %v2557_v49 = vpop.permute.xlu1 %2556 }
 0x6b5   :  { %v2585_v23 = vsel %vm55_vm0, %v2577_v47, %v2557_v49  ;;  %v2578_v51 = vsel %vm1287_vm4, %v2446_v2, %v2527_v0 }
 0x6b6   :  { %5176 = vmatmul.mubr.msk.f32.gmra.mrb[42].mxu0 %vm1333_vm5, %v2585_v23 }
 0x6b8   :  { %v2559_v48 = vpop.permute.xlu0 %2558  ;;  %v2529_v35 = vpop.permute.xlu1 %2528 }
 0x6b9   :  { %v2586_v31 = vsel %vm55_vm0, %v2578_v51, %v2559_v48  ;;  %v2579_v26 = vsel %vm1287_vm4, %v6739_v30, %v2529_v35 }
 0x6ba   :  { %5178 = vmatprep.mubr.msk.f32.mxu0 %vm1333_vm5, %v2586_v31 }
 0x6bc   :  { %v2531_v43 = vpop.permute.xlu0 %2530  ;;  %v2561_v40 = vpop.permute.xlu1 %2560 }
 0x6bd   :  { %v2587_v18 = vsel %vm55_vm0, %v2579_v26, %v2561_v40  ;;  %v2580_v61 = vsel %vm1287_vm4, %v6748_v14, %v2531_v43 }
 0x6be   :  { %5179 = vmatmul.mubr.msk.f32.gmra.mrb[44].mxu0 %vm1333_vm5, %v2587_v18 }
 0x6c0   :  { %v2563_v21 = vpop.permute.xlu0 %2562  ;;  %v2533_v53 = vpop.permute.xlu1 %2532 }
 0x6c1   :  { %v2588_v36 = vsel %vm55_vm0, %v2580_v61, %v2563_v21  ;;  %v2581_v6 = vsel %vm1287_vm4, %v6751_v17, %v2533_v53 }
 0x6c2   :  { %5181 = vmatprep.mubr.msk.f32.mxu0 %vm1333_vm5, %v2588_v36 }
 0x6c4   :  { %v2565_v59 = vpop.permute.xlu1 %2564 }
 0x6c5   :  { %v2589_v30 = vsel %vm55_vm0, %v2581_v6, %v2565_v59 }
 0x6c6   :  { %5182 = vmatmul.mubr.msk.f32.gmra.mrb[46].mxu0 %vm1333_vm5, %v2589_v30  ;;  %vm2916_vm5 = vcmask 130048  }
 0x781   :  { %v6835_v14 = vpop.f32.mrb[40].mxu0 }
 0x782   :  { %v2739_v17 = vmul.f32 %v6835_v14, %v6833_v16  ;;  %v6844_v13 = vpop.f32.mrb[41].mxu0 }
 0x783   :  { %v2738_v44 = vmul.f32 %v6833_v16, %v6844_v13 }
 0x784   :  { %v2751_v45 = vadd.f32 %v6840_v60, %v2739_v17 }
 0x785   :  { %v2750_v58 = vadd.f32 %v6840_v60, %v2738_v44 }
 0x786   :  { %v2759_v20 = vmax.f32 %v2751_v45, 0.0 }
 0x787   :  { %v2758_v33 = vmax.f32 %v2750_v58, 0.0 }
 0x788   :  { %v2775_v4 = vrot.slane %v2759_v20, 7 }
 0x789   :  { %v2774_v62 = vrot.slane %v2758_v33, 7  ;;  %v6862_v5 = vpop.f32.mrb[42].mxu0 }
 0x78a   :  { %v2741_v29 = vmul.f32 %v6862_v5, %v6833_v16  ;;  %v6866_v15 = vpop.f32.mrb[43].mxu0 }
 0x78b   :  { %v6875_v38 = vsel %vm321_vm10, %v2774_v62, %v2775_v4  ;;  %v6878_v25 = vsel %vm321_vm10, 0.0, %v2774_v62  ;;  %v2740_v54 = vmul.f32 %v6833_v16, %v6866_v15 }
 0x78c   :  { %v2753_v63 = vadd.f32 %v6840_v60, %v2741_v29  ;;  %v2843_v28 = vrot.slane %v6878_v25, 1  ;;  %v2844_v50 = vrot.slane %v6875_v38, 1  ;;  %v2810_v27 = vrot.slane %v6878_v25, 2 }
 0x78d   :  { %v2752_v19 = vadd.f32 %v6840_v60, %v2740_v54  ;;  %v2811_v47 = vrot.slane %v6875_v38, 2 }
 0x78e   :  { %v2761_v41 = vmax.f32 %v2753_v63, 0.0  ;;  %v2845_v52 = vsel %vm552_vm12, %v2843_v28, %v2844_v50 }
 0x78f   :  { %v2760_v0 = vmax.f32 %v2752_v19, 0.0  ;;  %2860 = vrot.lane.b32.xlu0 %v2845_v52, %s5559_s6  ;;  %v2812_v35 = vsel %vm486_vm13, %v2810_v27, %v2811_v47 }
 0x790   :  { %v2779_v49 = vrot.slane %v2761_v41, 7 }
 0x791   :  { %v2777_v23 = vrot.slane %v2760_v0, 7  ;;  %v6890_v2 = vpop.f32.mrb[44].mxu0 }
 0x792   :  { %v2743_v51 = vmul.f32 %v6890_v2, %v6833_v16  ;;  %v6894_v48 = vpop.f32.mrb[45].mxu0 }
 0x793   :  { %v6898_v31 = vsel %vm321_vm10, %v2775_v4, %v2777_v23  ;;  %v6901_v26 = vsel %vm321_vm10, %v2777_v23, %v2779_v49  ;;  %v2742_v43 = vmul.f32 %v6833_v16, %v6894_v48  ;;  %2892 = vrot.lane.b32.xlu0 %v2812_v35, %s5556_s5 }
 0x794   :  { %v2755_v40 = vadd.f32 %v6840_v60, %v2743_v51  ;;  %v2846_v18 = vrot.slane %v6898_v31, 1  ;;  %v2848_v61 = vrot.slane %v6901_v26, 1  ;;  %v2813_v53 = vrot.slane %v6898_v31, 2 }
 0x795   :  { %v2754_v21 = vadd.f32 %v6840_v60, %v2742_v43  ;;  %v2815_v30 = vrot.slane %v6901_v26, 2 }
 0x796   :  { %v2763_v36 = vmax.f32 %v2755_v40, 0.0  ;;  %v2849_v6 = vsel %vm552_vm12, %v2846_v18, %v2848_v61  ;;  %v2847_v59 = vsel %vm552_vm12, %v2844_v50, %v2846_v18  ;;  %v2814_v20 = vsel %vm486_vm13, %v2811_v47, %v2813_v53 }
 0x797   :  { %v2762_v17 = vmax.f32 %v2754_v21, 0.0  ;;  %2864 = vrot.lane.b32.xlu0 %v2849_v6, %s5559_s6  ;;  %2862 = vrot.lane.b32.xlu1 %v2847_v59, %s5559_s6  ;;  %v2816_v58 = vsel %vm486_vm13, %v2813_v53, %v2815_v30 }
 0x798   :  { %v2783_v57 = vrot.slane %v2763_v36, 7 }
 0x799   :  { %v2781_v46 = vrot.slane %v2762_v17, 7  ;;  %v6916_v44 = vpop.f32.mrb[46].mxu0 }
 0x79a   :  { %v2745_v22 = vmul.f32 %v6916_v44, %v6833_v16  ;;  %v6920_v45 = vpop.f32.mrb[47].mxu0 }
 0x79b   :  { %v6925_v37 = vsel %vm321_vm10, %v2779_v49, %v2781_v46  ;;  %v6928_v32 = vsel %vm321_vm10, %v2781_v46, %v2783_v57  ;;  %v2744_v33 = vmul.f32 %v6833_v16, %v6920_v45  ;;  %2896 = vrot.lane.b32.xlu0 %v2816_v58, %s5556_s5  ;;  %2894 = vrot.lane.b32.xlu1 %v2814_v20, %s5556_s5 }
 0x79c   :  { %v2757_v42 = vadd.f32 %v6840_v60, %v2745_v22  ;;  %v2850_v4 = vrot.slane %v6925_v37, 1  ;;  %v2852_v62 = vrot.slane %v6928_v32, 1  ;;  %v2817_v29 = vrot.slane %v6925_v37, 2 }
 0x79d   :  { %v2756_v12 = vadd.f32 %v6840_v60, %v2744_v33  ;;  %v2819_v16 = vrot.slane %v6928_v32, 2 }
 0x79e   :  { %v2765_v34 = vmax.f32 %v2757_v42, 0.0  ;;  %v2853_v54 = vsel %vm552_vm12, %v2850_v4, %v2852_v62  ;;  %v2851_v24 = vsel %vm552_vm12, %v2848_v61, %v2850_v4  ;;  %v2818_v28 = vsel %vm486_vm13, %v2815_v30, %v2817_v29 }
 0x79f   :  { %v2764_v63 = vmax.f32 %v2756_v12, 0.0  ;;  %2868 = vrot.lane.b32.xlu0 %v2853_v54, %s5559_s6  ;;  %2866 = vrot.lane.b32.xlu1 %v2851_v24, %s5559_s6  ;;  %v2820_v41 = vsel %vm486_vm13, %v2817_v29, %v2819_v16  ;;  %v2838_v60 = vsel %vm2453_vm11, %v2818_v28, 0.0  ;;  %v2800_v30 = vsel %vm380_vm15, %v6878_v25, 0.0 }
 0x7a0   :  { %v2787_v50 = vrot.slane %v2765_v34, 7  ;;  %v2804_v34 = vsel %vm380_vm15, %v6925_v37, 0.0 }
 0x7a1   :  { %v2785_v19 = vrot.slane %v2764_v63, 7 }
 0x7a2   :  { %v2799_v43 = vsel %vm321_vm10, %v2787_v50, 0.0 }
 0x7a3   :  { %v2786_v52 = vsel %vm321_vm10, %v2783_v57, %v2785_v19  ;;  %v6950_v27 = vsel %vm321_vm10, %v2785_v19, %v2787_v50  ;;  %2900 = vrot.lane.b32.xlu0 %v2820_v41, %s5556_s5  ;;  %2898 = vrot.lane.b32.xlu1 %v2838_v60, %s5556_s5  ;;  %v2858_v40 = vrot.slane %v2799_v43, 1  ;;  %v2825_v21 = vrot.slane %v2799_v43, 2 }
 0x7a4   :  { %v2854_v47 = vrot.slane %v2786_v52, 1  ;;  %v2856_v0 = vrot.slane %v6950_v27, 1  ;;  %v2821_v51 = vrot.slane %v2786_v52, 2  ;;  %v2823_v35 = vrot.slane %v6950_v27, 2 }
 0x7a6   :  { %v2857_v49 = vsel %vm552_vm12, %v2854_v47, %v2856_v0  ;;  %v2855_v23 = vsel %vm552_vm12, %v2852_v62, %v2854_v47  ;;  %v2824_v18 = vsel %vm486_vm13, %v2821_v51, %v2823_v35  ;;  %v2822_v61 = vsel %vm486_vm13, %v2819_v16, %v2821_v51 }
 0x7a7   :  { %2872 = vrot.lane.b32.xlu0 %v2857_v49, %s5559_s6  ;;  %2870 = vrot.lane.b32.xlu1 %v2855_v23, %s5559_s6  ;;  %v2859_v53 = vsel %vm552_vm12, %v2856_v0, %v2858_v40  ;;  %v2826_v36 = vsel %vm486_vm13, %v2823_v35, %v2825_v21  ;;  %v7014_v35 = vld [vmem:[%s7435_s2 + $0x9] ss:$0 sm:$0xff] }
 0x7a8   :  { %v2842_v6 = vsel %vm2453_vm11, %v2826_v36, 0.0 }
 0x7ab   :  { %2904 = vrot.lane.b32.xlu0 %v2824_v18, %s5556_s5  ;;  %2902 = vrot.lane.b32.xlu1 %v2822_v61, %s5556_s5  ;;  %v4672_v18 = vld [vmem:[%s7434_s1 + $0x1e8] sm:$0xff] }
 0x7af   :  { %2874 = vrot.lane.b32.xlu1 %v2859_v53, %s5559_s6 }
 0x7b3   :  { %2906 = vrot.lane.b32.xlu1 %v2842_v6, %s5556_s5 }
 0x801   :  { %v2861_v59 = vpop.permute.xlu0 %2860 }
 0x802   :  { %v2917_v17 = vsel %vm2916_vm5, %v2800_v30, %v2861_v59  ;;  %v4673_v59 = vld [vmem:[%s7434_s1 + $0x1f0] sm:$0xff]  ;;  %v4674_v30 = vld [vmem:[%s7434_s1 + $0x1f8] sm:$0xff] }
 0x805   :  { %v2893_v57 = vpop.permute.xlu0 %2892 }
 0x806   :  { %v2925_v46 = vsel %vm1287_vm4, %v2917_v17, %v2893_v57  ;;  %v5459_v57 = vpack.c.bf16 %v4674_v30, %v4673_v59 }
 0x807   :  { %5196 = vmatprep.mubr.msk.f32.mxu1 %vm2940_vm14, %v2925_v46 }
 0x809   :  { %v2865_v22 = vpop.permute.xlu0 %2864  ;;  %v2863_v58 = vpop.permute.xlu1 %2862 }
 0x80a   :  { %v2919_v20 = vsel %vm2916_vm5, %v6898_v31, %v2865_v22  ;;  %v2918_v33 = vsel %vm2916_vm5, %v6875_v38, %v2863_v58 }
 0x80d   :  { %v2897_v42 = vpop.permute.xlu0 %2896  ;;  %v2895_v4 = vpop.permute.xlu1 %2894 }
 0x80e   :  { %v2927_v25 = vsel %vm1287_vm4, %v2919_v20, %v2897_v42  ;;  %v2926_v62 = vsel %vm1287_vm4, %v2918_v33, %v2895_v4  ;;  %v4675_v42 = vld [vmem:[%s7434_s1 + $0x200] sm:$0xff]  ;;  %v4676_v4 = vld [vmem:[%s7434_s1 + $0x208] sm:$0xff] }
 0x80f   :  { %5197 = vmatmul.mubr.msk.f32.vlgmr.msra.gmra.mrb[32].mxu1 %vm2940_vm14, %v2926_v62 }
 0x810   :  { %5199 = vmatprep.mubr.msk.f32.mxu1 %vm2940_vm14, %v2927_v25 }
 0x811   :  { %v2869_v29 = vpop.permute.xlu0 %2868  ;;  %v2867_v12 = vpop.permute.xlu1 %2866 }
 0x812   :  { %v2921_v31 = vsel %vm2916_vm5, %v2804_v34, %v2869_v29  ;;  %v2920_v38 = vsel %vm2916_vm5, %v6901_v26, %v2867_v12  ;;  %v5463_v12 = vpack.c.bf16 %v4676_v4, %v4675_v42 }
 0x815   :  { %v2901_v54 = vpop.permute.xlu0 %2900  ;;  %v2899_v24 = vpop.permute.xlu1 %2898 }
 0x816   :  { %v2929_v16 = vsel %vm1287_vm4, %v2921_v31, %v2901_v54  ;;  %v2928_v63 = vsel %vm1287_vm4, %v2920_v38, %v2899_v24 }
 0x817   :  { %5200 = vmatmul.mubr.msk.f32.gmra.mrb[34].mxu1 %vm2940_vm14, %v2928_v63 }
 0x818   :  { %5202 = vmatprep.mubr.msk.f32.mxu1 %vm2940_vm14, %v2929_v16 }
 0x819   :  { %v2873_v28 = vpop.permute.xlu0 %2872  ;;  %v2871_v50 = vpop.permute.xlu1 %2870 }
 0x81a   :  { %v2923_v19 = vsel %vm2916_vm5, %v2786_v52, %v2873_v28  ;;  %v2922_v37 = vsel %vm2916_vm5, %v6928_v32, %v2871_v50  ;;  %v7009_v32 = vld [vmem:[%s7435_s2 + $0x8] ss:$0 sm:$0xff] }
 0x81d   :  { %v2905_v41 = vpop.permute.xlu0 %2904  ;;  %v2903_v60 = vpop.permute.xlu1 %2902 }
 0x81e   :  { %v2931_v26 = vsel %vm1287_vm4, %v2923_v19, %v2905_v41  ;;  %v2930_v47 = vsel %vm1287_vm4, %v2922_v37, %v2903_v60 }
 0x81f   :  { %5203 = vmatmul.mubr.msk.f32.gmra.mrb[36].mxu1 %vm2940_vm14, %v2930_v47 }
 0x820   :  { %5205 = vmatprep.mubr.msk.f32.mxu1 %vm2940_vm14, %v2931_v26 }
 0x821   :  { %v2875_v0 = vpop.permute.xlu1 %2874 }
 0x822   :  { %v2924_v49 = vsel %vm2916_vm5, %v6950_v27, %v2875_v0  ;;  %v4671_v27 = vld [vmem:[%s7434_s1 + $0x1e0] sm:$0xff] }
 0x823   :  { %v5455_v21 = vpack.c.bf16 %v4672_v18, %v4671_v27 }
 0x825   :  { %v2907_v23 = vpop.permute.xlu1 %2906  ;;  %5456 = vmatprep.subr.bf16.mxu1 %v5455_v21 }
 0x826   :  { %v2932_v52 = vsel %vm1287_vm4, %v2924_v49, %v2907_v23  ;;  %5458 = vmatpush3.bf16.msra.mxu1 %v5455_v21 }
 0x827   :  { %5206 = vmatmul.mubr.msk.f32.gmra.mrb[38].mxu1 %vm2940_vm14, %v2932_v52  ;;  %5460 = vmatprep.subr.bf16.mxu1 %v5459_v57 }
 0x82a   :  { %5462 = vmatpush3.bf16.msra.mxu1 %v5459_v57 }
 0x82b   :  { %5464 = vmatprep.subr.bf16.mxu1 %v5463_v12 }
 0x82e   :  { %5466 = vmatpush3.bf16.msra.mxu1 %v5463_v12 }
 0x8e2   :  { %v5198_v51 = vpop.f32.mrb[32].mxu1 }
 0x8e3   :  { %v3077_v43 = vmul.f32 %v5198_v51, %v7009_v32  ;;  %v3031_v40 = vpop.f32.mrb[33].mxu1 }
 0x8e4   :  { %v3076_v61 = vmul.f32 %v7009_v32, %v3031_v40 }
 0x8e5   :  { %v3089_v53 = vadd.f32 %v7014_v35, %v3077_v43 }
 0x8e6   :  { %v3088_v36 = vadd.f32 %v7014_v35, %v3076_v61 }
 0x8e7   :  { %v3097_v6 = vmax.f32 %v3089_v53, 0.0 }
 0x8e8   :  { %v3096_v17 = vmax.f32 %v3088_v36, 0.0 }
 0x8e9   :  { %v3113_v46 = vrot.slane %v3097_v6, 7 }
 0x8ea   :  { %v3112_v22 = vrot.slane %v3096_v17, 7  ;;  %v5201_v58 = vpop.f32.mrb[34].mxu1 }
 0x8eb   :  { %v3079_v20 = vmul.f32 %v5201_v58, %v7009_v32  ;;  %v3041_v33 = vpop.f32.mrb[35].mxu1 }
 0x8ec   :  { %v7040_v25 = vsel %vm321_vm10, %v3112_v22, %v3113_v46  ;;  %v7043_v62 = vsel %vm321_vm10, 0.0, %v3112_v22  ;;  %v3078_v29 = vmul.f32 %v7009_v32, %v3041_v33 }
 0x8ed   :  { %v3181_v34 = vrot.slane %v7043_v62, 1  ;;  %v3091_v31 = vadd.f32 %v7014_v35, %v3079_v20  ;;  %v3182_v38 = vrot.slane %v7040_v25, 1  ;;  %v3148_v24 = vrot.slane %v7043_v62, 2 }
 0x8ee   :  { %v3090_v54 = vadd.f32 %v7014_v35, %v3078_v29  ;;  %v3149_v28 = vrot.slane %v7040_v25, 2 }
 0x8ef   :  { %v3099_v16 = vmax.f32 %v3091_v31, 0.0  ;;  %v3183_v63 = vsel %vm552_vm12, %v3181_v34, %v3182_v38 }
 0x8f0   :  { %v3098_v50 = vmax.f32 %v3090_v54, 0.0  ;;  %3198 = vrot.lane.b32.xlu0 %v3183_v63, %s5559_s6  ;;  %v3150_v47 = vsel %vm486_vm13, %v3148_v24, %v3149_v28 }
 0x8f1   :  { %v3117_v19 = vrot.slane %v3099_v16, 7 }
 0x8f2   :  { %v3115_v37 = vrot.slane %v3098_v50, 7  ;;  %v5204_v41 = vpop.f32.mrb[36].mxu1 }
 0x8f3   :  { %v3081_v60 = vmul.f32 %v5204_v41, %v7009_v32  ;;  %v3051_v26 = vpop.f32.mrb[37].mxu1 }
 0x8f4   :  { %v7057_v0 = vsel %vm321_vm10, %v3113_v46, %v3115_v37  ;;  %v7060_v49 = vsel %vm321_vm10, %v3115_v37, %v3117_v19  ;;  %v3080_v23 = vmul.f32 %v7009_v32, %v3051_v26  ;;  %3230 = vrot.lane.b32.xlu0 %v3150_v47, %s5556_s5 }
 0x8f5   :  { %v3093_v52 = vadd.f32 %v7014_v35, %v3081_v60  ;;  %v3184_v51 = vrot.slane %v7057_v0, 1  ;;  %v3186_v43 = vrot.slane %v7060_v49, 1  ;;  %v3151_v27 = vrot.slane %v7057_v0, 2 }
 0x8f6   :  { %v3092_v40 = vadd.f32 %v7014_v35, %v3080_v23  ;;  %v3153_v53 = vrot.slane %v7060_v49, 2 }
 0x8f7   :  { %v3101_v18 = vmax.f32 %v3093_v52, 0.0  ;;  %v3187_v61 = vsel %vm552_vm12, %v3184_v51, %v3186_v43  ;;  %v3185_v21 = vsel %vm552_vm12, %v3182_v38, %v3184_v51  ;;  %v3152_v22 = vsel %vm486_vm13, %v3149_v28, %v3151_v27 }
 0x8f8   :  { %v3100_v36 = vmax.f32 %v3092_v40, 0.0  ;;  %3202 = vrot.lane.b32.xlu0 %v3187_v61, %s5559_s6  ;;  %3200 = vrot.lane.b32.xlu1 %v3185_v21, %s5559_s6  ;;  %v3154_v46 = vsel %vm486_vm13, %v3151_v27, %v3153_v53 }
 0x8f9   :  { %v3121_v6 = vrot.slane %v3101_v18, 7 }
 0x8fa   :  { %v3119_v59 = vrot.slane %v3100_v36, 7  ;;  %v5207_v30 = vpop.f32.mrb[38].mxu1 }
 0x8fb   :  { %v3083_v17 = vmul.f32 %v5207_v30, %v7009_v32  ;;  %v3061_v57 = vpop.f32.mrb[39].mxu1 }
 0x8fc   :  { %v7078_v58 = vsel %vm321_vm10, %v3117_v19, %v3119_v59  ;;  %v7081_v20 = vsel %vm321_vm10, %v3119_v59, %v3121_v6  ;;  %v3082_v33 = vmul.f32 %v7009_v32, %v3061_v57  ;;  %3234 = vrot.lane.b32.xlu0 %v3154_v46, %s5556_s5  ;;  %3232 = vrot.lane.b32.xlu1 %v3152_v22, %s5556_s5 }
 0x8fd   :  { %v3095_v42 = vadd.f32 %v7014_v35, %v3083_v17  ;;  %v3188_v4 = vrot.slane %v7078_v58, 1  ;;  %v3190_v29 = vrot.slane %v7081_v20, 1  ;;  %v3155_v12 = vrot.slane %v7078_v58, 2 }
 0x8fe   :  { %v3094_v34 = vadd.f32 %v7014_v35, %v3082_v33  ;;  %v3157_v32 = vrot.slane %v7081_v20, 2 }
 0x8ff   :  { %v3103_v31 = vmax.f32 %v3095_v42, 0.0  ;;  %v3191_v38 = vsel %vm552_vm12, %v3188_v4, %v3190_v29  ;;  %v3189_v54 = vsel %vm552_vm12, %v3186_v43, %v3188_v4  ;;  %v3156_v16 = vsel %vm486_vm13, %v3153_v53, %v3155_v12 }
 0x900   :  { %v3102_v24 = vmax.f32 %v3094_v34, 0.0  ;;  %3206 = vrot.lane.b32.xlu0 %v3191_v38, %s5559_s6  ;;  %3204 = vrot.lane.b32.xlu1 %v3189_v54, %s5559_s6  ;;  %v3158_v50 = vsel %vm486_vm13, %v3155_v12, %v3157_v32  ;;  %v3176_v35 = vsel %vm2453_vm11, %v3156_v16, 0.0  ;;  %v3142_v34 = vsel %vm380_vm15, %v7078_v58, 0.0 }
 0x901   :  { %v3125_v63 = vrot.slane %v3103_v31, 7 }
 0x902   :  { %v3123_v28 = vrot.slane %v3102_v24, 7 }
 0x903   :  { %v3137_v51 = vsel %vm321_vm10, %v3125_v63, 0.0 }
 0x904   :  { %v3124_v19 = vsel %vm321_vm10, %v3121_v6, %v3123_v28  ;;  %v3126_v37 = vsel %vm321_vm10, %v3123_v28, %v3125_v63  ;;  %3238 = vrot.lane.b32.xlu0 %v3158_v50, %s5556_s5  ;;  %3236 = vrot.lane.b32.xlu1 %v3176_v35, %s5556_s5  ;;  %v3196_v43 = vrot.slane %v3137_v51, 1  ;;  %v3163_v18 = vrot.slane %v3137_v51, 2  ;;  %v4686_v51 = vld [vmem:[%s7435_s2 + $0xb] ss:$0 sm:$0xff] }
 0x905   :  { %v3192_v41 = vrot.slane %v3124_v19, 1  ;;  %v3194_v60 = vrot.slane %v3126_v37, 1  ;;  %v3159_v23 = vrot.slane %v3124_v19, 2  ;;  %v3161_v52 = vrot.slane %v3126_v37, 2 }
 0x906   :  { %v3138_v6 = vsel %vm380_vm15, %v7043_v62, 0.0 }
 0x907   :  { %v3195_v26 = vsel %vm552_vm12, %v3192_v41, %v3194_v60  ;;  %v3193_v47 = vsel %vm552_vm12, %v3190_v29, %v3192_v41  ;;  %v3162_v40 = vsel %vm486_vm13, %v3159_v23, %v3161_v52  ;;  %v3160_v27 = vsel %vm486_vm13, %v3157_v32, %v3159_v23  ;;  %v4685_v23 = vld [vmem:[%s7435_s2 + $0xa] ss:$0 sm:$0xff] }
 0x908   :  { %3210 = vrot.lane.b32.xlu0 %v3195_v26, %s5559_s6  ;;  %3208 = vrot.lane.b32.xlu1 %v3193_v47, %s5559_s6  ;;  %v3197_v61 = vsel %vm552_vm12, %v3194_v60, %v3196_v43  ;;  %v3164_v21 = vsel %vm486_vm13, %v3161_v52, %v3163_v18 }
 0x909   :  { %v3180_v53 = vsel %vm2453_vm11, %v3164_v21, 0.0 }
 0x90c   :  { %3242 = vrot.lane.b32.xlu0 %v3162_v40, %s5556_s5  ;;  %3240 = vrot.lane.b32.xlu1 %v3160_v27, %s5556_s5 }
 0x910   :  { %3212 = vrot.lane.b32.xlu1 %v3197_v61, %s5559_s6 }
 0x914   :  { %3244 = vrot.lane.b32.xlu1 %v3180_v53, %s5556_s5 }
 0x962   :  { %v3199_v36 = vpop.permute.xlu0 %3198 }
 0x963   :  { %v3254_v59 = vsel %vm2916_vm5, %v3138_v6, %v3199_v36 }
 0x966   :  { %v3231_v30 = vpop.permute.xlu0 %3230 }
 0x967   :  { %v3262_v17 = vsel %vm1287_vm4, %v3254_v59, %v3231_v30 }
 0x968   :  { %5220 = vmatprep.mubr.msk.f32.mxu1 %vm2940_vm14, %v3262_v17 }
 0x96a   :  { %v3203_v57 = vpop.permute.xlu0 %3202  ;;  %v3201_v46 = vpop.permute.xlu1 %3200 }
 0x96b   :  { %v3256_v55 = vsel %vm2916_vm5, %v7057_v0, %v3203_v57  ;;  %v3255_v22 = vsel %vm2916_vm5, %v7040_v25, %v3201_v46 }
 0x96e   :  { %v3235_v33 = vpop.permute.xlu0 %3234  ;;  %v3233_v42 = vpop.permute.xlu1 %3232 }
 0x96f   :  { %v3264_v4 = vsel %vm1287_vm4, %v3256_v55, %v3235_v33  ;;  %v3263_v62 = vsel %vm1287_vm4, %v3255_v22, %v3233_v42 }
 0x970   :  { %5221 = vmatmul.mubr.msk.f32.vlgmr.msra.gmra.mrb[40].mxu1 %vm2940_vm14, %v3263_v62 }
 0x971   :  { %5223 = vmatprep.mubr.msk.f32.mxu1 %vm2940_vm14, %v3264_v4 }
 0x972   :  { %v3207_v29 = vpop.permute.xlu0 %3206  ;;  %v3205_v12 = vpop.permute.xlu1 %3204 }
 0x973   :  { %v3258_v0 = vsel %vm2916_vm5, %v3142_v34, %v3207_v29  ;;  %v3257_v25 = vsel %vm2916_vm5, %v7060_v49, %v3205_v12 }
 0x976   :  { %v3239_v31 = vpop.permute.xlu0 %3238  ;;  %v3237_v38 = vpop.permute.xlu1 %3236 }
 0x977   :  { %v3266_v54 = vsel %vm1287_vm4, %v3258_v0, %v3239_v31  ;;  %v3265_v32 = vsel %vm1287_vm4, %v3257_v25, %v3237_v38 }
 0x978   :  { %5224 = vmatmul.mubr.msk.f32.gmra.mrb[42].mxu1 %vm2940_vm14, %v3265_v32 }
 0x979   :  { %5226 = vmatprep.mubr.msk.f32.mxu1 %vm2940_vm14, %v3266_v54 }
 0x97a   :  { %v3211_v24 = vpop.permute.xlu0 %3210  ;;  %v3209_v16 = vpop.permute.xlu1 %3208 }
 0x97b   :  { %v3260_v63 = vsel %vm2916_vm5, %v3124_v19, %v3211_v24  ;;  %v3259_v58 = vsel %vm2916_vm5, %v7081_v20, %v3209_v16  ;;  %v7156_v20 = vsel %vm6557_vm6, 1.0, %v5553_v11  ;;  %vm3883_vm6 = vcmask 64512  }
 0x97c   :  { %5248 = vmatprep.mubr.msk.f32.mxu0 %vm55_vm0, %v7156_v20 }
 0x97e   :  { %v3243_v28 = vpop.permute.xlu0 %3242  ;;  %v3241_v50 = vpop.permute.xlu1 %3240 }
 0x97f   :  { %v3268_v49 = vsel %vm1287_vm4, %v3260_v63, %v3243_v28  ;;  %v3267_v35 = vsel %vm1287_vm4, %v3259_v58, %v3241_v50 }
 0x980   :  { %5227 = vmatmul.mubr.msk.f32.gmra.mrb[44].mxu1 %vm2940_vm14, %v3267_v35 }
 0x981   :  { %5229 = vmatprep.mubr.msk.f32.mxu1 %vm2940_vm14, %v3268_v49 }
 0x982   :  { %v3213_v41 = vpop.permute.xlu1 %3212 }
 0x983   :  { %v3261_v60 = vsel %vm2916_vm5, %v3126_v37, %v3213_v41 }
 0x986   :  { %v3245_v26 = vpop.permute.xlu1 %3244 }
 0x987   :  { %v3269_v47 = vsel %vm1287_vm4, %v3261_v60, %v3245_v26 }
 0x988   :  { %5230 = vmatmul.mubr.msk.f32.gmra.mrb[46].mxu1 %vm2940_vm14, %v3269_v47 }
 0xa43   :  { %v5222_v19 = vpop.f32.mrb[40].mxu1 }
 0xa44   :  { %v3373_v37 = vadd.f32 %v5222_v19, %v6835_v14  ;;  %v3367_v52 = vpop.f32.mrb[41].mxu1 }
 0xa45   :  { %v3368_v43 = vadd.f32 %v3367_v52, %v6844_v13 }
 0xa46   :  { %v3413_v3 = vmul.f32 %v4685_v23, %v3373_v37 }
 0xa47   :  { %v3412_v40 = vmul.f32 %v4685_v23, %v3368_v43 }
 0xa48   :  { %v3425_v27 = vadd.f32 %v4686_v51, %v3413_v3 }
 0xa49   :  { %v3424_v18 = vadd.f32 %v4686_v51, %v3412_v40 }
 0xa4a   :  { %v3433_v61 = vmax.f32 %v3425_v27, 0.0 }
 0xa4b   :  { %v3432_v21 = vmax.f32 %v3424_v18, 0.0  ;;  %v5225_v53 = vpop.f32.mrb[42].mxu1 }
 0xa4c   :  { %v3449_v36 = vrot.slane %v3433_v61, 1  ;;  %v3383_v6 = vadd.f32 %v5225_v53, %v6862_v5  ;;  %v3377_v59 = vpop.f32.mrb[43].mxu1 }
 0xa4d   :  { %v3448_v30 = vrot.slane %v3432_v21, 1  ;;  %v3378_v14 = vadd.f32 %v3377_v59, %v6866_v15 }
 0xa4e   :  { %v3415_v17 = vmul.f32 %v4685_v23, %v3383_v6 }
 0xa4f   :  { %v3414_v57 = vmul.f32 %v4685_v23, %v3378_v14  ;;  %v3450_v46 = vsel %vm552_vm12, %v3448_v30, %v3449_v36  ;;  %v4619_v30 = vsel %vm6647_vm8, 1.0, %v5553_v11  ;;  %v4620_v14 = vsel %vm6659_vm9, 1.0, %v5553_v11 }
 0xa50   :  { %v3427_v55 = vadd.f32 %v4686_v51, %v3415_v17  ;;  %v3472_v13 = vmax.f32 %v3432_v21, %v3450_v46  ;;  %v5483_v17 = vpack.c.bf16 %v4692_v56, %v4691_v39 }
 0xa51   :  { %v3426_v22 = vadd.f32 %v4686_v51, %v3414_v57  ;;  %v4693_v57 = vld [vmem:[%s7434_s1 + $0x250] sm:$0xff] }
 0xa52   :  { %v3435_v33 = vmax.f32 %v3427_v55, 0.0  ;;  %5484 = vmatprep.subr.bf16.mxu1 %v5483_v17  ;;  %v5487_v46 = vpack.c.bf16 %v4694_v10, %v4693_v57  ;;  %v4701_v57 = vld [vmem:[%s7435_s2 + $0xc] ss:$0 sm:$0xff] }
 0xa53   :  { %v3434_v42 = vmax.f32 %v3426_v22, 0.0  ;;  %v5228_v4 = vpop.f32.mrb[44].mxu1  ;;  %5486 = vmatpush3.bf16.msra.mxu1 %v5483_v17 }
 0xa54   :  { %v3453_v62 = vrot.slane %v3435_v33, 1  ;;  %v3393_v29 = vadd.f32 %v5228_v4, %v6890_v2  ;;  %v3387_v12 = vpop.f32.mrb[45].mxu1  ;;  %5488 = vmatprep.subr.bf16.mxu1 %v5487_v46 }
 0xa55   :  { %v3451_v34 = vrot.slane %v3434_v42, 1  ;;  %v3388_v5 = vadd.f32 %v3387_v12, %v6894_v48  ;;  %v4696_v12 = vld [vmem:[%s7434_s1 + $0x268] sm:$0xff] }
 0xa56   :  { %v3417_v0 = vmul.f32 %v4685_v23, %v3393_v29  ;;  %v4695_v29 = vld [vmem:[%s7434_s1 + $0x260] sm:$0xff] }
 0xa57   :  { %v3416_v25 = vmul.f32 %v4685_v23, %v3388_v5  ;;  %v3452_v15 = vsel %vm552_vm12, %v3449_v36, %v3451_v34  ;;  %v3454_v31 = vsel %vm552_vm12, %v3451_v34, %v3453_v62  ;;  %5490 = vmatpush3.bf16.msra.mxu1 %v5487_v46  ;;  %v4702_v46 = vld [vmem:[%s7435_s2 + $0xd] ss:$0 sm:$0xff] }
 0xa58   :  { %v3429_v38 = vadd.f32 %v4686_v51, %v3417_v0  ;;  %v3473_v54 = vmax.f32 %v3433_v61, %v3452_v15  ;;  %v3474_v32 = vmax.f32 %v3434_v42, %v3454_v31  ;;  %v5491_v31 = vpack.c.bf16 %v4696_v12, %v4695_v29  ;;  %v4703_v12 = vld [vmem:[%s7434_s1 + $0x2a0] sm:$0xff] }
 0xa59   :  { %v3428_v24 = vadd.f32 %v4686_v51, %v3416_v25 }
 0xa5a   :  { %v3437_v16 = vmax.f32 %v3429_v38, 0.0  ;;  %v5467_v63 = vpack.c.bf16 %v3473_v54, %v3472_v13  ;;  %5492 = vmatprep.subr.bf16.mxu1 %v5491_v31 }
 0xa5b   :  { %v3436_v58 = vmax.f32 %v3428_v24, 0.0  ;;  %v5231_v28 = vpop.f32.mrb[46].mxu1  ;;  %5494 = vmatpush3.bf16.msra.mxu1 %v5491_v31 }
 0xa5c   :  { %v3457_v50 = vrot.slane %v3437_v16, 1  ;;  %v3403_v2 = vadd.f32 %v5231_v28, %v6916_v44  ;;  %v3397_v49 = vpop.f32.mrb[47].mxu1  ;;  %5468 = vmatprep.subr.bf16.mxu0 %v5467_v63 }
 0xa5d   :  { %v3455_v48 = vrot.slane %v3436_v58, 1  ;;  %v3398_v35 = vadd.f32 %v3397_v49, %v6920_v45  ;;  %5470 = vmatpush3.bf16.msra.mxu0 %v5467_v63 }
 0xa5e   :  { %v3419_v41 = vmul.f32 %v4685_v23, %v3403_v2 }
 0xa5f   :  { %v3418_v60 = vmul.f32 %v4685_v23, %v3398_v35  ;;  %v3456_v26 = vsel %vm552_vm12, %v3453_v62, %v3455_v48  ;;  %v3458_v47 = vsel %vm552_vm12, %v3455_v48, %v3457_v50  ;;  %v7227_v35 = vadd.s32 1, %v5610_v9 }
 0xa60   :  { %v3431_v19 = vadd.f32 %v4686_v51, %v3419_v41  ;;  %v3475_v37 = vmax.f32 %v3435_v33, %v3456_v26  ;;  %v3476_v52 = vmax.f32 %v3436_v58, %v3458_v47 }
 0xa61   :  { %v3430_v43 = vadd.f32 %v4686_v51, %v3418_v60  ;;  %v7185_v51 = vsel %vm6641_vm7, 1.0, %v5553_v11 }
 0xa62   :  { %v3439_v3 = vmax.f32 %v3431_v19, 0.0  ;;  %v5471_v40 = vpack.c.bf16 %v3475_v37, %v3474_v32 }
 0xa63   :  { %v3438_v27 = vmax.f32 %v3430_v43, 0.0 }
 0xa64   :  { %v3461_v44 = vrot.slane %v3439_v3, 1  ;;  %5472 = vmatprep.subr.bf16.mxu0 %v5471_v40 }
 0xa65   :  { %v3459_v18 = vrot.slane %v3438_v27, 1  ;;  %5474 = vmatpush3.bf16.msra.mxu0 %v5471_v40 }
 0xa66   :  { %v3471_v45 = vsel %vm552_vm12, %v3461_v44, 0.0 }
 0xa67   :  { %v3460_v61 = vsel %vm552_vm12, %v3457_v50, %v3459_v18  ;;  %v3462_v23 = vsel %vm552_vm12, %v3459_v18, %v3461_v44  ;;  %v3479_v21 = vmax.f32 %v3439_v3, %v3471_v45 }
 0xa68   :  { %v3477_v53 = vmax.f32 %v3437_v16, %v3460_v61  ;;  %v3478_v36 = vmax.f32 %v3438_v27, %v3462_v23 }
 0xa6a   :  { %v5475_v6 = vpack.c.bf16 %v3477_v53, %v3476_v52  ;;  %v5479_v59 = vpack.c.bf16 %v3479_v21, %v3478_v36 }
 0xa6c   :  { %5476 = vmatprep.subr.bf16.mxu0 %v5475_v6 }
 0xa6d   :  { %5478 = vmatpush3.bf16.msra.mxu0 %v5475_v6 }
 0xa6e   :  { %5480 = vmatprep.subr.bf16.mxu0 %v5479_v59 }
 0xa71   :  { %5482 = vmatpush3.bf16.msra.mxu0 %v5479_v59 }
 0xa74   :  { %5249 = vmatmul.mubr.msk.f32.vlgmr.msra.gmra.mrb[48].mxu0 %vm55_vm0, %v7185_v51 }
 0xa75   :  { %5251 = vmatprep.mubr.msk.f32.mxu0 %vm55_vm0, %v4619_v30 }
 0xa78   :  { %5252 = vmatmul.mubr.msk.f32.gmra.mrb[50].mxu0 %vm55_vm0, %v4620_v14  ;;  %vm3608_vm0 = vcmp.lt.s32.totalorder %v7227_v35, 16 }
 0xb47   :  { %v5250_v55 = vpop.f32.mrb[48].mxu0 }
 0xb48   :  { %v3582_v13 = vrot.slane %v5250_v55, 7  ;;  %v3558_v22 = vpop.f32.mrb[49].mxu0 }
 0xb49   :  { %v3581_v33 = vrot.slane %v3558_v22, 7 }
 0xb4b   :  { %v3583_v42 = vsel %vm321_vm10, %v3581_v33, %v3582_v13  ;;  %v3593_v4 = vsel %vm321_vm10, 0.0, %v3581_v33  ;;  %v5253_v62 = vpop.f32.mrb[50].mxu0 }
 0xb4c   :  { %v3634_v34 = vrot.slane %v3593_v4, 1  ;;  %v3635_v5 = vrot.slane %v3583_v42, 1  ;;  %v3568_v0 = vpop.f32.mrb[51].mxu0  ;;  %v3586_v25 = vrot.slane %v5253_v62, 7  ;;  %v3617_v38 = vrot.slane %v3593_v4, 2 }
 0xb4d   :  { %v3584_v15 = vrot.slane %v3568_v0, 7  ;;  %v3618_v54 = vrot.slane %v3583_v42, 2  ;;  %v3603_v40 = vsel %vm380_vm15, %v3593_v4, 0.0 }
 0xb4e   :  { %v3636_v32 = vsel %vm552_vm12, %v3634_v34, %v3635_v5  ;;  %v3594_v63 = vsel %vm321_vm10, %v3586_v25, 0.0  ;;  %v4704_v34 = vld [vmem:[%s7434_s1 + $0x2a8] sm:$0xff] }
 0xb4f   :  { %v3585_v24 = vsel %vm321_vm10, %v3582_v13, %v3584_v15  ;;  %v3587_v16 = vsel %vm321_vm10, %v3584_v15, %v3586_v25  ;;  %3643 = vrot.lane.b32.xlu0 %v3636_v32, %s5559_s6  ;;  %v3619_v50 = vsel %vm486_vm13, %v3617_v38, %v3618_v54  ;;  %v3641_v2 = vrot.slane %v3594_v63, 1 }
 0xb50   :  { %v3637_v58 = vrot.slane %v3585_v24, 1  ;;  %v3639_v28 = vrot.slane %v3587_v16, 1  ;;  %v3620_v48 = vrot.slane %v3585_v24, 2  ;;  %v3622_v41 = vrot.slane %v3587_v16, 2 }
 0xb51   :  { %v3624_v47 = vrot.slane %v3594_v63, 2  ;;  %v3605_v21 = vsel %vm380_vm15, %v3585_v24, 0.0  ;;  %v5495_v25 = vpack.c.bf16 %v4704_v34, %v4703_v12  ;;  %v4705_v24 = vld [vmem:[%s7434_s1 + $0x2b0] sm:$0xff] }
 0xb52   :  { %v3638_v49 = vsel %vm552_vm12, %v3635_v5, %v3637_v58  ;;  %v3640_v60 = vsel %vm552_vm12, %v3637_v58, %v3639_v28  ;;  %v3642_v26 = vsel %vm552_vm12, %v3639_v28, %v3641_v2  ;;  %v3621_v19 = vsel %vm486_vm13, %v3618_v54, %v3620_v48 }
 0xb53   :  { %3659 = vrot.lane.b32.xlu0 %v3619_v50, %s5556_s5  ;;  %3645 = vrot.lane.b32.xlu1 %v3638_v49, %s5559_s6  ;;  %v3623_v37 = vsel %vm486_vm13, %v3620_v48, %v3622_v41  ;;  %v3631_v9 = vsel %vm3608_vm0, %v3621_v19, 0.0  ;;  %v3625_v52 = vsel %vm486_vm13, %v3622_v41, %v3624_v47 }
 0xb54   :  { %v3633_v43 = vsel %vm3608_vm0, %v3625_v52, 0.0  ;;  %5496 = vmatprep.subr.bf16.mxu0 %v5495_v25 }
 0xb55   :  { %5498 = vmatpush3.bf16.msra.mxu0 %v5495_v25 }
 0xb56   :  { %5276 = vmatprep.subr.mxu0 %v4705_v24 }
 0xb57   :  { %3647 = vrot.lane.b32.xlu0 %v3640_v60, %s5559_s6  ;;  %3649 = vrot.lane.b32.xlu1 %v3642_v26, %s5559_s6 }
 0xb59   :  { %5277 = vmatpush3.msra.mxu0 %v4705_v24 }
 0xb5b   :  { %3663 = vrot.lane.b32.xlu0 %v3623_v37, %s5556_s5  ;;  %3661 = vrot.lane.b32.xlu1 %v3631_v9, %s5556_s5 }
 0xb5f   :  { %3665 = vrot.lane.b32.xlu1 %v3633_v43, %s5556_s5  ;;  %s5563_s5 = smov [#allocation2]  }
 0xb60   :  { %s4500_s15 = sshll.u32 %s5563_s5, 4  ;;  %s4501_s15 = int_to_ptr.vmem [resolvable:$true] %s4500_s15 }
 0xb61   :  { %p5534_p1 = scmp.lt.s32.totalorder %s4501_s15, %s4501_s15 }
 0xbc1   :  { %v3644_v3 = vpop.permute.xlu0 %3643 }
 0xbc2   :  { %v3671_v27 = vsel %vm2916_vm5, %v3603_v40, %v3644_v3 }
 0xbc5   :  { %v3660_v44 = vpop.permute.xlu0 %3659  ;;  %v3646_v45 = vpop.permute.xlu1 %3645 }
 0xbc6   :  { %v3675_v18 = vsel %vm1287_vm4, %v3671_v27, %v3660_v44  ;;  %v3672_v6 = vsel %vm2916_vm5, %v3583_v42, %v3646_v45 }
 0xbc7   :  { %5266 = vmatprep.mubr.msk.f32.mxu1 %vm2940_vm14, %v3675_v18 }
 0xbc9   :  { %v3648_v61 = vpop.permute.xlu0 %3647  ;;  %v3650_v23 = vpop.permute.xlu1 %3649 }
 0xbca   :  { %v3673_v53 = vsel %vm2916_vm5, %v3605_v21, %v3648_v61  ;;  %v3674_v39 = vsel %vm2916_vm5, %v3587_v16, %v3650_v23 }
 0xbcd   :  { %v3664_v36 = vpop.permute.xlu0 %3663  ;;  %v3662_v30 = vpop.permute.xlu1 %3661 }
 0xbce   :  { %v3677_v59 = vsel %vm1287_vm4, %v3673_v53, %v3664_v36  ;;  %v3676_v14 = vsel %vm1287_vm4, %v3672_v6, %v3662_v30 }
 0xbcf   :  { %5267 = vmatmul.mubr.msk.f32.vlgmr.msra.gmra.mrb[48].mxu1 %vm2940_vm14, %v3676_v14 }
 0xbd0   :  { %5269 = vmatprep.mubr.msk.f32.mxu1 %vm2940_vm14, %v3677_v59 }
 0xbd1   :  { %v3666_v56 = vpop.permute.xlu1 %3665 }
 0xbd2   :  { %v3678_v17 = vsel %vm1287_vm4, %v3674_v39, %v3666_v56 }
 0xbd3   :  { %5270 = vmatmul.mubr.msk.f32.gmra.mrb[50].mxu1 %vm2940_vm14, %v3678_v17 }
 0xbd4   :  { %5304 = vmatprep.mubr.msk.f32.mxu1 %vm1287_vm4, %v7156_v20 }
 0xca2   :  { %v7265_v10 = vpop.f32.mrb[48].mxu1 }
 0xca3   :  { %v3790_v55 = vmul.f32 %v7265_v10, %v4701_v57  ;;  %v7271_v13 = vpop.f32.mrb[49].mxu1 }
 0xca4   :  { %v3789_v22 = vmul.f32 %v4701_v57, %v7271_v13 }
 0xca5   :  { %v3798_v33 = vadd.f32 %v4702_v46, %v3790_v55 }
 0xca6   :  { %v3797_v42 = vadd.f32 %v4702_v46, %v3789_v22  ;;  %v7274_v4 = vpop.f32.mrb[50].mxu1 }
 0xca7   :  { %v3802_v20 = vmax.f32 %v3798_v33, 0.0  ;;  %v3792_v62 = vmul.f32 %v7274_v4, %v4701_v57  ;;  %v7277_v29 = vpop.f32.mrb[51].mxu1 }
 0xca8   :  { %v3801_v5 = vmax.f32 %v3797_v42, 0.0  ;;  %v3791_v0 = vmul.f32 %v4701_v57, %v7277_v29 }
 0xca9   :  { %v3810_v15 = vrot.slane %v3802_v20, 7  ;;  %v3800_v31 = vadd.f32 %v4702_v46, %v3792_v62 }
 0xcaa   :  { %v3809_v38 = vrot.slane %v3801_v5, 7  ;;  %v3799_v54 = vadd.f32 %v4702_v46, %v3791_v0  ;;  %v4710_v0 = vld [vmem:[%s7435_s2 + $0xe] ss:$0 sm:$0xff] }
 0xcab   :  { %v3804_v32 = vmax.f32 %v3800_v31, 0.0 }
 0xcac   :  { %v3811_v16 = vsel %vm321_vm10, %v3809_v38, %v3810_v15  ;;  %v3821_v63 = vsel %vm321_vm10, 0.0, %v3809_v38  ;;  %v3803_v58 = vmax.f32 %v3799_v54, 0.0 }
 0xcad   :  { %v3814_v28 = vrot.slane %v3804_v32, 7  ;;  %v3846_v50 = vrot.slane %v3821_v63, 1  ;;  %v3847_v2 = vrot.slane %v3811_v16, 1  ;;  %v3829_v41 = vrot.slane %v3821_v63, 2 }
 0xcae   :  { %v3812_v49 = vrot.slane %v3803_v58, 7  ;;  %v3830_v60 = vrot.slane %v3811_v16, 2  ;;  %v3823_v59 = vsel %vm380_vm15, %v3821_v63, 0.0 }
 0xcaf   :  { %v3848_v48 = vsel %vm552_vm12, %v3846_v50, %v3847_v2  ;;  %v3822_v26 = vsel %vm321_vm10, %v3814_v28, 0.0  ;;  %v4712_v50 = vld [vmem:[%s7434_s1 + $0x300] sm:$0xff] }
 0xcb0   :  { %v3813_v47 = vsel %vm321_vm10, %v3810_v15, %v3812_v49  ;;  %v3815_v19 = vsel %vm321_vm10, %v3812_v49, %v3814_v28  ;;  %3855 = vrot.lane.b32.xlu0 %v3848_v48, %s5560_s0  ;;  %v3853_v9 = vrot.slane %v3822_v26, 1  ;;  %v3831_v52 = vsel %vm486_vm13, %v3829_v41, %v3830_v60  ;;  %v4711_v15 = vld [vmem:[%s7435_s2 + $0xf] ss:$0 sm:$0xff] }
 0xcb1   :  { %v3849_v37 = vrot.slane %v3813_v47, 1  ;;  %v3851_v3 = vrot.slane %v3815_v19, 1  ;;  %v3832_v40 = vrot.slane %v3813_v47, 2  ;;  %v3834_v18 = vrot.slane %v3815_v19, 2 }
 0xcb2   :  { %v3836_v45 = vrot.slane %v3822_v26, 2  ;;  %v3825_v46 = vsel %vm380_vm15, %v3813_v47, 0.0 }
 0xcb3   :  { %v3850_v43 = vsel %vm552_vm12, %v3847_v2, %v3849_v37  ;;  %v3852_v27 = vsel %vm552_vm12, %v3849_v37, %v3851_v3  ;;  %v3854_v44 = vsel %vm552_vm12, %v3851_v3, %v3853_v9  ;;  %v3833_v61 = vsel %vm486_vm13, %v3830_v60, %v3832_v40  ;;  %v4713_v2 = vld [vmem:[%s7434_s1 + $0x308] sm:$0xff]  ;;  %v4714_v9 = vld [vmem:[%s7434_s1 + $0x310] sm:$0xff] }
 0xcb4   :  { %3871 = vrot.lane.b32.xlu0 %v3831_v52, %s5559_s6  ;;  %3857 = vrot.lane.b32.xlu1 %v3850_v43, %s5560_s0  ;;  %v3835_v23 = vsel %vm486_vm13, %v3832_v40, %v3834_v18  ;;  %v3843_v21 = vsel %vm3608_vm0, %v3833_v61, 0.0  ;;  %v3837_v53 = vsel %vm486_vm13, %v3834_v18, %v3836_v45  ;;  %v5499_v41 = vpack.c.bf16 %v4713_v2, %v4712_v50 }
 0xcb5   :  { %v3845_v36 = vsel %vm3608_vm0, %v3837_v53, 0.0 }
 0xcb6   :  { %5500 = vmatprep.subr.bf16.mxu0 %v5499_v41 }
 0xcb8   :  { %3859 = vrot.lane.b32.xlu0 %v3852_v27, %s5560_s0  ;;  %3861 = vrot.lane.b32.xlu1 %v3854_v44, %s5560_s0 }
 0xcbc   :  { %3875 = vrot.lane.b32.xlu0 %v3835_v23, %s5559_s6  ;;  %3873 = vrot.lane.b32.xlu1 %v3843_v21, %s5559_s6 }
 0xcc0   :  { %3877 = vrot.lane.b32.xlu1 %v3845_v36, %s5559_s6 }
 0xd22   :  { %v3856_v6 = vpop.permute.xlu0 %3855 }
 0xd23   :  { %v3884_v30 = vsel %vm3883_vm6, %v3823_v59, %v3856_v6 }
 0xd26   :  { %v3872_v14 = vpop.permute.xlu0 %3871  ;;  %v3858_v39 = vpop.permute.xlu1 %3857 }
 0xd27   :  { %v3888_v56 = vsel %vm2916_vm5, %v3884_v30, %v3872_v14  ;;  %v3885_v55 = vsel %vm3883_vm6, %v3811_v16, %v3858_v39 }
 0xd28   :  { %5278 = vmatprep.mubr.msk.f32.mxu0 %vm715_vm2, %v3888_v56 }
 0xd2a   :  { %v3860_v17 = vpop.permute.xlu0 %3859  ;;  %v3862_v57 = vpop.permute.xlu1 %3861 }
 0xd2b   :  { %v3886_v22 = vsel %vm3883_vm6, %v3825_v46, %v3860_v17  ;;  %v3887_v12 = vsel %vm3883_vm6, %v3815_v19, %v3862_v57 }
 0xd2e   :  { %v3876_v33 = vpop.permute.xlu0 %3875  ;;  %v3874_v42 = vpop.permute.xlu1 %3873 }
 0xd2f   :  { %v3890_v20 = vsel %vm2916_vm5, %v3886_v22, %v3876_v33  ;;  %v3889_v62 = vsel %vm2916_vm5, %v3885_v55, %v3874_v42 }
 0xd30   :  { %5279 = vmatmul.mubr.msk.f32.vlgmr.msra.gmra.mrb[52].mxu0 %vm715_vm2, %v3889_v62 }
 0xd31   :  { %5281 = vmatprep.mubr.msk.f32.mxu0 %vm715_vm2, %v3890_v20  ;;  %5502 = vmatpush3.bf16.msra.mxu0 %v5499_v41 }
 0xd32   :  { %v3878_v34 = vpop.permute.xlu1 %3877  ;;  %5288 = vmatprep.subr.mxu0 %v4714_v9 }
 0xd33   :  { %v3891_v5 = vsel %vm2916_vm5, %v3887_v12, %v3878_v34 }
 0xd34   :  { %5282 = vmatmul.mubr.msk.f32.gmra.mrb[54].mxu0 %vm715_vm2, %v3891_v5 }
 0xd35   :  { %5289 = vmatpush3.msra.mxu0 %v4714_v9 }
 0xd36   :  { %5314 = vmatprep.subr.mxu0 %v5553_v11 }
 0xe03   :  { %v5280_v25 = vpop.f32.mrb[52].mxu0 }
 0xe04   :  { %v4000_v31 = vmul.f32 %v5280_v25, %v4710_v0  ;;  %v3974_v38 = vpop.f32.mrb[53].mxu0 }
 0xe05   :  { %v3999_v54 = vmul.f32 %v4710_v0, %v3974_v38 }
 0xe06   :  { %v4008_v32 = vadd.f32 %v4711_v15, %v4000_v31 }
 0xe07   :  { %v4007_v24 = vadd.f32 %v4711_v15, %v3999_v54  ;;  %v5283_v16 = vpop.f32.mrb[54].mxu0 }
 0xe08   :  { %v4012_v63 = vmax.f32 %v4008_v32, 0.0  ;;  %v4002_v58 = vmul.f32 %v5283_v16, %v4710_v0  ;;  %v3984_v28 = vpop.f32.mrb[55].mxu0 }
 0xe09   :  { %v4011_v49 = vmax.f32 %v4007_v24, 0.0  ;;  %v4001_v48 = vmul.f32 %v4710_v0, %v3984_v28 }
 0xe0a   :  { %v4020_v60 = vrot.slane %v4012_v63, 7  ;;  %v4010_v26 = vadd.f32 %v4711_v15, %v4002_v58 }
 0xe0b   :  { %v4019_v47 = vrot.slane %v4011_v49, 7  ;;  %v4009_v19 = vadd.f32 %v4711_v15, %v4001_v48  ;;  %v4719_v49 = vld [vmem:[%s7435_s2 + $0x10] ss:$0 sm:$0xff] }
 0xe0c   :  { %v4014_v37 = vmax.f32 %v4010_v26, 0.0 }
 0xe0d   :  { %v4021_v52 = vsel %vm321_vm10, %v4019_v47, %v4020_v60  ;;  %v4031_v43 = vsel %vm321_vm10, 0.0, %v4019_v47  ;;  %v4013_v3 = vmax.f32 %v4009_v19, 0.0 }
 0xe0e   :  { %v4056_v40 = vrot.slane %v4031_v43, 1  ;;  %v4024_v27 = vrot.slane %v4014_v37, 7  ;;  %v4057_v44 = vrot.slane %v4021_v52, 1  ;;  %v4039_v45 = vrot.slane %v4031_v43, 2 }
 0xe0f   :  { %v4022_v18 = vrot.slane %v4013_v3, 7  ;;  %v4040_v23 = vrot.slane %v4021_v52, 2  ;;  %v4033_v34 = vsel %vm380_vm15, %v4031_v43, 0.0 }
 0xe10   :  { %v4058_v61 = vsel %vm552_vm12, %v4056_v40, %v4057_v44  ;;  %v4032_v21 = vsel %vm321_vm10, %v4024_v27, 0.0 }
 0xe11   :  { %v4023_v53 = vsel %vm321_vm10, %v4020_v60, %v4022_v18  ;;  %v4025_v36 = vsel %vm321_vm10, %v4022_v18, %v4024_v27  ;;  %4065 = vrot.lane.b32.xlu0 %v4058_v61, %s5560_s0  ;;  %v4063_v59 = vrot.slane %v4032_v21, 1  ;;  %v4041_v30 = vsel %vm486_vm13, %v4039_v45, %v4040_v23  ;;  %v4720_v60 = vld [vmem:[%s7435_s2 + $0x11] ss:$0 sm:$0xff] }
 0xe12   :  { %v4059_v6 = vrot.slane %v4023_v53, 1  ;;  %v4061_v39 = vrot.slane %v4025_v36, 1  ;;  %v4042_v56 = vrot.slane %v4023_v53, 2  ;;  %v4044_v46 = vrot.slane %v4025_v36, 2 }
 0xe13   :  { %v4046_v55 = vrot.slane %v4032_v21, 2  ;;  %v4035_v35 = vsel %vm380_vm15, %v4023_v53, 0.0  ;;  %vm5562_vm10 = vmmov 0  }
 0xe14   :  { %v4060_v14 = vsel %vm552_vm12, %v4057_v44, %v4059_v6  ;;  %v4062_v17 = vsel %vm552_vm12, %v4059_v6, %v4061_v39  ;;  %v4064_v57 = vsel %vm552_vm12, %v4061_v39, %v4063_v59  ;;  %v4043_v22 = vsel %vm486_vm13, %v4040_v23, %v4042_v56 }
 0xe15   :  { %4081 = vrot.lane.b32.xlu0 %v4041_v30, %s5559_s6  ;;  %4067 = vrot.lane.b32.xlu1 %v4060_v14, %s5560_s0  ;;  %v4045_v33 = vsel %vm486_vm13, %v4042_v56, %v4044_v46  ;;  %v4053_v42 = vsel %vm3608_vm0, %v4043_v22, 0.0  ;;  %v4047_v20 = vsel %vm486_vm13, %v4044_v46, %v4046_v55  ;;  %v5561_v55 = vmov 0.0|0.0   ;;  %v4402_v22 = vld [vmem:[%s7436_s3] sm:$0xff] }
 0xe16   :  { %v4055_v62 = vsel %vm3608_vm0, %v4047_v20, 0.0 }
 0xe19   :  { %4069 = vrot.lane.b32.xlu0 %v4062_v17, %s5560_s0  ;;  %4071 = vrot.lane.b32.xlu1 %v4064_v57, %s5560_s0 }
 0xe1d   :  { %4085 = vrot.lane.b32.xlu0 %v4045_v33, %s5559_s6  ;;  %4083 = vrot.lane.b32.xlu1 %v4053_v42, %s5559_s6  ;;  %v436_v33 = vadd.s32 1, %v5603_v7  ;;  %v4323_v42 = vmul.u32 8, %v5603_v7  ;;  %v4724_v7 = vld [vmem:[%s7436_s3 + $0x8] ss:$0 sm:$0xff]  ;;  %s5529_s3 = scalar_lea.vmem %s4501_s15, 32 }
 0xe1e   :  { %p5530_p0 = scmp.ne.s32.totalorder %s4501_s15, %s5529_s3  ;;  %p5535_p2 = scmp.lt.s32.totalorder %s5529_s3, %s5529_s3 }
 0xe1f   :  { %v4325_v20 = vmul.u32 8, %v436_v33 }
 0xe20   :  { %p5536_p3 = por %p5535_p2, %p5534_p1 }
 0xe21   :  { %4087 = vrot.lane.b32.xlu1 %v4055_v62, %s5559_s6  ;;  %vm4326_vm13 = vcmp.lt.s32.totalorder %v5605_v8, %v4325_v20 }
 0xe22   :  { %p5537_p4 = pnand %p5536_p3, %p5530_p0 }
 0xe83   :  { %v4066_v12 = vpop.permute.xlu0 %4065 }
 0xe84   :  { %v4093_v5 = vsel %vm3883_vm6, %v4033_v34, %v4066_v12 }
 0xe87   :  { %v4082_v0 = vpop.permute.xlu0 %4081  ;;  %v4068_v25 = vpop.permute.xlu1 %4067 }
 0xe88   :  { %v4097_v15 = vsel %vm2916_vm5, %v4093_v5, %v4082_v0  ;;  %v4094_v54 = vsel %vm3883_vm6, %v4021_v52, %v4068_v25 }
 0xe89   :  { %5290 = vmatprep.mubr.msk.f32.mxu0 %vm715_vm2, %v4097_v15 }
 0xe8b   :  { %v4070_v31 = vpop.permute.xlu0 %4069  ;;  %v4072_v38 = vpop.permute.xlu1 %4071 }
 0xe8c   :  { %v4095_v32 = vsel %vm3883_vm6, %v4035_v35, %v4070_v31  ;;  %v4096_v28 = vsel %vm3883_vm6, %v4025_v36, %v4072_v38 }
 0xe8f   :  { %v4086_v24 = vpop.permute.xlu0 %4085  ;;  %v4084_v16 = vpop.permute.xlu1 %4083 }
 0xe90   :  { %v4099_v63 = vsel %vm2916_vm5, %v4095_v32, %v4086_v24  ;;  %v4098_v58 = vsel %vm2916_vm5, %v4094_v54, %v4084_v16 }
 0xe91   :  { %5291 = vmatmul.mubr.msk.f32.vlgmr.msra.gmra.mrb[56].mxu0 %vm715_vm2, %v4098_v58 }
 0xe92   :  { %5293 = vmatprep.mubr.msk.f32.mxu0 %vm715_vm2, %v4099_v63  ;;  %5315 = vmatpush3.msra.mxu0 %v4402_v22 }
 0xe93   :  { %v4088_v50 = vpop.permute.xlu1 %4087 }
 0xe94   :  { %v4100_v1 = vsel %vm2916_vm5, %v4096_v28, %v4088_v50 }
 0xe95   :  { %5294 = vmatmul.mubr.msk.f32.gmra.mrb[58].mxu0 %vm715_vm2, %v4100_v1  ;;  %vm4481_vm2 = vcmask 33792  }
 0xe96   :  { %5316 = vmatprep.mubr.msk.f32.mxu0 %vm5562_vm10, %v5553_v11 }
 0xf64   :  { %v5292_v2 = vpop.f32.mrb[56].mxu0 }
 0xf65   :  { %v4189_v48 = vadd.f32 %v5292_v2, %v7265_v10  ;;  %v4183_v41 = vpop.f32.mrb[57].mxu0 }
 0xf66   :  { %v4184_v26 = vadd.f32 %v4183_v41, %v7271_v13 }
 0xf67   :  { %v4209_v47 = vmul.f32 %v4719_v49, %v4189_v48 }
 0xf68   :  { %v4208_v19 = vmul.f32 %v4719_v49, %v4184_v26  ;;  %v5295_v37 = vpop.f32.mrb[58].mxu0 }
 0xf69   :  { %v4217_v9 = vadd.f32 %v4720_v60, %v4209_v47  ;;  %v4199_v52 = vadd.f32 %v5295_v37, %v7274_v4  ;;  %v4193_v43 = vpop.f32.mrb[59].mxu0 }
 0xf6a   :  { %v4216_v3 = vadd.f32 %v4720_v60, %v4208_v19  ;;  %v4194_v40 = vadd.f32 %v4193_v43, %v7277_v29 }
 0xf6b   :  { %v4221_v27 = vmax.f32 %v4217_v9, 0.0  ;;  %v4211_v44 = vmul.f32 %v4719_v49, %v4199_v52 }
 0xf6c   :  { %v4220_v10 = vmax.f32 %v4216_v3, 0.0  ;;  %v4210_v18 = vmul.f32 %v4719_v49, %v4194_v40 }
 0xf6d   :  { %v4229_v45 = vrot.slane %v4221_v27, 1  ;;  %v4219_v61 = vadd.f32 %v4720_v60, %v4211_v44 }
 0xf6e   :  { %v4228_v23 = vrot.slane %v4220_v10, 1  ;;  %v4218_v21 = vadd.f32 %v4720_v60, %v4210_v18 }
 0xf6f   :  { %v4223_v53 = vmax.f32 %v4219_v61, 0.0 }
 0xf70   :  { %v4222_v13 = vmax.f32 %v4218_v21, 0.0  ;;  %v4230_v36 = vsel %vm552_vm12, %v4228_v23, %v4229_v45 }
 0xf71   :  { %v4233_v6 = vrot.slane %v4223_v53, 1  ;;  %v4240_v59 = vmax.f32 %v4220_v10, %v4230_v36 }
 0xf72   :  { %v4231_v30 = vrot.slane %v4222_v13, 1 }
 0xf73   :  { %v4239_v4 = vsel %vm552_vm12, %v4233_v6, 0.0 }
 0xf74   :  { %v4232_v14 = vsel %vm552_vm12, %v4229_v45, %v4231_v30  ;;  %v4234_v29 = vsel %vm552_vm12, %v4231_v30, %v4233_v6  ;;  %v4243_v39 = vmax.f32 %v4223_v53, %v4239_v4  ;;  %vm4324_vm12 = vcmp.ge.s32.totalorder %v5605_v8, %v4323_v42 }
 0xf75   :  { %v4241_v56 = vmax.f32 %v4221_v27, %v4232_v14  ;;  %v4242_v17 = vmax.f32 %v4222_v13, %v4234_v29  ;;  %vm4327_vm15 = vmand %vm4324_vm12, %vm4326_vm13 }
 0xf76   :  { %v4328_v34 = vsel %vm4327_vm15, 0.125, %v5553_v11 }
 0xf77   :  { %v5503_v57 = vpack.c.bf16 %v4241_v56, %v4240_v59  ;;  %v5507_v46 = vpack.c.bf16 %v4243_v39, %v4242_v17 }
 0xf79   :  { %5504 = vmatprep.subr.bf16.mxu1 %v5503_v57 }
 0xf7a   :  { %5506 = vmatpush3.bf16.msra.mxu1 %v5503_v57 }
 0xf7b   :  { %5508 = vmatprep.subr.bf16.mxu1 %v5507_v46 }
 0xf7e   :  { %5510 = vmatpush3.bf16.msra.mxu1 %v5507_v46 }
 0xf7f   :  { %5511 = vmatprep.subr.bf16.mxu1 %v5561_v55 }
 0xf81   :  { %5305 = vmatmul.mubr.msk.f32.vlgmr.msra.gmra.mrb[52].mxu1 %vm1287_vm4, %v7185_v51 }
 0xf82   :  { %5311 = vmatprep.mubr.msk.f32.mxu1 %vm5562_vm10, %v5553_v11 }
0x1054   :  { %v5306_v51 = vpop.f32.mrb[52].mxu1 }
0x1055   :  { %v4314_v62 = vpop.f32.mrb[53].mxu1 }
0x1056   :  { %v5512_v12 = vpack.c.bf16 %v5306_v51, %v4314_v62 }
0x1058   :  { %5513 = vmatpush3.bf16.msra.mxu1 %v5512_v12 }
0x105b   :  { %5312 = vmatmul.mubr.msk.f32.vlgmr.msra.gmra.mrb[54].mxu1 %vm2916_vm5, %v4328_v34 }
0x112e   :  { %v4398_v5 = vpop.f32.mrb[54].mxu1 }
0x112f   :  { %v5313_v0 = vpop.f32.mrb[55].mxu1  ;;  %5317 = vmatmul.mubr.msk.f32.vlgmr.msra.gmra.mrb[60].mxu0 %vm3883_vm6, %v4398_v5 }
0x1202   :  { %v4477_v25 = vpop.f32.mrb[60].mxu0 }
0x1203   :  { %v4478_v8 = vadd.f32 %v4724_v7, %v4477_v25  ;;  %v5318_v15 = vpop.f32.mrb[61].mxu0 }
0x1205   :  { %v4482_v31 = vsel %vm4481_vm2, %v4478_v8, -inf }
0x1206   :  { %4483 = vmax.xlane.f32.xlu0 %v4482_v31 }
0x1293   :  { %v4484_v38 = vpop.xlane.xlu0 %4483 }
0x1294   :  { %v4485_v35 = vsub.f32 %v4478_v8, %v4484_v38 }
0x1296   :  { %v4486_v11 = vmul.f32 1.442695, %v4485_v35 }
0x1298   :  { %5525 = vpow2.f32 %v4486_v11 }
0x12a2   :  { %v5526_v54 = vpop.eup %5525 }
0x12a3   :  { %v4488_v32 = vsel %vm4481_vm2, %v5526_v54, 0.0 }
0x12a4   :  { %4489 = vadd.xlane.f32.xlu1 %v4488_v32 }
0x1331   :  { %v4490_v24 = vpop.xlane.xlu1 %4489 }
0x1332   :  { %5527 = vrcp.f32 %v4490_v24 }
0x133c   :  { %v5528_v16 = vpop.eup %5527 }
0x133d   :  { %v4492_v63 = vmul.f32 %v5528_v16, %v5526_v54 }
0x133f   :  { %4493 = vst.msk [vmem:[#allocation2] sm:$0x3] %vm4481_vm2, %v4492_v63 }
0x1340   :  { %5540 = shalt.err (!%p5537_p4)
}
0x1341   :  { %s5541_s17 = scalar_lea.hbm %s7437_s4, 32 }
0x1342   :  { %p5542_p5 = scmp.ne.s32.totalorder %s7437_s4, %s5541_s17  ;;  %p5545_p6 = scmp.lt.u32.totalorder %s5541_s17, %s7437_s4 }
0x1344   :  { %p5547_p7 = pnand %p5545_p6, %p5542_p5 }
0x1346   :  { %5550 = shalt.err (!%p5547_p7)
}
0x1347   :  { %4503 = dma.vmem_to_hbm [thread:$0]  %s4501_s15, 32, %s7437_s4, [#allocation3]  }
0x1348   :  { %5551 = dma.done.wait [#allocation3], 32  }
0x1349   :  { %5552 = vsyncadd [#allocation3], 4294967264 }
0x134a   :  { %4507 = vsyncpa [#allocation3], 1 }

</bundles_post_ra>
